<compile_context>
chip_gen: v5e
topology: v5e:2x2
jax: 0.10.0
libtpu: 0.0.40
codegen_flags: <defaults>
</compile_context>

<pallas_src>
import math

import jax
import jax.numpy as jnp
from jax import lax
from jax.experimental import pallas as pl
from jax.experimental.pallas import tpu as pltpu

_PADL = 8  # 8-aligned sublane offset where the valid image columns start


def _fused_hcn_kernel(x_ref, w1_ref, b1_ref, w2_ref, b2_ref, o_ref,
                      xp_ref, h1_ref, p1p_ref):
    """conv3x3(Cin->C1)+maxpool2 -> conv3x3(C1->C2)+maxpool2 for G NHWC images."""
    G, H, W, Cin = x_ref.shape
    C1 = w1_ref.shape[-1]
    C2 = w2_ref.shape[-1]
    H2, W2 = H // 2, W // 2          # spatial size after the first pool
    H4, W4 = H // 4, W // 4          # final spatial size

    # ------------------ layer 1: conv3x3 (pad=1) + maxpool 2x2 ------------------
    # Zero only the 1-pixel halo the taps actually read (interior is overwritten
    # below).  Re-done every step so it is correct under megacore grid splitting.
    zrow = jnp.zeros((G, 1, W + 2, Cin), jnp.float32)
    zcol = jnp.zeros((G, H, 1, Cin), jnp.float32)
    xp_ref[:, pl.ds(0, 1), pl.ds(_PADL - 1, W + 2), :] = zrow
    xp_ref[:, pl.ds(H + 1, 1), pl.ds(_PADL - 1, W + 2), :] = zrow
    xp_ref[:, pl.ds(1, H), pl.ds(_PADL - 1, 1), :] = zcol
    xp_ref[:, pl.ds(1, H), pl.ds(_PADL + W, 1), :] = zcol
    xp_ref[:, pl.ds(1, H), pl.ds(_PADL, W), :] = x_ref[...]

    # Conv as 9 accumulated MXU dots (one per 3x3 tap), f32 accumulation.
    acc1 = None
    for dy in range(3):
        for dx in range(3):
            tap = xp_ref[:, pl.ds(dy, H), pl.ds(_PADL - 1 + dx, W), :]
            part = jnp.dot(tap.reshape(G * H * W, Cin), w1_ref[dy * 3 + dx],
                           preferred_element_type=jnp.float32)
            acc1 = part if acc1 is None else acc1 + part

    # 2x2 max-pool: H direction in registers (leading-dim split + max), W
    # direction via stride-2 ref reads from a small scratch.  Bias is added once
    # after the pool (per-channel constant, so max and +bias commute).
    y1 = acc1.reshape(G, H2, 2, W, C1)
    h1_ref[...] = jnp.maximum(y1[:, :, 0], y1[:, :, 1])
    p1 = jnp.maximum(h1_ref[:, :, pl.ds(0, W2, stride=2), :],
                     h1_ref[:, :, pl.ds(1, W2, stride=2), :]) + b1_ref[...]

    # ------------------ layer 2: conv3x3 (pad=1) + maxpool 2x2 ------------------
    # The (H2, W2, C1) intermediate never leaves VMEM.
    zrow2 = jnp.zeros((G, 1, W2 + 2, C1), jnp.float32)
    zcol2 = jnp.zeros((G, H2, 1, C1), jnp.float32)
    p1p_ref[:, pl.ds(0, 1), pl.ds(_PADL - 1, W2 + 2), :] = zrow2
    p1p_ref[:, pl.ds(H2 + 1, 1), pl.ds(_PADL - 1, W2 + 2), :] = zrow2
    p1p_ref[:, pl.ds(1, H2), pl.ds(_PADL - 1, 1), :] = zcol2
    p1p_ref[:, pl.ds(1, H2), pl.ds(_PADL + W2, 1), :] = zcol2
    p1p_ref[:, pl.ds(1, H2), pl.ds(_PADL, W2), :] = p1

    acc2 = None
    for dy in range(3):
        for dx in range(3):
            tap = p1p_ref[:, pl.ds(dy, H2), pl.ds(_PADL - 1 + dx, W2), :]
            part = jnp.dot(tap.reshape(G * H2 * W2, C1), w2_ref[dy * 3 + dx],
                           preferred_element_type=jnp.float32)
            acc2 = part if acc2 is None else acc2 + part

    # H-pool on registers; bias added before the W-pool (commutes with max).
    y2 = acc2.reshape(G, H4, 2, W2, C2)
    h2 = jnp.maximum(y2[:, :, 0], y2[:, :, 1]) + b2_ref[...]      # (G, H4, W2, C2)

    # W-pool + lane-dense assembly: output block is (G, H4, W4*C2) = 256 lanes,
    # so the final store is a dense, unmasked vector store.
    cols = [jnp.maximum(h2[:, :, 2 * j, :], h2[:, :, 2 * j + 1, :])
            for j in range(W4)]
    # drop4 = nn.Dropout(p=0.5): identity at inference.
    # TODO(synk): training-mode dropout (random mask + 1/(1-p) scaling) not implemented.
    o_ref[...] = jnp.concatenate(cols, axis=-1).astype(o_ref.dtype)


def _pick_group(batch):
    """Largest G<=4 dividing batch while keeping >=2 grid steps (v7x has 2 TCs)."""
    best = 1
    for g in range(1, min(batch, 4) + 1):
        if batch % g == 0 and batch // g >= 2:
            best = g
    return best


def hcn_cooccurrence_forward(x_nchw, w1, b1, w2, b2):
    """PyTorch-equivalent forward. x_nchw: (B, Cin, H, W) -> (B, 64, H//4, W//4)."""
    B, Cin, H, W = x_nchw.shape
    assert H % 4 == 0 and W % 4 == 0, "fused kernel assumes H, W divisible by 4"
    C1 = w1.shape[-1]
    C2 = w2.shape[-1]
    H2, W2, H4, W4 = H // 2, W // 2, H // 4, W // 4
    G = _pick_group(B)

    x_nhwc = jnp.transpose(x_nchw, (0, 2, 3, 1)).astype(jnp.float32)
    w1r = w1.reshape(9, Cin, C1).astype(jnp.float32)   # HWIO -> per-tap (Cin, C1)
    w2r = w2.reshape(9, C1, C2).astype(jnp.float32)
    b1r = b1.reshape(1, C1).astype(jnp.float32)
    b2r = b2.reshape(1, C2).astype(jnp.float32)

    pad1_w = _PADL + W + 8                  # padded-width scratch extents
    pad2_w = _PADL + W2 + 8

    flops = 2 * B * 9 * (H * W * Cin * C1 + H2 * W2 * C1 * C2)
    bytes_accessed = 4 * (x_nhwc.size + w1r.size + w2r.size + b1r.size + b2r.size
                          + B * H4 * W4 * C2)

    # NOTE(v7x): scratch + live values scale with G*H*W; at production spatial
    # sizes tile the H dimension with a 1-row halo and set vmem_limit_bytes.
    y_flat = pl.pallas_call(
        _fused_hcn_kernel,
        out_shape=jax.ShapeDtypeStruct((B, H4, W4 * C2), jnp.float32),
        grid_spec=pltpu.PrefetchScalarGridSpec(
            num_scalar_prefetch=0,
            grid=(B // G,),
            in_specs=[
                pl.BlockSpec((G, H, W, Cin), lambda b: (b, 0, 0, 0)),
                pl.BlockSpec((9, Cin, C1), lambda b: (0, 0, 0)),
                pl.BlockSpec((1, C1), lambda b: (0, 0)),
                pl.BlockSpec((9, C1, C2), lambda b: (0, 0, 0)),
                pl.BlockSpec((1, C2), lambda b: (0, 0)),
            ],
            out_specs=pl.BlockSpec((G, H4, W4 * C2), lambda b: (b, 0, 0)),
            scratch_shapes=[
                pltpu.VMEM((G, H + 2, pad1_w, Cin), jnp.float32),   # padded input
                pltpu.VMEM((G, H2, W, C1), jnp.float32),            # conv1 H-pooled
                pltpu.VMEM((G, H2 + 2, pad2_w, C1), jnp.float32),   # padded intermediate
            ],
        ),
        compiler_params=pltpu.CompilerParams(dimension_semantics=("parallel",)),
        cost_estimate=pl.CostEstimate(flops=flops, transcendentals=0,
                                      bytes_accessed=bytes_accessed),
    )(x_nhwc, w1r, b1r, w2r, b2r)

    # Un-flatten the lane-dense output and return NCHW to match the PyTorch module.
    # TODO(synk): if the MMTM consumer accepts NHWC, drop this transpose (it is a
    # separate HBM round-trip comparable in cost to the kernel at these shapes).
    y = y_flat.reshape(B, H4, W4, C2)
    return jnp.transpose(y, (0, 3, 1, 2))


# ----------------------------------------------------------------------------
# Pure-JAX reference (correctness check only).
# ----------------------------------------------------------------------------
def reference_forward(x_nchw, w1, b1, w2, b2):
    def conv(x, w, b):
        y = lax.conv_general_dilated(
            x, w, window_strides=(1, 1), padding="SAME",
            dimension_numbers=("NHWC", "HWIO", "NHWC"),
            precision=lax.Precision.HIGHEST)
        return y + b
    def pool(x):
        return lax.reduce_window(x, -jnp.inf, lax.max,
                                 (1, 2, 2, 1), (1, 2, 2, 1), "VALID")
    x = jnp.transpose(x_nchw, (0, 2, 3, 1))
    y = pool(conv(x, w1, b1))
    y = pool(conv(y, w2, b2))
    return jnp.transpose(y, (0, 3, 1, 2))


if __name__ == "__main__":
    B, Cin, H, W = 2, 4, 16, 16

    key = jax.random.PRNGKey(0)
    k1, k2, kb1, kb2, kx = jax.random.split(key, 5)

    # xavier_uniform init (gain=1) matches xavier_init(distribution='uniform');
    # non-zero biases are used here purely to exercise the bias path.
    def xavier_uniform(k, cin, cout):
        fan_in, fan_out = cin * 9, cout * 9
        a = math.sqrt(6.0 / (fan_in + fan_out))
        return jax.random.uniform(k, (3, 3, cin, cout), jnp.float32, -a, a)

    w1 = xavier_uniform(k1, Cin, 32)
    b1 = 0.1 * jax.random.normal(kb1, (32,), jnp.float32)
    w2 = xavier_uniform(k2, 32, 64)
    b2 = 0.1 * jax.random.normal(kb2, (64,), jnp.float32)

    x = jax.random.normal(kx, (B, Cin, H, W), jnp.float32)   # NCHW, like PyTorch

    out = hcn_cooccurrence_forward(x, w1, b1, w2, b2)
    out = jax.block_until_ready(out)

    assert out.shape == (B, 64, H // 4, W // 4), out.shape
    ref = reference_forward(x, w1, b1, w2, b2)
    err = float(jnp.max(jnp.abs(out - ref)))
    assert jnp.allclose(out, ref, atol=1e-3, rtol=1e-3), err

    print("KERNEL_OK")
</pallas_src>

<mosaic_0001>
module attributes {stable_mosaic.version = 11 : i64} {
  func.func @_fused_hcn_kernel(%arg0: i32, %arg1: memref<1x16x16x4xf32, #tpu.memory_space<vmem>>, %arg2: memref<9x4x32xf32, #tpu.memory_space<vmem>>, %arg3: memref<1x32xf32, #tpu.memory_space<vmem>>, %arg4: memref<9x32x64xf32, #tpu.memory_space<vmem>>, %arg5: memref<1x64xf32, #tpu.memory_space<vmem>>, %arg6: memref<1x4x256xf32, #tpu.memory_space<vmem>>, %arg7: memref<1x18x32x4xf32, #tpu.memory_space<vmem>>, %arg8: memref<1x8x16x32xf32, #tpu.memory_space<vmem>>, %arg9: memref<1x10x24x32xf32, #tpu.memory_space<vmem>>) attributes {dimension_semantics = [#tpu.dimension_semantics<parallel>], iteration_bounds = array<i64: 2>, scalar_prefetch = 0 : i64, scratch_operands = 3 : i64, tpu.core_type = #tpu.core_type<tc>, window_params = [{transform_indices = @transform_0, window_bounds = array<i64: 1, 16, 16, 4>}, {pipeline_mode = #tpu.pipeline_mode<synchronous>, transform_indices = @transform_1, window_bounds = array<i64: 9, 4, 32>}, {pipeline_mode = #tpu.pipeline_mode<synchronous>, transform_indices = @transform_2, window_bounds = array<i64: 1, 32>}, {pipeline_mode = #tpu.pipeline_mode<synchronous>, transform_indices = @transform_3, window_bounds = array<i64: 9, 32, 64>}, {pipeline_mode = #tpu.pipeline_mode<synchronous>, transform_indices = @transform_4, window_bounds = array<i64: 1, 64>}, {transform_indices = @transform_5, window_bounds = array<i64: 1, 4, 256>}]} {
    %cst = arith.constant 0.000000e+00 : f32
    %0 = vector.broadcast %cst : f32 to vector<1x1x18x4xf32>
    %cst_0 = arith.constant 0.000000e+00 : f32
    %1 = vector.broadcast %cst_0 : f32 to vector<1x16x1x4xf32>
    %c0 = arith.constant 0 : index
    %c0_1 = arith.constant 0 : index
    %c7 = arith.constant 7 : index
    %c0_2 = arith.constant 0 : index
    %2 = vector.load %arg7[%c0, %c0_1, %c7, %c0_2] : memref<1x18x32x4xf32, #tpu.memory_space<vmem>>, vector<1x1x18x4xf32>
    tpu.vector_store %arg7[%c0, %c0_1, %c7, %c0_2], %0 {strides = array<i32>} : memref<1x18x32x4xf32, #tpu.memory_space<vmem>>, vector<1x1x18x4xf32>,
    %c0_3 = arith.constant 0 : index
    %c17 = arith.constant 17 : index
    %c7_4 = arith.constant 7 : index
    %c0_5 = arith.constant 0 : index
    %3 = vector.load %arg7[%c0_3, %c17, %c7_4, %c0_5] : memref<1x18x32x4xf32, #tpu.memory_space<vmem>>, vector<1x1x18x4xf32>
    tpu.vector_store %arg7[%c0_3, %c17, %c7_4, %c0_5], %0 {strides = array<i32>} : memref<1x18x32x4xf32, #tpu.memory_space<vmem>>, vector<1x1x18x4xf32>,
    %c0_6 = arith.constant 0 : index
    %c1 = arith.constant 1 : index
    %c7_7 = arith.constant 7 : index
    %c0_8 = arith.constant 0 : index
    %4 = vector.load %arg7[%c0_6, %c1, %c7_7, %c0_8] : memref<1x18x32x4xf32, #tpu.memory_space<vmem>>, vector<1x16x1x4xf32>
    tpu.vector_store %arg7[%c0_6, %c1, %c7_7, %c0_8], %1 {strides = array<i32>} : memref<1x18x32x4xf32, #tpu.memory_space<vmem>>, vector<1x16x1x4xf32>,
    %c0_9 = arith.constant 0 : index
    %c1_10 = arith.constant 1 : index
    %c24 = arith.constant 24 : index
    %c0_11 = arith.constant 0 : index
    %5 = vector.load %arg7[%c0_9, %c1_10, %c24, %c0_11] : memref<1x18x32x4xf32, #tpu.memory_space<vmem>>, vector<1x16x1x4xf32>
    tpu.vector_store %arg7[%c0_9, %c1_10, %c24, %c0_11], %1 {strides = array<i32>} : memref<1x18x32x4xf32, #tpu.memory_space<vmem>>, vector<1x16x1x4xf32>,
    %c0_12 = arith.constant 0 : index
    %c0_13 = arith.constant 0 : index
    %c0_14 = arith.constant 0 : index
    %c0_15 = arith.constant 0 : index
    %6 = vector.load %arg1[%c0_12, %c0_13, %c0_14, %c0_15] : memref<1x16x16x4xf32, #tpu.memory_space<vmem>>, vector<1x16x16x4xf32>
    %c0_16 = arith.constant 0 : index
    %c1_17 = arith.constant 1 : index
    %c8 = arith.constant 8 : index
    %c0_18 = arith.constant 0 : index
    %7 = vector.load %arg7[%c0_16, %c1_17, %c8, %c0_18] : memref<1x18x32x4xf32, #tpu.memory_space<vmem>>, vector<1x16x16x4xf32>
    tpu.vector_store %arg7[%c0_16, %c1_17, %c8, %c0_18], %6 {strides = array<i32>} : memref<1x18x32x4xf32, #tpu.memory_space<vmem>>, vector<1x16x16x4xf32>,
    %c0_19 = arith.constant 0 : index
    %c0_20 = arith.constant 0 : index
    %c7_21 = arith.constant 7 : index
    %c0_22 = arith.constant 0 : index
    %8 = vector.load %arg7[%c0_19, %c0_20, %c7_21, %c0_22] : memref<1x18x32x4xf32, #tpu.memory_space<vmem>>, vector<1x16x16x4xf32>
    %9 = vector.shape_cast %8 : vector<1x16x16x4xf32> to vector<256x4xf32>
    %c0_23 = arith.constant 0 : index
    %c0_24 = arith.constant 0 : index
    %c0_25 = arith.constant 0 : index
    %10 = vector.load %arg2[%c0_23, %c0_24, %c0_25] : memref<9x4x32xf32, #tpu.memory_space<vmem>>, vector<1x4x32xf32>
    %11 = vector.shape_cast %10 : vector<1x4x32xf32> to vector<4x32xf32>
    %cst_26 = arith.constant dense<0.000000e+00> : vector<256x32xf32>
    %12 = tpu.matmul %9, %11, %cst_26 {dimension_numbers = #tpu.dot_dimension_numbers<[1], [0], [0], [1], [0, 0, 1, 1], [], []>} : vector<256x4xf32>, vector<4x32xf32>, vector<256x32xf32> -> vector<256x32xf32>
    %c0_27 = arith.constant 0 : index
    %c0_28 = arith.constant 0 : index
    %c8_29 = arith.constant 8 : index
    %c0_30 = arith.constant 0 : index
    %13 = vector.load %arg7[%c0_27, %c0_28, %c8_29, %c0_30] : memref<1x18x32x4xf32, #tpu.memory_space<vmem>>, vector<1x16x16x4xf32>
    %14 = vector.shape_cast %13 : vector<1x16x16x4xf32> to vector<256x4xf32>
    %c1_31 = arith.constant 1 : index
    %c0_32 = arith.constant 0 : index
    %c0_33 = arith.constant 0 : index
    %15 = vector.load %arg2[%c1_31, %c0_32, %c0_33] : memref<9x4x32xf32, #tpu.memory_space<vmem>>, vector<1x4x32xf32>
    %16 = vector.shape_cast %15 : vector<1x4x32xf32> to vector<4x32xf32>
    %cst_34 = arith.constant dense<0.000000e+00> : vector<256x32xf32>
    %17 = tpu.matmul %14, %16, %cst_34 {dimension_numbers = #tpu.dot_dimension_numbers<[1], [0], [0], [1], [0, 0, 1, 1], [], []>} : vector<256x4xf32>, vector<4x32xf32>, vector<256x32xf32> -> vector<256x32xf32>
    %18 = arith.addf %12, %17 : vector<256x32xf32>
    %c0_35 = arith.constant 0 : index
    %c0_36 = arith.constant 0 : index
    %c9 = arith.constant 9 : index
    %c0_37 = arith.constant 0 : index
    %19 = vector.load %arg7[%c0_35, %c0_36, %c9, %c0_37] : memref<1x18x32x4xf32, #tpu.memory_space<vmem>>, vector<1x16x16x4xf32>
    %20 = vector.shape_cast %19 : vector<1x16x16x4xf32> to vector<256x4xf32>
    %c2 = arith.constant 2 : index
    %c0_38 = arith.constant 0 : index
    %c0_39 = arith.constant 0 : index
    %21 = vector.load %arg2[%c2, %c0_38, %c0_39] : memref<9x4x32xf32, #tpu.memory_space<vmem>>, vector<1x4x32xf32>
    %22 = vector.shape_cast %21 : vector<1x4x32xf32> to vector<4x32xf32>
    %cst_40 = arith.constant dense<0.000000e+00> : vector<256x32xf32>
    %23 = tpu.matmul %20, %22, %cst_40 {dimension_numbers = #tpu.dot_dimension_numbers<[1], [0], [0], [1], [0, 0, 1, 1], [], []>} : vector<256x4xf32>, vector<4x32xf32>, vector<256x32xf32> -> vector<256x32xf32>
    %24 = arith.addf %18, %23 : vector<256x32xf32>
    %c0_41 = arith.constant 0 : index
    %c1_42 = arith.constant 1 : index
    %c7_43 = arith.constant 7 : index
    %c0_44 = arith.constant 0 : index
    %25 = vector.load %arg7[%c0_41, %c1_42, %c7_43, %c0_44] : memref<1x18x32x4xf32, #tpu.memory_space<vmem>>, vector<1x16x16x4xf32>
    %26 = vector.shape_cast %25 : vector<1x16x16x4xf32> to vector<256x4xf32>
    %c3 = arith.constant 3 : index
    %c0_45 = arith.constant 0 : index
    %c0_46 = arith.constant 0 : index
    %27 = vector.load %arg2[%c3, %c0_45, %c0_46] : memref<9x4x32xf32, #tpu.memory_space<vmem>>, vector<1x4x32xf32>
    %28 = vector.shape_cast %27 : vector<1x4x32xf32> to vector<4x32xf32>
    %cst_47 = arith.constant dense<0.000000e+00> : vector<256x32xf32>
    %29 = tpu.matmul %26, %28, %cst_47 {dimension_numbers = #tpu.dot_dimension_numbers<[1], [0], [0], [1], [0, 0, 1, 1], [], []>} : vector<256x4xf32>, vector<4x32xf32>, vector<256x32xf32> -> vector<256x32xf32>
    %30 = arith.addf %24, %29 : vector<256x32xf32>
    %c0_48 = arith.constant 0 : index
    %c1_49 = arith.constant 1 : index
    %c8_50 = arith.constant 8 : index
    %c0_51 = arith.constant 0 : index
    %31 = vector.load %arg7[%c0_48, %c1_49, %c8_50, %c0_51] : memref<1x18x32x4xf32, #tpu.memory_space<vmem>>, vector<1x16x16x4xf32>
    %32 = vector.shape_cast %31 : vector<1x16x16x4xf32> to vector<256x4xf32>
    %c4 = arith.constant 4 : index
    %c0_52 = arith.constant 0 : index
    %c0_53 = arith.constant 0 : index
    %33 = vector.load %arg2[%c4, %c0_52, %c0_53] : memref<9x4x32xf32, #tpu.memory_space<vmem>>, vector<1x4x32xf32>
    %34 = vector.shape_cast %33 : vector<1x4x32xf32> to vector<4x32xf32>
    %cst_54 = arith.constant dense<0.000000e+00> : vector<256x32xf32>
    %35 = tpu.matmul %32, %34, %cst_54 {dimension_numbers = #tpu.dot_dimension_numbers<[1], [0], [0], [1], [0, 0, 1, 1], [], []>} : vector<256x4xf32>, vector<4x32xf32>, vector<256x32xf32> -> vector<256x32xf32>
    %36 = arith.addf %30, %35 : vector<256x32xf32>
    %c0_55 = arith.constant 0 : index
    %c1_56 = arith.constant 1 : index
    %c9_57 = arith.constant 9 : index
    %c0_58 = arith.constant 0 : index
    %37 = vector.load %arg7[%c0_55, %c1_56, %c9_57, %c0_58] : memref<1x18x32x4xf32, #tpu.memory_space<vmem>>, vector<1x16x16x4xf32>
    %38 = vector.shape_cast %37 : vector<1x16x16x4xf32> to vector<256x4xf32>
    %c5 = arith.constant 5 : index
    %c0_59 = arith.constant 0 : index
    %c0_60 = arith.constant 0 : index
    %39 = vector.load %arg2[%c5, %c0_59, %c0_60] : memref<9x4x32xf32, #tpu.memory_space<vmem>>, vector<1x4x32xf32>
    %40 = vector.shape_cast %39 : vector<1x4x32xf32> to vector<4x32xf32>
    %cst_61 = arith.constant dense<0.000000e+00> : vector<256x32xf32>
    %41 = tpu.matmul %38, %40, %cst_61 {dimension_numbers = #tpu.dot_dimension_numbers<[1], [0], [0], [1], [0, 0, 1, 1], [], []>} : vector<256x4xf32>, vector<4x32xf32>, vector<256x32xf32> -> vector<256x32xf32>
    %42 = arith.addf %36, %41 : vector<256x32xf32>
    %c0_62 = arith.constant 0 : index
    %c2_63 = arith.constant 2 : index
    %c7_64 = arith.constant 7 : index
    %c0_65 = arith.constant 0 : index
    %43 = vector.load %arg7[%c0_62, %c2_63, %c7_64, %c0_65] : memref<1x18x32x4xf32, #tpu.memory_space<vmem>>, vector<1x16x16x4xf32>
    %44 = vector.shape_cast %43 : vector<1x16x16x4xf32> to vector<256x4xf32>
    %c6 = arith.constant 6 : index
    %c0_66 = arith.constant 0 : index
    %c0_67 = arith.constant 0 : index
    %45 = vector.load %arg2[%c6, %c0_66, %c0_67] : memref<9x4x32xf32, #tpu.memory_space<vmem>>, vector<1x4x32xf32>
    %46 = vector.shape_cast %45 : vector<1x4x32xf32> to vector<4x32xf32>
    %cst_68 = arith.constant dense<0.000000e+00> : vector<256x32xf32>
    %47 = tpu.matmul %44, %46, %cst_68 {dimension_numbers = #tpu.dot_dimension_numbers<[1], [0], [0], [1], [0, 0, 1, 1], [], []>} : vector<256x4xf32>, vector<4x32xf32>, vector<256x32xf32> -> vector<256x32xf32>
    %48 = arith.addf %42, %47 : vector<256x32xf32>
    %c0_69 = arith.constant 0 : index
    %c2_70 = arith.constant 2 : index
    %c8_71 = arith.constant 8 : index
    %c0_72 = arith.constant 0 : index
    %49 = vector.load %arg7[%c0_69, %c2_70, %c8_71, %c0_72] : memref<1x18x32x4xf32, #tpu.memory_space<vmem>>, vector<1x16x16x4xf32>
    %50 = vector.shape_cast %49 : vector<1x16x16x4xf32> to vector<256x4xf32>
    %c7_73 = arith.constant 7 : index
    %c0_74 = arith.constant 0 : index
    %c0_75 = arith.constant 0 : index
    %51 = vector.load %arg2[%c7_73, %c0_74, %c0_75] : memref<9x4x32xf32, #tpu.memory_space<vmem>>, vector<1x4x32xf32>
    %52 = vector.shape_cast %51 : vector<1x4x32xf32> to vector<4x32xf32>
    %cst_76 = arith.constant dense<0.000000e+00> : vector<256x32xf32>
    %53 = tpu.matmul %50, %52, %cst_76 {dimension_numbers = #tpu.dot_dimension_numbers<[1], [0], [0], [1], [0, 0, 1, 1], [], []>} : vector<256x4xf32>, vector<4x32xf32>, vector<256x32xf32> -> vector<256x32xf32>
    %54 = arith.addf %48, %53 : vector<256x32xf32>
    %c0_77 = arith.constant 0 : index
    %c2_78 = arith.constant 2 : index
    %c9_79 = arith.constant 9 : index
    %c0_80 = arith.constant 0 : index
    %55 = vector.load %arg7[%c0_77, %c2_78, %c9_79, %c0_80] : memref<1x18x32x4xf32, #tpu.memory_space<vmem>>, vector<1x16x16x4xf32>
    %56 = vector.shape_cast %55 : vector<1x16x16x4xf32> to vector<256x4xf32>
    %c8_81 = arith.constant 8 : index
    %c0_82 = arith.constant 0 : index
    %c0_83 = arith.constant 0 : index
    %57 = vector.load %arg2[%c8_81, %c0_82, %c0_83] : memref<9x4x32xf32, #tpu.memory_space<vmem>>, vector<1x4x32xf32>
    %58 = vector.shape_cast %57 : vector<1x4x32xf32> to vector<4x32xf32>
    %cst_84 = arith.constant dense<0.000000e+00> : vector<256x32xf32>
    %59 = tpu.matmul %56, %58, %cst_84 {dimension_numbers = #tpu.dot_dimension_numbers<[1], [0], [0], [1], [0, 0, 1, 1], [], []>} : vector<256x4xf32>, vector<4x32xf32>, vector<256x32xf32> -> vector<256x32xf32>
    %60 = arith.addf %54, %59 : vector<256x32xf32>
    %61 = vector.shape_cast %60 : vector<256x32xf32> to vector<1x8x2x16x32xf32>
    %62 = vector.extract_strided_slice %61 {offsets = [0, 0, 0, 0, 0], sizes = [1, 8, 1, 16, 32], strides = [1, 1, 1, 1, 1]} : vector<1x8x2x16x32xf32> to vector<1x8x1x16x32xf32>
    %63 = vector.shape_cast %62 : vector<1x8x1x16x32xf32> to vector<1x8x16x32xf32>
    %64 = vector.extract_strided_slice %61 {offsets = [0, 0, 1, 0, 0], sizes = [1, 8, 1, 16, 32], strides = [1, 1, 1, 1, 1]} : vector<1x8x2x16x32xf32> to vector<1x8x1x16x32xf32>
    %65 = vector.shape_cast %64 : vector<1x8x1x16x32xf32> to vector<1x8x16x32xf32>
    %66 = arith.maximumf %63, %65 : vector<1x8x16x32xf32>
    %c0_85 = arith.constant 0 : index
    %c0_86 = arith.constant 0 : index
    %c0_87 = arith.constant 0 : index
    %c0_88 = arith.constant 0 : index
    %67 = vector.load %arg8[%c0_85, %c0_86, %c0_87, %c0_88] : memref<1x8x16x32xf32, #tpu.memory_space<vmem>>, vector<1x8x16x32xf32>
    tpu.vector_store %arg8[%c0_85, %c0_86, %c0_87, %c0_88], %66 {strides = array<i32>} : memref<1x8x16x32xf32, #tpu.memory_space<vmem>>, vector<1x8x16x32xf32>,
    %c0_89 = arith.constant 0 : index
    %c0_90 = arith.constant 0 : index
    %c0_91 = arith.constant 0 : index
    %c0_92 = arith.constant 0 : index
    %68 = tpu.strided_load %arg8[%c0_89, %c0_90, %c0_91, %c0_92] {strides = array<i32: 1, 1, 2, 1>} : memref<1x8x16x32xf32, #tpu.memory_space<vmem>>, vector<1x8x8x32xf32>
    %c0_93 = arith.constant 0 : index
    %c0_94 = arith.constant 0 : index
    %c1_95 = arith.constant 1 : index
    %c0_96 = arith.constant 0 : index
    %69 = tpu.strided_load %arg8[%c0_93, %c0_94, %c1_95, %c0_96] {strides = array<i32: 1, 1, 2, 1>} : memref<1x8x16x32xf32, #tpu.memory_space<vmem>>, vector<1x8x8x32xf32>
    %70 = arith.maximumf %68, %69 : vector<1x8x8x32xf32>
    %c0_97 = arith.constant 0 : index
    %c0_98 = arith.constant 0 : index
    %71 = vector.load %arg3[%c0_97, %c0_98] : memref<1x32xf32, #tpu.memory_space<vmem>>, vector<1x32xf32>
    %72 = vector.shape_cast %71 : vector<1x32xf32> to vector<1x1x1x32xf32>
    %73 = vector.broadcast %72 : vector<1x1x1x32xf32> to vector<1x8x8x32xf32>
    %74 = arith.addf %70, %73 : vector<1x8x8x32xf32>
    %cst_99 = arith.constant 0.000000e+00 : f32
    %75 = vector.broadcast %cst_99 : f32 to vector<1x1x10x32xf32>
    %cst_100 = arith.constant 0.000000e+00 : f32
    %76 = vector.broadcast %cst_100 : f32 to vector<1x8x1x32xf32>
    %c0_101 = arith.constant 0 : index
    %c0_102 = arith.constant 0 : index
    %c7_103 = arith.constant 7 : index
    %c0_104 = arith.constant 0 : index
    %77 = vector.load %arg9[%c0_101, %c0_102, %c7_103, %c0_104] : memref<1x10x24x32xf32, #tpu.memory_space<vmem>>, vector<1x1x10x32xf32>
    tpu.vector_store %arg9[%c0_101, %c0_102, %c7_103, %c0_104], %75 {strides = array<i32>} : memref<1x10x24x32xf32, #tpu.memory_space<vmem>>, vector<1x1x10x32xf32>,
    %c0_105 = arith.constant 0 : index
    %c9_106 = arith.constant 9 : index
    %c7_107 = arith.constant 7 : index
    %c0_108 = arith.constant 0 : index
    %78 = vector.load %arg9[%c0_105, %c9_106, %c7_107, %c0_108] : memref<1x10x24x32xf32, #tpu.memory_space<vmem>>, vector<1x1x10x32xf32>
    tpu.vector_store %arg9[%c0_105, %c9_106, %c7_107, %c0_108], %75 {strides = array<i32>} : memref<1x10x24x32xf32, #tpu.memory_space<vmem>>, vector<1x1x10x32xf32>,
    %c0_109 = arith.constant 0 : index
    %c1_110 = arith.constant 1 : index
    %c7_111 = arith.constant 7 : index
    %c0_112 = arith.constant 0 : index
    %79 = vector.load %arg9[%c0_109, %c1_110, %c7_111, %c0_112] : memref<1x10x24x32xf32, #tpu.memory_space<vmem>>, vector<1x8x1x32xf32>
    tpu.vector_store %arg9[%c0_109, %c1_110, %c7_111, %c0_112], %76 {strides = array<i32>} : memref<1x10x24x32xf32, #tpu.memory_space<vmem>>, vector<1x8x1x32xf32>,
    %c0_113 = arith.constant 0 : index
    %c1_114 = arith.constant 1 : index
    %c16 = arith.constant 16 : index
    %c0_115 = arith.constant 0 : index
    %80 = vector.load %arg9[%c0_113, %c1_114, %c16, %c0_115] : memref<1x10x24x32xf32, #tpu.memory_space<vmem>>, vector<1x8x1x32xf32>
    tpu.vector_store %arg9[%c0_113, %c1_114, %c16, %c0_115], %76 {strides = array<i32>} : memref<1x10x24x32xf32, #tpu.memory_space<vmem>>, vector<1x8x1x32xf32>,
    %c0_116 = arith.constant 0 : index
    %c1_117 = arith.constant 1 : index
    %c8_118 = arith.constant 8 : index
    %c0_119 = arith.constant 0 : index
    %81 = vector.load %arg9[%c0_116, %c1_117, %c8_118, %c0_119] : memref<1x10x24x32xf32, #tpu.memory_space<vmem>>, vector<1x8x8x32xf32>
    tpu.vector_store %arg9[%c0_116, %c1_117, %c8_118, %c0_119], %74 {strides = array<i32>} : memref<1x10x24x32xf32, #tpu.memory_space<vmem>>, vector<1x8x8x32xf32>,
    %c0_120 = arith.constant 0 : index
    %c0_121 = arith.constant 0 : index
    %c7_122 = arith.constant 7 : index
    %c0_123 = arith.constant 0 : index
    %82 = vector.load %arg9[%c0_120, %c0_121, %c7_122, %c0_123] : memref<1x10x24x32xf32, #tpu.memory_space<vmem>>, vector<1x8x8x32xf32>
    %83 = vector.shape_cast %82 : vector<1x8x8x32xf32> to vector<64x32xf32>
    %c0_124 = arith.constant 0 : index
    %c0_125 = arith.constant 0 : index
    %c0_126 = arith.constant 0 : index
    %84 = vector.load %arg4[%c0_124, %c0_125, %c0_126] : memref<9x32x64xf32, #tpu.memory_space<vmem>>, vector<1x32x64xf32>
    %85 = vector.shape_cast %84 : vector<1x32x64xf32> to vector<32x64xf32>
    %cst_127 = arith.constant dense<0.000000e+00> : vector<64x64xf32>
    %86 = tpu.matmul %83, %85, %cst_127 {dimension_numbers = #tpu.dot_dimension_numbers<[1], [0], [0], [1], [0, 0, 1, 1], [], []>} : vector<64x32xf32>, vector<32x64xf32>, vector<64x64xf32> -> vector<64x64xf32>
    %c0_128 = arith.constant 0 : index
    %c0_129 = arith.constant 0 : index
    %c8_130 = arith.constant 8 : index
    %c0_131 = arith.constant 0 : index
    %87 = vector.load %arg9[%c0_128, %c0_129, %c8_130, %c0_131] : memref<1x10x24x32xf32, #tpu.memory_space<vmem>>, vector<1x8x8x32xf32>
    %88 = vector.shape_cast %87 : vector<1x8x8x32xf32> to vector<64x32xf32>
    %c1_132 = arith.constant 1 : index
    %c0_133 = arith.constant 0 : index
    %c0_134 = arith.constant 0 : index
    %89 = vector.load %arg4[%c1_132, %c0_133, %c0_134] : memref<9x32x64xf32, #tpu.memory_space<vmem>>, vector<1x32x64xf32>
    %90 = vector.shape_cast %89 : vector<1x32x64xf32> to vector<32x64xf32>
    %cst_135 = arith.constant dense<0.000000e+00> : vector<64x64xf32>
    %91 = tpu.matmul %88, %90, %cst_135 {dimension_numbers = #tpu.dot_dimension_numbers<[1], [0], [0], [1], [0, 0, 1, 1], [], []>} : vector<64x32xf32>, vector<32x64xf32>, vector<64x64xf32> -> vector<64x64xf32>
    %92 = arith.addf %86, %91 : vector<64x64xf32>
    %c0_136 = arith.constant 0 : index
    %c0_137 = arith.constant 0 : index
    %c9_138 = arith.constant 9 : index
    %c0_139 = arith.constant 0 : index
    %93 = vector.load %arg9[%c0_136, %c0_137, %c9_138, %c0_139] : memref<1x10x24x32xf32, #tpu.memory_space<vmem>>, vector<1x8x8x32xf32>
    %94 = vector.shape_cast %93 : vector<1x8x8x32xf32> to vector<64x32xf32>
    %c2_140 = arith.constant 2 : index
    %c0_141 = arith.constant 0 : index
    %c0_142 = arith.constant 0 : index
    %95 = vector.load %arg4[%c2_140, %c0_141, %c0_142] : memref<9x32x64xf32, #tpu.memory_space<vmem>>, vector<1x32x64xf32>
    %96 = vector.shape_cast %95 : vector<1x32x64xf32> to vector<32x64xf32>
    %cst_143 = arith.constant dense<0.000000e+00> : vector<64x64xf32>
    %97 = tpu.matmul %94, %96, %cst_143 {dimension_numbers = #tpu.dot_dimension_numbers<[1], [0], [0], [1], [0, 0, 1, 1], [], []>} : vector<64x32xf32>, vector<32x64xf32>, vector<64x64xf32> -> vector<64x64xf32>
    %98 = arith.addf %92, %97 : vector<64x64xf32>
    %c0_144 = arith.constant 0 : index
    %c1_145 = arith.constant 1 : index
    %c7_146 = arith.constant 7 : index
    %c0_147 = arith.constant 0 : index
    %99 = vector.load %arg9[%c0_144, %c1_145, %c7_146, %c0_147] : memref<1x10x24x32xf32, #tpu.memory_space<vmem>>, vector<1x8x8x32xf32>
    %100 = vector.shape_cast %99 : vector<1x8x8x32xf32> to vector<64x32xf32>
    %c3_148 = arith.constant 3 : index
    %c0_149 = arith.constant 0 : index
    %c0_150 = arith.constant 0 : index
    %101 = vector.load %arg4[%c3_148, %c0_149, %c0_150] : memref<9x32x64xf32, #tpu.memory_space<vmem>>, vector<1x32x64xf32>
    %102 = vector.shape_cast %101 : vector<1x32x64xf32> to vector<32x64xf32>
    %cst_151 = arith.constant dense<0.000000e+00> : vector<64x64xf32>
    %103 = tpu.matmul %100, %102, %cst_151 {dimension_numbers = #tpu.dot_dimension_numbers<[1], [0], [0], [1], [0, 0, 1, 1], [], []>} : vector<64x32xf32>, vector<32x64xf32>, vector<64x64xf32> -> vector<64x64xf32>
    %104 = arith.addf %98, %103 : vector<64x64xf32>
    %c0_152 = arith.constant 0 : index
    %c1_153 = arith.constant 1 : index
    %c8_154 = arith.constant 8 : index
    %c0_155 = arith.constant 0 : index
    %105 = vector.load %arg9[%c0_152, %c1_153, %c8_154, %c0_155] : memref<1x10x24x32xf32, #tpu.memory_space<vmem>>, vector<1x8x8x32xf32>
    %106 = vector.shape_cast %105 : vector<1x8x8x32xf32> to vector<64x32xf32>
    %c4_156 = arith.constant 4 : index
    %c0_157 = arith.constant 0 : index
    %c0_158 = arith.constant 0 : index
    %107 = vector.load %arg4[%c4_156, %c0_157, %c0_158] : memref<9x32x64xf32, #tpu.memory_space<vmem>>, vector<1x32x64xf32>
    %108 = vector.shape_cast %107 : vector<1x32x64xf32> to vector<32x64xf32>
    %cst_159 = arith.constant dense<0.000000e+00> : vector<64x64xf32>
    %109 = tpu.matmul %106, %108, %cst_159 {dimension_numbers = #tpu.dot_dimension_numbers<[1], [0], [0], [1], [0, 0, 1, 1], [], []>} : vector<64x32xf32>, vector<32x64xf32>, vector<64x64xf32> -> vector<64x64xf32>
    %110 = arith.addf %104, %109 : vector<64x64xf32>
    %c0_160 = arith.constant 0 : index
    %c1_161 = arith.constant 1 : index
    %c9_162 = arith.constant 9 : index
    %c0_163 = arith.constant 0 : index
    %111 = vector.load %arg9[%c0_160, %c1_161, %c9_162, %c0_163] : memref<1x10x24x32xf32, #tpu.memory_space<vmem>>, vector<1x8x8x32xf32>
    %112 = vector.shape_cast %111 : vector<1x8x8x32xf32> to vector<64x32xf32>
    %c5_164 = arith.constant 5 : index
    %c0_165 = arith.constant 0 : index
    %c0_166 = arith.constant 0 : index
    %113 = vector.load %arg4[%c5_164, %c0_165, %c0_166] : memref<9x32x64xf32, #tpu.memory_space<vmem>>, vector<1x32x64xf32>
    %114 = vector.shape_cast %113 : vector<1x32x64xf32> to vector<32x64xf32>
    %cst_167 = arith.constant dense<0.000000e+00> : vector<64x64xf32>
    %115 = tpu.matmul %112, %114, %cst_167 {dimension_numbers = #tpu.dot_dimension_numbers<[1], [0], [0], [1], [0, 0, 1, 1], [], []>} : vector<64x32xf32>, vector<32x64xf32>, vector<64x64xf32> -> vector<64x64xf32>
    %116 = arith.addf %110, %115 : vector<64x64xf32>
    %c0_168 = arith.constant 0 : index
    %c2_169 = arith.constant 2 : index
    %c7_170 = arith.constant 7 : index
    %c0_171 = arith.constant 0 : index
    %117 = vector.load %arg9[%c0_168, %c2_169, %c7_170, %c0_171] : memref<1x10x24x32xf32, #tpu.memory_space<vmem>>, vector<1x8x8x32xf32>
    %118 = vector.shape_cast %117 : vector<1x8x8x32xf32> to vector<64x32xf32>
    %c6_172 = arith.constant 6 : index
    %c0_173 = arith.constant 0 : index
    %c0_174 = arith.constant 0 : index
    %119 = vector.load %arg4[%c6_172, %c0_173, %c0_174] : memref<9x32x64xf32, #tpu.memory_space<vmem>>, vector<1x32x64xf32>
    %120 = vector.shape_cast %119 : vector<1x32x64xf32> to vector<32x64xf32>
    %cst_175 = arith.constant dense<0.000000e+00> : vector<64x64xf32>
    %121 = tpu.matmul %118, %120, %cst_175 {dimension_numbers = #tpu.dot_dimension_numbers<[1], [0], [0], [1], [0, 0, 1, 1], [], []>} : vector<64x32xf32>, vector<32x64xf32>, vector<64x64xf32> -> vector<64x64xf32>
    %122 = arith.addf %116, %121 : vector<64x64xf32>
    %c0_176 = arith.constant 0 : index
    %c2_177 = arith.constant 2 : index
    %c8_178 = arith.constant 8 : index
    %c0_179 = arith.constant 0 : index
    %123 = vector.load %arg9[%c0_176, %c2_177, %c8_178, %c0_179] : memref<1x10x24x32xf32, #tpu.memory_space<vmem>>, vector<1x8x8x32xf32>
    %124 = vector.shape_cast %123 : vector<1x8x8x32xf32> to vector<64x32xf32>
    %c7_180 = arith.constant 7 : index
    %c0_181 = arith.constant 0 : index
    %c0_182 = arith.constant 0 : index
    %125 = vector.load %arg4[%c7_180, %c0_181, %c0_182] : memref<9x32x64xf32, #tpu.memory_space<vmem>>, vector<1x32x64xf32>
    %126 = vector.shape_cast %125 : vector<1x32x64xf32> to vector<32x64xf32>
    %cst_183 = arith.constant dense<0.000000e+00> : vector<64x64xf32>
    %127 = tpu.matmul %124, %126, %cst_183 {dimension_numbers = #tpu.dot_dimension_numbers<[1], [0], [0], [1], [0, 0, 1, 1], [], []>} : vector<64x32xf32>, vector<32x64xf32>, vector<64x64xf32> -> vector<64x64xf32>
    %128 = arith.addf %122, %127 : vector<64x64xf32>
    %c0_184 = arith.constant 0 : index
    %c2_185 = arith.constant 2 : index
    %c9_186 = arith.constant 9 : index
    %c0_187 = arith.constant 0 : index
    %129 = vector.load %arg9[%c0_184, %c2_185, %c9_186, %c0_187] : memref<1x10x24x32xf32, #tpu.memory_space<vmem>>, vector<1x8x8x32xf32>
    %130 = vector.shape_cast %129 : vector<1x8x8x32xf32> to vector<64x32xf32>
    %c8_188 = arith.constant 8 : index
    %c0_189 = arith.constant 0 : index
    %c0_190 = arith.constant 0 : index
    %131 = vector.load %arg4[%c8_188, %c0_189, %c0_190] : memref<9x32x64xf32, #tpu.memory_space<vmem>>, vector<1x32x64xf32>
    %132 = vector.shape_cast %131 : vector<1x32x64xf32> to vector<32x64xf32>
    %cst_191 = arith.constant dense<0.000000e+00> : vector<64x64xf32>
    %133 = tpu.matmul %130, %132, %cst_191 {dimension_numbers = #tpu.dot_dimension_numbers<[1], [0], [0], [1], [0, 0, 1, 1], [], []>} : vector<64x32xf32>, vector<32x64xf32>, vector<64x64xf32> -> vector<64x64xf32>
    %134 = arith.addf %128, %133 : vector<64x64xf32>
    %135 = vector.shape_cast %134 : vector<64x64xf32> to vector<1x4x2x8x64xf32>
    %136 = vector.extract_strided_slice %135 {offsets = [0, 0, 0, 0, 0], sizes = [1, 4, 1, 8, 64], strides = [1, 1, 1, 1, 1]} : vector<1x4x2x8x64xf32> to vector<1x4x1x8x64xf32>
    %137 = vector.shape_cast %136 : vector<1x4x1x8x64xf32> to vector<1x4x8x64xf32>
    %138 = vector.extract_strided_slice %135 {offsets = [0, 0, 1, 0, 0], sizes = [1, 4, 1, 8, 64], strides = [1, 1, 1, 1, 1]} : vector<1x4x2x8x64xf32> to vector<1x4x1x8x64xf32>
    %139 = vector.shape_cast %138 : vector<1x4x1x8x64xf32> to vector<1x4x8x64xf32>
    %140 = arith.maximumf %137, %139 : vector<1x4x8x64xf32>
    %c0_192 = arith.constant 0 : index
    %c0_193 = arith.constant 0 : index
    %141 = vector.load %arg5[%c0_192, %c0_193] : memref<1x64xf32, #tpu.memory_space<vmem>>, vector<1x64xf32>
    %142 = vector.shape_cast %141 : vector<1x64xf32> to vector<1x1x1x64xf32>
    %143 = vector.broadcast %142 : vector<1x1x1x64xf32> to vector<1x4x8x64xf32>
    %144 = arith.addf %140, %143 : vector<1x4x8x64xf32>
    %145 = vector.extract_strided_slice %144 {offsets = [0, 0, 0, 0], sizes = [1, 4, 1, 64], strides = [1, 1, 1, 1]} : vector<1x4x8x64xf32> to vector<1x4x1x64xf32>
    %146 = vector.shape_cast %145 : vector<1x4x1x64xf32> to vector<1x4x64xf32>
    %147 = vector.extract_strided_slice %144 {offsets = [0, 0, 1, 0], sizes = [1, 4, 1, 64], strides = [1, 1, 1, 1]} : vector<1x4x8x64xf32> to vector<1x4x1x64xf32>
    %148 = vector.shape_cast %147 : vector<1x4x1x64xf32> to vector<1x4x64xf32>
    %149 = arith.maximumf %146, %148 : vector<1x4x64xf32>
    %150 = vector.extract_strided_slice %144 {offsets = [0, 0, 2, 0], sizes = [1, 4, 1, 64], strides = [1, 1, 1, 1]} : vector<1x4x8x64xf32> to vector<1x4x1x64xf32>
    %151 = vector.shape_cast %150 : vector<1x4x1x64xf32> to vector<1x4x64xf32>
    %152 = vector.extract_strided_slice %144 {offsets = [0, 0, 3, 0], sizes = [1, 4, 1, 64], strides = [1, 1, 1, 1]} : vector<1x4x8x64xf32> to vector<1x4x1x64xf32>
    %153 = vector.shape_cast %152 : vector<1x4x1x64xf32> to vector<1x4x64xf32>
    %154 = arith.maximumf %151, %153 : vector<1x4x64xf32>
    %155 = vector.extract_strided_slice %144 {offsets = [0, 0, 4, 0], sizes = [1, 4, 1, 64], strides = [1, 1, 1, 1]} : vector<1x4x8x64xf32> to vector<1x4x1x64xf32>
    %156 = vector.shape_cast %155 : vector<1x4x1x64xf32> to vector<1x4x64xf32>
    %157 = vector.extract_strided_slice %144 {offsets = [0, 0, 5, 0], sizes = [1, 4, 1, 64], strides = [1, 1, 1, 1]} : vector<1x4x8x64xf32> to vector<1x4x1x64xf32>
    %158 = vector.shape_cast %157 : vector<1x4x1x64xf32> to vector<1x4x64xf32>
    %159 = arith.maximumf %156, %158 : vector<1x4x64xf32>
    %160 = vector.extract_strided_slice %144 {offsets = [0, 0, 6, 0], sizes = [1, 4, 1, 64], strides = [1, 1, 1, 1]} : vector<1x4x8x64xf32> to vector<1x4x1x64xf32>
    %161 = vector.shape_cast %160 : vector<1x4x1x64xf32> to vector<1x4x64xf32>
    %162 = vector.extract_strided_slice %144 {offsets = [0, 0, 7, 0], sizes = [1, 4, 1, 64], strides = [1, 1, 1, 1]} : vector<1x4x8x64xf32> to vector<1x4x1x64xf32>
    %163 = vector.shape_cast %162 : vector<1x4x1x64xf32> to vector<1x4x64xf32>
    %164 = arith.maximumf %161, %163 : vector<1x4x64xf32>
    %165 = tpu.concatenate %149, %154, %159, %164 in 2 : vector<1x4x64xf32>, vector<1x4x64xf32>, vector<1x4x64xf32>, vector<1x4x64xf32> -> vector<1x4x256xf32>
    %c0_194 = arith.constant 0 : index
    %c0_195 = arith.constant 0 : index
    %c0_196 = arith.constant 0 : index
    %166 = vector.load %arg6[%c0_194, %c0_195, %c0_196] : memref<1x4x256xf32, #tpu.memory_space<vmem>>, vector<1x4x256xf32>
    tpu.vector_store %arg6[%c0_194, %c0_195, %c0_196], %165 {strides = array<i32>} : memref<1x4x256xf32, #tpu.memory_space<vmem>>, vector<1x4x256xf32>,
    return
  }
  func.func @transform_0(%arg0: i32) -> (i32, i32, i32, i32) {
    %c0_i32 = arith.constant 0 : i32
    %c0_i32_0 = arith.constant 0 : i32
    %c0_i32_1 = arith.constant 0 : i32
    %c0_i32_2 = arith.constant 0 : i32
    return %arg0, %c0_i32, %c0_i32_0, %c0_i32_1 : i32, i32, i32, i32
  }
  func.func @transform_1(%arg0: i32) -> (i32, i32, i32) {
    %c0_i32 = arith.constant 0 : i32
    %c0_i32_0 = arith.constant 0 : i32
    %c0_i32_1 = arith.constant 0 : i32
    %c0_i32_2 = arith.constant 0 : i32
    return %c0_i32, %c0_i32_0, %c0_i32_1 : i32, i32, i32
  }
  func.func @transform_2(%arg0: i32) -> (i32, i32) {
    %c0_i32 = arith.constant 0 : i32
    %c0_i32_0 = arith.constant 0 : i32
    %c0_i32_1 = arith.constant 0 : i32
    return %c0_i32, %c0_i32_0 : i32, i32
  }
  func.func @transform_3(%arg0: i32) -> (i32, i32, i32) {
    %c0_i32 = arith.constant 0 : i32
    %c0_i32_0 = arith.constant 0 : i32
    %c0_i32_1 = arith.constant 0 : i32
    %c0_i32_2 = arith.constant 0 : i32
    return %c0_i32, %c0_i32_0, %c0_i32_1 : i32, i32, i32
  }
  func.func @transform_4(%arg0: i32) -> (i32, i32) {
    %c0_i32 = arith.constant 0 : i32
    %c0_i32_0 = arith.constant 0 : i32
    %c0_i32_1 = arith.constant 0 : i32
    return %c0_i32, %c0_i32_0 : i32, i32
  }
  func.func @transform_5(%arg0: i32) -> (i32, i32, i32) {
    %c0_i32 = arith.constant 0 : i32
    %c0_i32_0 = arith.constant 0 : i32
    %c0_i32_1 = arith.constant 0 : i32
    return %arg0, %c0_i32, %c0_i32_0 : i32, i32, i32
  }
}

</mosaic_0001>

<bundles_post_ra>
// kernel: tpu_custom_call.1
= control target key start
LH: loop header
LB: loop body
LE: loop exit
PB: predicated region body
PF: predicated region fallthrough
CT: control target
= control target key end

     0   :  { %10 = vsyncpa [#allocation6], 0  ;;  %s6194_s0 = inlined_call_operand.vmem [shape: f32[2,16,16,4], index: 0, kind: input, shape index: {}]   ;;  %s6195_s1 = inlined_call_operand.vmem [shape: f32[9,4,32], index: 1, kind: input, shape index: {}]   ;;  %s6196_s2 = inlined_call_operand.vmem [shape: f32[1,32], index: 2, kind: input, shape index: {}]   ;;  %s6197_s3 = inlined_call_operand.vmem [shape: f32[9,32,64], index: 3, kind: input, shape index: {}]   ;;  %s6198_s4 = inlined_call_operand.vmem [shape: f32[1,64], index: 4, kind: input, shape index: {}]   ;;  %s6199_s5 = inlined_call_operand.hbm [shape: f32[2,4,256], index: 5, kind: output, shape index: {}]  }
   0x1   :  { %12 = vsyncpa [#allocation6 + $0x1], 0  ;;  %s4362_s18 = smov 0   ;;  %s4364_s19 = smov 0  }
   0x2   :  { %s4366_s20 = smov 0   ;;  %s4368_s21 = smov 0  }
   0x3 LB: > { %s4383_s22 = sadd.s32 4294967295, %s4328_s21   ;;  %s3797_s23 = sadd.s32 4294967294, %s4328_s21   ;;  %s4328_s21 = sphi %s4368_s21, %s6454_s21   ;;  %s4324_s20 = sphi %s4366_s20, %s6453_s20   ;;  %s4320_s19 = sphi %s4364_s19, %s6452_s19   ;;  %s4316_s18 = sphi %s4362_s18, %s6451_s18  }
   0x4   : > { %s4387_s24 = sadd.s32 1, %s4328_s21   ;;  %s135_s25 = sadd.s32 1, %s4324_s20 }
   0x5   : > { %s132_s26 = ssub.s32 %s4328_s21, %s4387_s24  ;;  %p145_p0 = scmp.ne.s32.totalorder %s4324_s20, %s4320_s19 }
   0x6   : > { %p133_p1 = scmp.eq.s32.totalorder %s132_s26, 0  ;;  %p146_p2 = scmp.eq.s32.totalorder %s4383_s22, 1 }
   0x7   : > { %p151_p3 = scmp.ne.s32.totalorder %s4320_s19, %s4316_s18  ;;  %p152_p4 = scmp.eq.s32.totalorder %s3797_s23, 1 }
   0x8   : > { %s4398_s27 = scalar_select %p133_p1, %s4324_s20, %s135_s25  }
   0x9   : > { %p4400_p5 = por %p146_p2, %p145_p0  ;;  %p4404_p6 = por %p152_p4, %p151_p3 }
   0xa   : > { %p3800_p7 = scmp.ge.s32.totalorder %s4328_s21, 1  ;;  %p190_p8 = scmp.lt.s32.totalorder %s4328_s21, 3 }
   0xc   : > { %p191_p9 = pnand %p3800_p7, %p190_p8 }
   0xe   : > { %194 = sbr.rel (%p191_p9) target bundleno = 1276 (0x4fc), region = 40 }
  0x13   : > { %v3804_v0 = vld [vmem:[%s6195_s1 + $0x4] sm:$0xf]  ;;  %vm493_vm0 = vcmask 1043456   ;;  %vm223_vm1 = vcmask 31744   ;;  %p218_p10 = scmp.lt.s32.totalorder %s4383_s22, 1  ;;  %v6200_v1 = vmov 0.0  }
  0x14   : > { %3805 = vmatpush.msk.msra.mxu0 %vm493_vm0, %v3804_v0  ;;  %224 = vst.msk [vmem:[#allocation2 + $0x7] sm:$0xff] %vm223_vm1, %v6200_v1  ;;  %v3939_v2 = vld [vmem:[%s6195_s1 + $0x10] sm:$0xf]  ;;  %4220 = vmatpush.msk.msra.mxu1 %vm493_vm0, %v3804_v0  ;;  %vm226_vm2 = vcmask 25600   ;;  %v362_v3 = vld [vmem:[%s6195_s1] sm:$0xf] }
  0x15   : > { %225 = vst.msk [vmem:[#allocation2 + $0xf] sm:$0xff] %vm223_vm1, %v6200_v1  ;;  %4221 = vmatpush.msk.msra.mxu2 %vm493_vm0, %v3804_v0  ;;  %s219_s11 = scalar_select %p218_p10, %s4383_s22, 1  ;;  %v3871_v4 = vld [vmem:[%s6195_s1 + $0x8] sm:$0xf]  ;;  %v3905_v5 = vld [vmem:[%s6195_s1 + $0xc] sm:$0xf]  ;;  %4222 = vmatpush.msk.msra.mxu3 %vm493_vm0, %v3804_v0 }
  0x16   : > { %3940 = vmatpush.msk.msrb.mxu0 %vm493_vm0, %v3939_v2  ;;  %229 = vst.msk [vmem:[#allocation2 + $0x227] sm:$0xff] %vm223_vm1, %v6200_v1  ;;  %3838 = vmatpush.msk.msrb.mxu1 %vm493_vm0, %v362_v3  ;;  %vm233_vm3 = vcmask 24576   ;;  %vm2785_vm4 = vcmask 261120   ;;  %vm2854_vm5 = vcmask 254976   ;;  %vm2860_vm6 = vcmask 253952   ;;  %s4331_s8 = smov 64  }
  0x17   : > { %230 = vst.msk [vmem:[#allocation2 + $0x22f] sm:$0xff] %vm223_vm1, %v6200_v1  ;;  %s4218_s16 = sshll.u32 %s219_s11, 8  ;;  %3872 = vmatpush.msk.msrb.mxu2 %vm493_vm0, %v3871_v4  ;;  %3906 = vmatpush.msk.msrb.mxu3 %vm493_vm0, %v3905_v5  ;;  %vm3676_vm7 = vcmask 1041409   ;;  %vm3679_vm8 = vcmask 1042434   ;;  %vm3682_vm9 = vcmask 1043459   ;;  %s215_s9 = sand.u32 1, %s4320_s19  }
  0x18   : > { %s4446_s25 = scalar_lea.vmem %s6194_s0, %s4218_s16  ;;  %227 = vst.msk [vmem:[#allocation2 + $0x17] sm:$0x3] %vm226_vm2, %v6200_v1  ;;  %s3801_s10 = sshll.u32 %s215_s9, 3  ;;  %vm3712_vm10 = vcmask 523264  }
  0x19   : > { %v290_v6 = vld [vmem:[%s4446_s25 + $0xc0] sm:$0xff]  ;;  %v292_v7 = vld [vmem:[%s4446_s25 + $0xd0] sm:$0xff]  ;;  %231 = vst.msk [vmem:[#allocation2 + $0x237] sm:$0x3] %vm226_vm2, %v6200_v1  ;;  %v291_v9 = vld [vmem:[%s4446_s25 + $0xc8] sm:$0xff]  ;;  %s4219_s11 = sshll.u32 %s4383_s22, 3 }
  0x1a   : > { %v294_v8 = vld [vmem:[%s4446_s25 + $0xe0] sm:$0xff]  ;;  %322 = vst.msk [vmem:[#allocation2 + $0x1a8] sm:$0xff] %vm223_vm1, %v290_v6  ;;  %v293_v10 = vld [vmem:[%s4446_s25 + $0xd8] sm:$0xff]  ;;  %v295_v13 = vld [vmem:[%s4446_s25 + $0xe8] sm:$0xff]  ;;  %s3733_s14 = scalar_lea.hbm %s6199_s5, %s4219_s11  ;;  %s217_s15 = scalar_lea.vmem [#allocation5], %s3801_s10 }
  0x1b   : > { %324 = vst.msk [vmem:[#allocation2 + $0x1c8] sm:$0xff] %vm223_vm1, %v292_v7  ;;  %v266_v12 = vld [vmem:[%s4446_s25] sm:$0xff]  ;;  %v267_v14 = vld [vmem:[%s4446_s25 + $0x8] sm:$0xff]  ;;  %v268_v30 = vld [vmem:[%s4446_s25 + $0x10] sm:$0xff]  ;;  %s3735_s16 = sshll.u32 %s217_s15, 4  ;;  %s3737_s17 = sshll.u32 %s3733_s14, 4  ;;  %s3736_s16 = int_to_ptr.vmem [resolvable:$true] %s3735_s16  ;;  %s3738_s17 = int_to_ptr.hbm [resolvable:$true] %s3737_s17 }
  0x1c   : > { %v363_v11 = vld [vmem:[#allocation2 + $0x8] sm:$0xff]  ;;  %326 = vst.msk [vmem:[#allocation2 + $0x1e8] sm:$0xff] %vm223_vm1, %v294_v8  ;;  %v269_v32 = vld [vmem:[%s4446_s25 + $0x18] sm:$0xff]  ;;  %v270_v33 = vld [vmem:[%s4446_s25 + $0x20] sm:$0xff]  ;;  %s3722_s23 = scalar_lea.sflag [#allocation6], %s215_s9  ;;  %s4280_s22 = sshra.s32 %s3738_s17, 4  ;;  %s4281_s22 = int_to_ptr.hbm [resolvable:$true] %s4280_s22 }
  0x1d   : > { %3806 = vmatmul.msk.f32.vlgmr.msra.gmra.mxu0 %vm223_vm1, %v363_v11  ;;  %323 = vst.msk [vmem:[#allocation2 + $0x1b0] sm:$0xff] %vm223_vm1, %v291_v9  ;;  %v330_v23 = vld [vmem:[#allocation2 + $0x7] sm:$0xff]  ;;  %v331_v27 = vld [vmem:[#allocation2 + $0xf] sm:$0xff]  ;;  %v273_v39 = vld [vmem:[%s4446_s25 + $0x38] sm:$0xff]  ;;  %s4286_s6 = scalar_lea.hbm %s6199_s5, 16  ;;  %p4287_p0 = scmp.lt.s32.totalorder %s4281_s22, %s6199_s5 }
  0x1e   : > { %325 = vst.msk [vmem:[#allocation2 + $0x1d0] sm:$0xff] %vm223_vm1, %v293_v10  ;;  %v822_v24 = vld [vmem:[#allocation2 + $0x9] sm:$0xff]  ;;  %v274_v43 = vld [vmem:[%s4446_s25 + $0x40] sm:$0xff]  ;;  %v277_v55 = vld [vmem:[%s4446_s25 + $0x58] sm:$0xff] }
  0x1f   : > { %298 = vst.msk [vmem:[#allocation2 + $0x28] sm:$0xff] %vm223_vm1, %v266_v12  ;;  %v364_v17 = vld [vmem:[#allocation2 + $0x10] sm:$0xff]  ;;  %v271_v34 = vld [vmem:[%s4446_s25 + $0x28] sm:$0xff]  ;;  %v278_v59 = vld [vmem:[%s4446_s25 + $0x60] sm:$0xff] }
  0x20   : > { %327 = vst.msk [vmem:[#allocation2 + $0x1f0] sm:$0xff] %vm223_vm1, %v295_v13  ;;  %v823_v28 = vld [vmem:[#allocation2 + $0x11] sm:$0xff]  ;;  %v275_v47 = vld [vmem:[%s4446_s25 + $0x48] sm:$0xff]  ;;  %v282_v12 = vld [vmem:[%s4446_s25 + $0x80] sm:$0xff] }
  0x21   : > { %v389_v15 = vld [vmem:[#allocation2 + $0x1a8] sm:$0xff]  ;;  %299 = vst.msk [vmem:[#allocation2 + $0x30] sm:$0xff] %vm223_vm1, %v267_v14  ;;  %v272_v35 = vld [vmem:[%s4446_s25 + $0x30] sm:$0xff]  ;;  %v281_v8 = vld [vmem:[%s4446_s25 + $0x78] sm:$0xff] }
  0x22   : > { %3832 = vmatmul.msk.f32.vlgmr.msra.gmra.mxu1 %vm223_vm1, %v389_v15  ;;  %v391_v16 = vld [vmem:[#allocation2 + $0x1c8] sm:$0xff]  ;;  %234 = vst.msk [vmem:[#allocation2 + $0x27] sm:$0x1] %vm233_vm3, %v6200_v1  ;;  %v276_v51 = vld [vmem:[%s4446_s25 + $0x50] sm:$0xff] }
  0x23   : > { %3834 = vmatmul.msk.f32.vlgmr.msra.gmra.mxu2 %vm223_vm1, %v391_v16  ;;  %v393_v18 = vld [vmem:[#allocation2 + $0x1e8] sm:$0xff]  ;;  %235 = vst.msk [vmem:[#allocation2 + $0x47] sm:$0x1] %vm233_vm3, %v6200_v1  ;;  %v280_v4 = vld [vmem:[%s4446_s25 + $0x70] sm:$0xff] }
  0x24   : > { %3836 = vmatmul.msk.f32.vlgmr.msra.gmra.mxu3 %vm223_vm1, %v393_v18  ;;  %236 = vst.msk [vmem:[#allocation2 + $0x67] sm:$0x1] %vm233_vm3, %v6200_v1  ;;  %v390_v19 = vld [vmem:[#allocation2 + $0x1b0] sm:$0xff]  ;;  %v279_v63 = vld [vmem:[%s4446_s25 + $0x68] sm:$0xff] }
  0x25   : > { %3807 = vmatmul.msk.f32.gmra.mxu0 %vm223_vm1, %v364_v17  ;;  %237 = vst.msk [vmem:[#allocation2 + $0x87] sm:$0x1] %vm233_vm3, %v6200_v1  ;;  %v392_v20 = vld [vmem:[#allocation2 + $0x1d0] sm:$0xff]  ;;  %v283_v16 = vld [vmem:[%s4446_s25 + $0x88] sm:$0xff] }
  0x26   : > { %238 = vst.msk [vmem:[#allocation2 + $0xa7] sm:$0x1] %vm233_vm3, %v6200_v1  ;;  %v4490_v22 = vld [vmem:[#allocation2 + $0x28] sm:$0xff] }
  0x27   : > { %239 = vst.msk [vmem:[#allocation2 + $0xc7] sm:$0x1] %vm233_vm3, %v6200_v1  ;;  %v394_v21 = vld [vmem:[#allocation2 + $0x1f0] sm:$0xff] }
  0x28   : > { %240 = vst.msk [vmem:[#allocation2 + $0xe7] sm:$0x1] %vm233_vm3, %v6200_v1  ;;  %v4513_v26 = vld [vmem:[#allocation2 + $0x30] sm:$0xff] }
  0x29   : > { %241 = vst.msk [vmem:[#allocation2 + $0x107] sm:$0x1] %vm233_vm3, %v6200_v1  ;;  %v1100_v25 = vld [vmem:[#allocation2 + $0x27] sm:$0xff]  ;;  %v1101_v29 = vld [vmem:[#allocation2 + $0x2f] sm:$0xff] }
  0x2a   : > { %3833 = vmatmul.msk.f32.gmra.mxu1 %vm223_vm1, %v390_v19  ;;  %242 = vst.msk [vmem:[#allocation2 + $0x127] sm:$0x1] %vm233_vm3, %v6200_v1  ;;  %v4553_v31 = vld [vmem:[#allocation2 + $0x29] sm:$0xff] }
  0x2b   : > { %3835 = vmatmul.msk.f32.gmra.mxu2 %vm223_vm1, %v392_v20  ;;  %243 = vst.msk [vmem:[#allocation2 + $0x147] sm:$0x1] %vm233_vm3, %v6200_v1 }
  0x2c   : > { %3837 = vmatmul.msk.f32.gmra.mxu3 %vm223_vm1, %v394_v21  ;;  %244 = vst.msk [vmem:[#allocation2 + $0x167] sm:$0x1] %vm233_vm3, %v6200_v1 }
  0x2d   : > { %3808 = vmatmul.msk.f32.gmra.mxu0 %vm223_vm1, %v4490_v22  ;;  %245 = vst.msk [vmem:[#allocation2 + $0x187] sm:$0x1] %vm233_vm3, %v6200_v1 }
  0x2e   : > { %246 = vst.msk [vmem:[#allocation2 + $0x1a7] sm:$0x1] %vm233_vm3, %v6200_v1 }
  0x2f   : > { %247 = vst.msk [vmem:[#allocation2 + $0x1c7] sm:$0x1] %vm233_vm3, %v6200_v1 }
  0x30   : > { %248 = vst.msk [vmem:[#allocation2 + $0x1e7] sm:$0x1] %vm233_vm3, %v6200_v1 }
  0x31   : > { %249 = vst.msk [vmem:[#allocation2 + $0x207] sm:$0x1] %vm233_vm3, %v6200_v1 }
  0x32   : > { %3839 = vmatmul.msk.f32.vlgmr.msrb.gmra.mxu1 %vm223_vm1, %v330_v23  ;;  %250 = vst.msk [vmem:[#allocation2 + $0x38] sm:$0x1] %vm233_vm3, %v6200_v1  ;;  %v284_v23 = vld [vmem:[%s4446_s25 + $0x90] sm:$0xff] }
  0x33   : > { %3873 = vmatmul.msk.f32.vlgmr.msrb.gmra.mxu2 %vm223_vm1, %v822_v24  ;;  %251 = vst.msk [vmem:[#allocation2 + $0x58] sm:$0x1] %vm233_vm3, %v6200_v1 }
  0x34   : > { %3907 = vmatmul.msk.f32.vlgmr.msrb.gmra.mxu3 %vm223_vm1, %v1100_v25  ;;  %252 = vst.msk [vmem:[#allocation2 + $0x78] sm:$0x1] %vm233_vm3, %v6200_v1 }
  0x35   : > { %3809 = vmatmul.msk.f32.gmra.mxu0 %vm223_vm1, %v4513_v26  ;;  %253 = vst.msk [vmem:[#allocation2 + $0x98] sm:$0x1] %vm233_vm3, %v6200_v1 }
  0x36   : > { %254 = vst.msk [vmem:[#allocation2 + $0xb8] sm:$0x1] %vm233_vm3, %v6200_v1 }
  0x37   : > { %255 = vst.msk [vmem:[#allocation2 + $0xd8] sm:$0x1] %vm233_vm3, %v6200_v1 }
  0x38   : > { %256 = vst.msk [vmem:[#allocation2 + $0xf8] sm:$0x1] %vm233_vm3, %v6200_v1 }
  0x39   : > { %257 = vst.msk [vmem:[#allocation2 + $0x118] sm:$0x1] %vm233_vm3, %v6200_v1  ;;  %v4569_v36 = vld [vmem:[#allocation2 + $0x31] sm:$0xff] }
  0x3a   : > { %258 = vst.msk [vmem:[#allocation2 + $0x138] sm:$0x1] %vm233_vm3, %v6200_v1  ;;  %3840 = vmatmul.msk.f32.gmra.mxu1 %vm223_vm1, %v331_v27 }
  0x3b   : > { %259 = vst.msk [vmem:[#allocation2 + $0x158] sm:$0x1] %vm233_vm3, %v6200_v1  ;;  %3874 = vmatmul.msk.f32.gmra.mxu2 %vm223_vm1, %v823_v28 }
  0x3c   : > { %260 = vst.msk [vmem:[#allocation2 + $0x178] sm:$0x1] %vm233_vm3, %v6200_v1  ;;  %3908 = vmatmul.msk.f32.gmra.mxu3 %vm223_vm1, %v1101_v29 }
  0x3d   : > { %261 = vst.msk [vmem:[#allocation2 + $0x198] sm:$0x1] %vm233_vm3, %v6200_v1 }
  0x3e   : > { %262 = vst.msk [vmem:[#allocation2 + $0x1b8] sm:$0x1] %vm233_vm3, %v6200_v1 }
  0x3f   : > { %263 = vst.msk [vmem:[#allocation2 + $0x1d8] sm:$0x1] %vm233_vm3, %v6200_v1 }
  0x40   : > { %264 = vst.msk [vmem:[#allocation2 + $0x1f8] sm:$0x1] %vm233_vm3, %v6200_v1 }
  0x41   : > { %265 = vst.msk [vmem:[#allocation2 + $0x218] sm:$0x1] %vm233_vm3, %v6200_v1 }
  0x42   : > { %300 = vst.msk [vmem:[#allocation2 + $0x48] sm:$0xff] %vm223_vm1, %v268_v30  ;;  %3841 = vmatmul.msk.f32.gmra.mxu1 %vm223_vm1, %v1100_v25 }
  0x43   : > { %3875 = vmatmul.msk.f32.gmra.mxu2 %vm223_vm1, %v4553_v31  ;;  %301 = vst.msk [vmem:[#allocation2 + $0x50] sm:$0xff] %vm223_vm1, %v269_v32 }
  0x44   : > { %302 = vst.msk [vmem:[#allocation2 + $0x68] sm:$0xff] %vm223_vm1, %v270_v33  ;;  %v285_v33 = vld [vmem:[%s4446_s25 + $0x98] sm:$0xff] }
  0x45   : > { %303 = vst.msk [vmem:[#allocation2 + $0x70] sm:$0xff] %vm223_vm1, %v271_v34 }
  0x46   : > { %304 = vst.msk [vmem:[#allocation2 + $0x88] sm:$0xff] %vm223_vm1, %v272_v35 }
  0x47   : > { %305 = vst.msk [vmem:[#allocation2 + $0x90] sm:$0xff] %vm223_vm1, %v273_v39 }
  0x48   : > { %306 = vst.msk [vmem:[#allocation2 + $0xa8] sm:$0xff] %vm223_vm1, %v274_v43 }
  0x49   : > { %v4571_v37 = vld [vmem:[#allocation2 + $0x48] sm:$0xff]  ;;  %307 = vst.msk [vmem:[#allocation2 + $0xb0] sm:$0xff] %vm223_vm1, %v275_v47 }
  0x4a   : > { %v4573_v38 = vld [vmem:[#allocation2 + $0x47] sm:$0xff]  ;;  %3810 = vmatmul.msk.f32.gmra.mxu0 %vm223_vm1, %v4571_v37  ;;  %3842 = vmatmul.msk.f32.gmra.mxu1 %vm223_vm1, %v1101_v29  ;;  %v4584_v40 = vld [vmem:[#allocation2 + $0x50] sm:$0xff]  ;;  %308 = vst.msk [vmem:[#allocation2 + $0xc8] sm:$0xff] %vm223_vm1, %v276_v51 }
  0x4b   : > { %3909 = vmatmul.msk.f32.gmra.mxu3 %vm223_vm1, %v4573_v38  ;;  %3876 = vmatmul.msk.f32.gmra.mxu2 %vm223_vm1, %v4569_v36  ;;  %v4586_v41 = vld [vmem:[#allocation2 + $0x4f] sm:$0xff]  ;;  %v4602_v45 = vld [vmem:[#allocation2 + $0x67] sm:$0xff]  ;;  %309 = vst.msk [vmem:[#allocation2 + $0xd0] sm:$0xff] %vm223_vm1, %v277_v55 }
  0x4c   : > { %v4588_v42 = vld [vmem:[#allocation2 + $0x49] sm:$0xff]  ;;  %v4604_v46 = vld [vmem:[#allocation2 + $0x51] sm:$0xff]  ;;  %310 = vst.msk [vmem:[#allocation2 + $0xe8] sm:$0xff] %vm223_vm1, %v278_v59  ;;  %v286_v55 = vld [vmem:[%s4446_s25 + $0xa0] sm:$0xff] }
  0x4d   : > { %v4600_v44 = vld [vmem:[#allocation2 + $0x68] sm:$0xff]  ;;  %v4616_v48 = vld [vmem:[#allocation2 + $0x70] sm:$0xff]  ;;  %311 = vst.msk [vmem:[#allocation2 + $0xf0] sm:$0xff] %vm223_vm1, %v279_v63 }
  0x4e   : > { %v4618_v49 = vld [vmem:[#allocation2 + $0x6f] sm:$0xff]  ;;  %v4634_v53 = vld [vmem:[#allocation2 + $0x87] sm:$0xff]  ;;  %312 = vst.msk [vmem:[#allocation2 + $0x108] sm:$0xff] %vm223_vm1, %v280_v4 }
  0x4f   : > { %v4620_v50 = vld [vmem:[#allocation2 + $0x69] sm:$0xff]  ;;  %v4636_v54 = vld [vmem:[#allocation2 + $0x71] sm:$0xff]  ;;  %313 = vst.msk [vmem:[#allocation2 + $0x110] sm:$0xff] %vm223_vm1, %v281_v8 }
  0x50   : > { %v4632_v52 = vld [vmem:[#allocation2 + $0x88] sm:$0xff]  ;;  %v4648_v56 = vld [vmem:[#allocation2 + $0x90] sm:$0xff]  ;;  %314 = vst.msk [vmem:[#allocation2 + $0x128] sm:$0xff] %vm223_vm1, %v282_v12 }
  0x51   : > { %v4650_v57 = vld [vmem:[#allocation2 + $0x8f] sm:$0xff]  ;;  %v4666_v61 = vld [vmem:[#allocation2 + $0xa7] sm:$0xff]  ;;  %315 = vst.msk [vmem:[#allocation2 + $0x130] sm:$0xff] %vm223_vm1, %v283_v16 }
  0x52   : > { %3811 = vmatmul.msk.f32.gmra.mxu0 %vm223_vm1, %v4584_v40  ;;  %3843 = vmatmul.msk.f32.gmra.mxu1 %vm223_vm1, %v4573_v38  ;;  %v4652_v58 = vld [vmem:[#allocation2 + $0x89] sm:$0xff]  ;;  %v4668_v62 = vld [vmem:[#allocation2 + $0x91] sm:$0xff]  ;;  %316 = vst.msk [vmem:[#allocation2 + $0x148] sm:$0xff] %vm223_vm1, %v284_v23 }
  0x53   : > { %3910 = vmatmul.msk.f32.gmra.mxu3 %vm223_vm1, %v4586_v41  ;;  %3877 = vmatmul.msk.f32.gmra.mxu2 %vm223_vm1, %v4588_v42  ;;  %v4664_v60 = vld [vmem:[#allocation2 + $0xa8] sm:$0xff]  ;;  %v4680_v0 = vld [vmem:[#allocation2 + $0xb0] sm:$0xff]  ;;  %317 = vst.msk [vmem:[#allocation2 + $0x150] sm:$0xff] %vm223_vm1, %v285_v33 }
  0x54   : > { %v4682_v2 = vld [vmem:[#allocation2 + $0xaf] sm:$0xff]  ;;  %v4698_v6 = vld [vmem:[#allocation2 + $0xc7] sm:$0xff]  ;;  %318 = vst.msk [vmem:[#allocation2 + $0x168] sm:$0xff] %vm223_vm1, %v286_v55 }
  0x55   : > { %v4684_v3 = vld [vmem:[#allocation2 + $0xa9] sm:$0xff]  ;;  %v4700_v7 = vld [vmem:[#allocation2 + $0xb1] sm:$0xff] }
  0x56   : > { %v4696_v5 = vld [vmem:[#allocation2 + $0xc8] sm:$0xff]  ;;  %v4712_v9 = vld [vmem:[#allocation2 + $0xd0] sm:$0xff] }
  0x57   : > { %v4714_v10 = vld [vmem:[#allocation2 + $0xcf] sm:$0xff]  ;;  %v4730_v14 = vld [vmem:[#allocation2 + $0xe7] sm:$0xff] }
  0x58   : > { %v4716_v11 = vld [vmem:[#allocation2 + $0xc9] sm:$0xff]  ;;  %v4732_v15 = vld [vmem:[#allocation2 + $0xd1] sm:$0xff] }
  0x59   : > { %v4728_v13 = vld [vmem:[#allocation2 + $0xe8] sm:$0xff]  ;;  %v4744_v17 = vld [vmem:[#allocation2 + $0xf0] sm:$0xff] }
  0x5a   : > { %3812 = vmatmul.msk.f32.gmra.mxu0 %vm223_vm1, %v4600_v44  ;;  %3844 = vmatmul.msk.f32.gmra.mxu1 %vm223_vm1, %v4586_v41  ;;  %v4748_v19 = vld [vmem:[#allocation2 + $0xef] sm:$0xff]  ;;  %v4768_v27 = vld [vmem:[#allocation2 + $0x107] sm:$0xff] }
  0x5b   : > { %3911 = vmatmul.msk.f32.gmra.mxu3 %vm223_vm1, %v4602_v45  ;;  %3878 = vmatmul.msk.f32.gmra.mxu2 %vm223_vm1, %v4604_v46  ;;  %v4752_v21 = vld [vmem:[#allocation2 + $0xe9] sm:$0xff]  ;;  %6243 = vst [vmem:[#allocation11_spill] sm:$0xff] %v4768_v27  ;;  %v4774_v30 = vld [vmem:[#allocation2 + $0xf1] sm:$0xff] }
  0x5c   : > { %6241 = vst [vmem:[#allocation9_spill] sm:$0xff] %v4752_v21  ;;  %v4766_v25 = vld [vmem:[#allocation2 + $0x108] sm:$0xff]  ;;  %v4790_v35 = vld [vmem:[#allocation2 + $0x110] sm:$0xff] }
  0x5d   : > { %6245 = vst [vmem:[#allocation13_spill] sm:$0xff] %v4774_v30  ;;  %v4792_v39 = vld [vmem:[#allocation2 + $0x10f] sm:$0xff]  ;;  %v4814_v8 = vld [vmem:[#allocation2 + $0x127] sm:$0xff] }
  0x5e   : > { %6248 = vst [vmem:[#allocation16_spill] sm:$0xff] %v4792_v39  ;;  %v4798_v51 = vld [vmem:[#allocation2 + $0x109] sm:$0xff]  ;;  %v4818_v16 = vld [vmem:[#allocation2 + $0x111] sm:$0xff] }
  0x5f   : > { %6251 = vst [vmem:[#allocation19_spill] sm:$0xff] %v4798_v51  ;;  %v4812_v4 = vld [vmem:[#allocation2 + $0x128] sm:$0xff] }
  0x60   : > { %6253 = vst [vmem:[#allocation21_spill] sm:$0xff] %v4814_v8  ;;  %v287_v33 = vld [vmem:[%s4446_s25 + $0xa8] sm:$0xff] }
  0x61   : > { %6255 = vst [vmem:[#allocation23_spill] sm:$0xff] %v4818_v16 }
  0x62   : > { %3813 = vmatmul.msk.f32.gmra.mxu0 %vm223_vm1, %v4616_v48  ;;  %3845 = vmatmul.msk.f32.gmra.mxu1 %vm223_vm1, %v4602_v45  ;;  %319 = vst.msk [vmem:[#allocation2 + $0x170] sm:$0xff] %vm223_vm1, %v287_v33 }
  0x63   : > { %3912 = vmatmul.msk.f32.gmra.mxu3 %vm223_vm1, %v4618_v49  ;;  %3879 = vmatmul.msk.f32.gmra.mxu2 %vm223_vm1, %v4620_v50 }
  0x6a   : > { %3814 = vmatmul.msk.f32.gmra.mxu0 %vm223_vm1, %v4632_v52  ;;  %3846 = vmatmul.msk.f32.gmra.mxu1 %vm223_vm1, %v4618_v49 }
  0x6b   : > { %3913 = vmatmul.msk.f32.gmra.mxu3 %vm223_vm1, %v4634_v53  ;;  %3880 = vmatmul.msk.f32.gmra.mxu2 %vm223_vm1, %v4636_v54 }
  0x72   : > { %3815 = vmatmul.msk.f32.gmra.mxu0 %vm223_vm1, %v4648_v56  ;;  %3847 = vmatmul.msk.f32.gmra.mxu1 %vm223_vm1, %v4634_v53 }
  0x73   : > { %3914 = vmatmul.msk.f32.gmra.mxu3 %vm223_vm1, %v4650_v57  ;;  %3881 = vmatmul.msk.f32.gmra.mxu2 %vm223_vm1, %v4652_v58 }
  0x7a   : > { %3816 = vmatmul.msk.f32.gmra.mxu0 %vm223_vm1, %v4664_v60  ;;  %3848 = vmatmul.msk.f32.gmra.mxu1 %vm223_vm1, %v4650_v57 }
  0x7b   : > { %3915 = vmatmul.msk.f32.gmra.mxu3 %vm223_vm1, %v4666_v61  ;;  %3882 = vmatmul.msk.f32.gmra.mxu2 %vm223_vm1, %v4668_v62 }
  0x82   : > { %3817 = vmatmul.msk.f32.gmra.mxu0 %vm223_vm1, %v4680_v0  ;;  %3849 = vmatmul.msk.f32.gmra.mxu1 %vm223_vm1, %v4666_v61 }
  0x83   : > { %3916 = vmatmul.msk.f32.gmra.mxu3 %vm223_vm1, %v4682_v2  ;;  %3883 = vmatmul.msk.f32.gmra.mxu2 %vm223_vm1, %v4684_v3 }
  0x8a   : > { %3818 = vmatmul.msk.f32.gmra.mxu0 %vm223_vm1, %v4696_v5  ;;  %3850 = vmatmul.msk.f32.gmra.mxu1 %vm223_vm1, %v4682_v2 }
  0x8b   : > { %3917 = vmatmul.msk.f32.gmra.mxu3 %vm223_vm1, %v4698_v6  ;;  %3884 = vmatmul.msk.f32.gmra.mxu2 %vm223_vm1, %v4700_v7 }
  0x92   : > { %3819 = vmatmul.msk.f32.gmra.mxu0 %vm223_vm1, %v4712_v9  ;;  %3851 = vmatmul.msk.f32.gmra.mxu1 %vm223_vm1, %v4698_v6 }
  0x93   : > { %3918 = vmatmul.msk.f32.gmra.mxu3 %vm223_vm1, %v4714_v10  ;;  %3885 = vmatmul.msk.f32.gmra.mxu2 %vm223_vm1, %v4716_v11 }
  0x9a   : > { %3820 = vmatmul.msk.f32.gmra.mxu0 %vm223_vm1, %v4728_v13  ;;  %3852 = vmatmul.msk.f32.gmra.mxu1 %vm223_vm1, %v4714_v10  ;;  %v4746_v18 = vpop.f32.mrf.mxu0 }
  0x9b   : > { %3919 = vmatmul.msk.f32.gmra.mxu3 %vm223_vm1, %v4730_v14  ;;  %3886 = vmatmul.msk.f32.gmra.mxu2 %vm223_vm1, %v4732_v15  ;;  %6240 = vst [vmem:[#allocation8_spill] sm:$0xff] %v4746_v18  ;;  %v4854_v18 = vld [vmem:[#allocation2 + $0x147] sm:$0xff] }
  0x9c   : > { %6261 = vst [vmem:[#allocation29_spill] sm:$0xff] %v4854_v18 }
  0x9f   : > { %v4750_v20 = vpop.f32.mrf.mxu1 }
  0xa2   : > { %3821 = vmatmul.msk.f32.gmra.mxu0 %vm223_vm1, %v4744_v17  ;;  %3853 = vmatmul.msk.f32.gmra.mxu1 %vm223_vm1, %v4730_v14  ;;  %v4776_v32 = vpop.f32.mrf.mxu0 }
  0xa3   : > { %3920 = vmatmul.msk.f32.gmra.mxu3 %vm223_vm1, %v4748_v19  ;;  %3887 = vmatmul.msk.f32.gmra.mxu2 %vm223_vm1, %v4752_v21  ;;  %6246 = vst [vmem:[#allocation14_spill] sm:$0xff] %v4776_v32  ;;  %v4836_v32 = vld [vmem:[#allocation2 + $0x12f] sm:$0xff] }
  0xa4   : > { %6258 = vst [vmem:[#allocation26_spill] sm:$0xff] %v4836_v32 }
  0xa6   : > { %v4764_v24 = vpop.f32.mrf.mxu2 }
  0xa7   : > { %6242 = vst [vmem:[#allocation10_spill] sm:$0xff] %v4764_v24  ;;  %v4770_v28 = vpop.f32.mrf.mxu1  ;;  %v4772_v29 = vpop.f32.mrf.mxu3  ;;  %v4872_v24 = vld [vmem:[#allocation2 + $0x14f] sm:$0xff] }
  0xa8   : > { %6244 = vst [vmem:[#allocation12_spill] sm:$0xff] %v4772_v29 }
  0xa9   : > { %6264 = vst [vmem:[#allocation32_spill] sm:$0xff] %v4872_v24 }
  0xaa   : > { %3822 = vmatmul.msk.f32.gmra.mxu0 %vm223_vm1, %v4766_v25  ;;  %3854 = vmatmul.msk.f32.gmra.mxu1 %vm223_vm1, %v4748_v19  ;;  %v520_v59 = vpop.f32.mrf.mxu0 }
  0xab   : > { %3921 = vmatmul.msk.f32.gmra.mxu3 %vm223_vm1, %v4768_v27  ;;  %3888 = vmatmul.msk.f32.gmra.mxu2 %vm223_vm1, %v4774_v30  ;;  %v4870_v30 = vld [vmem:[#allocation2 + $0x150] sm:$0xff] }
  0xae   : > { %v4788_v34 = vpop.f32.mrf.mxu2 }
  0xaf   : > { %6247 = vst [vmem:[#allocation15_spill] sm:$0xff] %v4788_v34  ;;  %v4794_v43 = vpop.f32.mrf.mxu3  ;;  %v4796_v47 = vpop.f32.mrf.mxu1  ;;  %v4856_v34 = vld [vmem:[#allocation2 + $0x131] sm:$0xff] }
  0xb0   : > { %6249 = vst [vmem:[#allocation17_spill] sm:$0xff] %v4794_v43  ;;  %v4838_v43 = vld [vmem:[#allocation2 + $0x129] sm:$0xff] }
  0xb1   : > { %6250 = vst [vmem:[#allocation18_spill] sm:$0xff] %v4796_v47  ;;  %v4852_v47 = vld [vmem:[#allocation2 + $0x148] sm:$0xff] }
  0xb2   : > { %3823 = vmatmul.msk.f32.gmra.mxu0 %vm223_vm1, %v4790_v35  ;;  %3855 = vmatmul.msk.f32.gmra.mxu1 %vm223_vm1, %v4768_v27  ;;  %v523_v55 = vpop.f32.mrf.mxu0  ;;  %6259 = vst [vmem:[#allocation27_spill] sm:$0xff] %v4838_v43 }
  0xb3   : > { %3922 = vmatmul.msk.f32.gmra.mxu3 %vm223_vm1, %v4792_v39  ;;  %3889 = vmatmul.msk.f32.gmra.mxu2 %vm223_vm1, %v4798_v51  ;;  %6262 = vst [vmem:[#allocation30_spill] sm:$0xff] %v4856_v34 }
  0xb6   : > { %v4810_v63 = vpop.f32.mrf.mxu2 }
  0xb7   : > { %6252 = vst [vmem:[#allocation20_spill] sm:$0xff] %v4810_v63  ;;  %v4816_v12 = vpop.f32.mrf.mxu1  ;;  %v4820_v23 = vpop.f32.mrf.mxu3  ;;  %v288_v63 = vld [vmem:[%s4446_s25 + $0xb0] sm:$0xff] }
  0xb8   : > { %6254 = vst [vmem:[#allocation22_spill] sm:$0xff] %v4816_v12  ;;  %v4834_v12 = vld [vmem:[#allocation2 + $0x130] sm:$0xff] }
  0xb9   : > { %6256 = vst [vmem:[#allocation24_spill] sm:$0xff] %v4820_v23 }
  0xba   : > { %3824 = vmatmul.msk.f32.gmra.mxu0 %vm223_vm1, %v4812_v4  ;;  %3856 = vmatmul.msk.f32.gmra.mxu1 %vm223_vm1, %v4792_v39  ;;  %320 = vst.msk [vmem:[#allocation2 + $0x188] sm:$0xff] %vm223_vm1, %v288_v63  ;;  %v289_v39 = vld [vmem:[%s4446_s25 + $0xb8] sm:$0xff] }
  0xbb   : > { %3923 = vmatmul.msk.f32.gmra.mxu3 %vm223_vm1, %v4814_v8  ;;  %3890 = vmatmul.msk.f32.gmra.mxu2 %vm223_vm1, %v4818_v16  ;;  %321 = vst.msk [vmem:[#allocation2 + $0x190] sm:$0xff] %vm223_vm1, %v289_v39  ;;  %v4877_v39 = vld [vmem:[#allocation2 + $0x149] sm:$0xff] }
  0xbc   : > { %6265 = vst [vmem:[#allocation33_spill] sm:$0xff] %v4877_v39 }
  0xbe   : > { %v4832_v1 = vpop.f32.mrf.mxu2 }
  0xbf   : > { %6257 = vst [vmem:[#allocation25_spill] sm:$0xff] %v4832_v1  ;;  %v732_v23 = vpop.f32.mrf.mxu1  ;;  %v4846_v33 = vpop.f32.mrf.mxu3 }
  0xc0   : > { %6260 = vst [vmem:[#allocation28_spill] sm:$0xff] %v4846_v33  ;;  %v733_v29 = vadd.f32 %v732_v23, %v520_v59 }
  0xc2   : > { %3825 = vmatmul.msk.f32.gmra.mxu0 %vm223_vm1, %v4834_v12  ;;  %3857 = vmatmul.msk.f32.gmra.mxu1 %vm223_vm1, %v4814_v8 }
  0xc3   : > { %3924 = vmatmul.msk.f32.gmra.mxu3 %vm223_vm1, %v4836_v32  ;;  %3891 = vmatmul.msk.f32.gmra.mxu2 %vm223_vm1, %v4838_v43 }
  0xc6   : > { %v978_v1 = vpop.f32.mrf.mxu2 }
  0xc7   : > { %v526_v16 = vpop.f32.mrf.mxu0  ;;  %v735_v51 = vpop.f32.mrf.mxu1  ;;  %v1070_v63 = vadd.f32 %v978_v1, %v733_v29  ;;  %v4007_v1 = vld [vmem:[%s6195_s1 + $0x18] sm:$0xf] }
  0xc8   : > { %v736_v59 = vadd.f32 %v735_v51, %v523_v55  ;;  %4008 = vmatpush.msk.msra.mxu2 %vm493_vm0, %v4007_v1  ;;  %v4041_v51 = vld [vmem:[%s6195_s1 + $0x1c] sm:$0xf] }
  0xc9   : > { %4042 = vmatpush.msk.msra.mxu3 %vm493_vm0, %v4041_v51 }
  0xca   : > { %3826 = vmatmul.msk.f32.gmra.mxu0 %vm223_vm1, %v4852_v47  ;;  %3858 = vmatmul.msk.f32.gmra.mxu1 %vm223_vm1, %v4836_v32 }
  0xcb   : > { %3925 = vmatmul.msk.f32.gmra.mxu3 %vm223_vm1, %v4854_v18  ;;  %3892 = vmatmul.msk.f32.gmra.mxu2 %vm223_vm1, %v4856_v34  ;;  %v4900_v34 = vld [vmem:[#allocation2 + $0x167] sm:$0xff] }
  0xcc   : > { %6268 = vst [vmem:[#allocation36_spill] sm:$0xff] %v4900_v34 }
  0xce   : > { %v1256_v23 = vpop.f32.mrf.mxu3  ;;  %v981_v43 = vpop.f32.mrf.mxu2 }
  0xcf   : > { %v4868_v33 = vadd.f32 %v1256_v23, %v1070_v63  ;;  %v529_v8 = vpop.f32.mrf.mxu0  ;;  %v1071_v27 = vadd.f32 %v981_v43, %v736_v59  ;;  %v738_v29 = vpop.f32.mrf.mxu1  ;;  %v3973_v43 = vld [vmem:[%s6195_s1 + $0x14] sm:$0xf] }
  0xd0   : > { %3974 = vmatpush.msk.msra.mxu1 %vm493_vm0, %v3973_v43  ;;  %v739_v55 = vadd.f32 %v738_v29, %v526_v16 }
  0xd1   : > { %6263 = vst [vmem:[#allocation31_spill] sm:$0xff] %v4868_v33  ;;  %v4898_v33 = vld [vmem:[#allocation2 + $0x168] sm:$0xff] }
  0xd2   : > { %3827 = vmatmul.msk.f32.gmra.mxu0 %vm223_vm1, %v4870_v30  ;;  %3859 = vmatmul.msk.f32.gmra.mxu1 %vm223_vm1, %v4854_v18  ;;  %6267 = vst [vmem:[#allocation35_spill] sm:$0xff] %v4898_v33  ;;  %v4902_v18 = vld [vmem:[#allocation2 + $0x151] sm:$0xff] }
  0xd3   : > { %3926 = vmatmul.msk.f32.gmra.mxu3 %vm223_vm1, %v4872_v24  ;;  %3893 = vmatmul.msk.f32.gmra.mxu2 %vm223_vm1, %v4877_v39  ;;  %6269 = vst [vmem:[#allocation37_spill] sm:$0xff] %v4902_v18 }
  0xd6   : > { %v1259_v63 = vpop.f32.mrf.mxu3  ;;  %v984_v23 = vpop.f32.mrf.mxu2 }
  0xd7   : > { %v4896_v59 = vadd.f32 %v1259_v63, %v1071_v27  ;;  %v532_v1 = vpop.f32.mrf.mxu0  ;;  %v1072_v32 = vadd.f32 %v984_v23, %v739_v55  ;;  %v741_v21 = vpop.f32.mrf.mxu1  ;;  %v4075_v27 = vld [vmem:[%s6195_s1 + $0x20] sm:$0xf]  ;;  %v4918_v63 = vld [vmem:[#allocation2 + $0x170] sm:$0xff] }
  0xd8   : > { %4076 = vmatpush.msk.msra.mxu0 %vm493_vm0, %v4075_v27  ;;  %v742_v16 = vadd.f32 %v741_v21, %v529_v8  ;;  %v4920_v23 = vld [vmem:[#allocation2 + $0x16f] sm:$0xff] }
  0xd9   : > { %6266 = vst [vmem:[#allocation34_spill] sm:$0xff] %v4896_v59 }
  0xda   : > { %3828 = vmatmul.msk.f32.gmra.mxu0 %vm223_vm1, %v4898_v33  ;;  %3860 = vmatmul.msk.f32.gmra.mxu1 %vm223_vm1, %v4872_v24  ;;  %6271 = vst [vmem:[#allocation39_spill] sm:$0xff] %v4920_v23  ;;  %v4922_v33 = vld [vmem:[#allocation2 + $0x169] sm:$0xff]  ;;  %v4938_v24 = vld [vmem:[#allocation2 + $0x171] sm:$0xff] }
  0xdb   : > { %3927 = vmatmul.msk.f32.gmra.mxu3 %vm223_vm1, %v4900_v34  ;;  %3894 = vmatmul.msk.f32.gmra.mxu2 %vm223_vm1, %v4902_v18  ;;  %6272 = vst [vmem:[#allocation40_spill] sm:$0xff] %v4922_v33 }
  0xdc   : > { %6276 = vst [vmem:[#allocation44_spill] sm:$0xff] %v4938_v24 }
  0xde   : > { %v1262_v29 = vpop.f32.mrf.mxu3  ;;  %v987_v43 = vpop.f32.mrf.mxu2 }
  0xdf   : > { %v4916_v51 = vadd.f32 %v1262_v29, %v1072_v32  ;;  %v535_v55 = vpop.f32.mrf.mxu0  ;;  %v1073_v59 = vadd.f32 %v987_v43, %v742_v16  ;;  %v744_v39 = vpop.f32.mrf.mxu1  ;;  %v4934_v29 = vld [vmem:[#allocation2 + $0x188] sm:$0xff] }
  0xe0   : > { %v745_v21 = vadd.f32 %v744_v39, %v532_v1  ;;  %6274 = vst [vmem:[#allocation42_spill] sm:$0xff] %v4934_v29  ;;  %v4936_v43 = vld [vmem:[#allocation2 + $0x187] sm:$0xff] }
  0xe1   : > { %6270 = vst [vmem:[#allocation38_spill] sm:$0xff] %v4916_v51 }
  0xe2   : > { %3829 = vmatmul.msk.f32.gmra.mxu0 %vm223_vm1, %v4918_v63  ;;  %3861 = vmatmul.msk.f32.gmra.mxu1 %vm223_vm1, %v4900_v34  ;;  %6275 = vst [vmem:[#allocation43_spill] sm:$0xff] %v4936_v43 }
  0xe3   : > { %3928 = vmatmul.msk.f32.gmra.mxu3 %vm223_vm1, %v4920_v23  ;;  %3895 = vmatmul.msk.f32.gmra.mxu2 %vm223_vm1, %v4922_v33 }
  0xe6   : > { %v1265_v32 = vpop.f32.mrf.mxu3  ;;  %v990_v27 = vpop.f32.mrf.mxu2 }
  0xe7   : > { %v4932_v8 = vadd.f32 %v1265_v32, %v1073_v59  ;;  %v538_v16 = vpop.f32.mrf.mxu0  ;;  %v1074_v51 = vadd.f32 %v990_v27, %v745_v21  ;;  %v747_v18 = vpop.f32.mrf.mxu1  ;;  %v4950_v27 = vld [vmem:[#allocation2 + $0x190] sm:$0xff] }
  0xe8   : > { %v748_v39 = vadd.f32 %v747_v18, %v535_v55 }
  0xe9   : > { %6273 = vst [vmem:[#allocation41_spill] sm:$0xff] %v4932_v8  ;;  %v4952_v8 = vld [vmem:[#allocation2 + $0x18f] sm:$0xff] }
  0xea   : > { %3830 = vmatmul.msk.f32.gmra.mxu0 %vm223_vm1, %v4934_v29  ;;  %3862 = vmatmul.msk.f32.gmra.mxu1 %vm223_vm1, %v4920_v23  ;;  %6278 = vst [vmem:[#allocation46_spill] sm:$0xff] %v4952_v8  ;;  %v4954_v29 = vld [vmem:[#allocation2 + $0x189] sm:$0xff]  ;;  %v4968_v23 = vld [vmem:[#allocation2 + $0x191] sm:$0xff] }
  0xeb   : > { %3929 = vmatmul.msk.f32.gmra.mxu3 %vm223_vm1, %v4936_v43  ;;  %3896 = vmatmul.msk.f32.gmra.mxu2 %vm223_vm1, %v4938_v24  ;;  %6279 = vst [vmem:[#allocation47_spill] sm:$0xff] %v4954_v29 }
  0xec   : > { %6282 = vst [vmem:[#allocation50_spill] sm:$0xff] %v4968_v23 }
  0xee   : > { %v1268_v59 = vpop.f32.mrf.mxu3  ;;  %v993_v21 = vpop.f32.mrf.mxu2 }
  0xef   : > { %v4948_v1 = vadd.f32 %v1268_v59, %v1074_v51  ;;  %v541_v32 = vpop.f32.mrf.mxu0  ;;  %v1075_v33 = vadd.f32 %v993_v21, %v748_v39  ;;  %v750_v34 = vpop.f32.mrf.mxu1  ;;  %v4966_v21 = vld [vmem:[#allocation2 + $0x1a7] sm:$0xff] }
  0xf0   : > { %v751_v18 = vadd.f32 %v750_v34, %v538_v16  ;;  %6281 = vst [vmem:[#allocation49_spill] sm:$0xff] %v4966_v21 }
  0xf1   : > { %6277 = vst [vmem:[#allocation45_spill] sm:$0xff] %v4948_v1 }
  0xf2   : > { %3831 = vmatmul.msk.f32.gmra.mxu0 %vm223_vm1, %v4950_v27  ;;  %3863 = vmatmul.msk.f32.gmra.mxu1 %vm223_vm1, %v4936_v43  ;;  %v297_v43 = vld [vmem:[%s4446_s25 + $0xf8] sm:$0xff] }
  0xf3   : > { %3930 = vmatmul.msk.f32.gmra.mxu3 %vm223_vm1, %v4952_v8  ;;  %3897 = vmatmul.msk.f32.gmra.mxu2 %vm223_vm1, %v4954_v29  ;;  %v4982_v29 = vld [vmem:[#allocation2 + $0x1a9] sm:$0xff]  ;;  %329 = vst.msk [vmem:[#allocation2 + $0x210] sm:$0xff] %vm223_vm1, %v297_v43 }
  0xf4   : > { %6284 = vst [vmem:[#allocation52_spill] sm:$0xff] %v4982_v29 }
  0xf6   : > { %v1271_v51 = vpop.f32.mrf.mxu3  ;;  %v996_v39 = vpop.f32.mrf.mxu2 }
  0xf7   : > { %v4964_v55 = vadd.f32 %v1271_v51, %v1075_v33  ;;  %v544_v59 = vpop.f32.mrf.mxu0  ;;  %v1076_v1 = vadd.f32 %v996_v39, %v751_v18  ;;  %v753_v24 = vpop.f32.mrf.mxu1  ;;  %v4980_v39 = vld [vmem:[#allocation2 + $0x1af] sm:$0xff] }
  0xf8   : > { %v754_v34 = vadd.f32 %v753_v24, %v541_v32 }
  0xf9   : > { %6280 = vst [vmem:[#allocation48_spill] sm:$0xff] %v4964_v55 }
  0xfa   : > { %3941 = vmatmul.msk.f32.vlgmr.msrb.gmra.mxu0 %vm223_vm1, %v4490_v22  ;;  %3864 = vmatmul.msk.f32.gmra.mxu1 %vm223_vm1, %v4952_v8  ;;  %v296_v8 = vld [vmem:[%s4446_s25 + $0xf0] sm:$0xff]  ;;  %s4282_s25 = scalar_lea.hbm %s4281_s22, 8 }
  0xfb   : > { %3931 = vmatmul.msk.f32.gmra.mxu3 %vm223_vm1, %v4966_v21  ;;  %3898 = vmatmul.msk.f32.gmra.mxu2 %vm223_vm1, %v4968_v23  ;;  %328 = vst.msk [vmem:[#allocation2 + $0x208] sm:$0xff] %vm223_vm1, %v296_v8  ;;  %p4283_p11 = scmp.ne.s32.totalorder %s4281_s22, %s4282_s25  ;;  %p4288_p1 = scmp.lt.s32.totalorder %s4286_s6, %s4282_s25 }
  0xfd   : > { %p4284_p12 = pnand %p4283_p11, %p4400_p5  ;;  %p4289_p2 = por %p4288_p1, %p4287_p0 }
  0xfe   : > { %v1274_v33 = vpop.f32.mrf.mxu3  ;;  %v999_v18 = vpop.f32.mrf.mxu2 }
  0xff   : > { %v4978_v16 = vadd.f32 %v1274_v33, %v1076_v1  ;;  %v547_v51 = vpop.f32.mrf.mxu0  ;;  %v1077_v55 = vadd.f32 %v999_v18, %v754_v34  ;;  %v756_v22 = vpop.f32.mrf.mxu1  ;;  %v4994_v18 = vld [vmem:[#allocation2 + $0x1c7] sm:$0xff]  ;;  %p4285_p13 = pneg %p4284_p12 }
 0x100   : > { %v757_v24 = vadd.f32 %v756_v22, %v544_v59 }
 0x101   : > { %6283 = vst [vmem:[#allocation51_spill] sm:$0xff] %v4978_v16  ;;  %p4290_p3 = pnand %p4289_p2, %p4285_p13 }
 0x102   : > { %3942 = vmatmul.msk.f32.gmra.mxu0 %vm223_vm1, %v4513_v26  ;;  %3865 = vmatmul.msk.f32.gmra.mxu1 %vm223_vm1, %v4966_v21  ;;  %v4996_v26 = vld [vmem:[#allocation2 + $0x1b1] sm:$0xff]  ;;  %v5012_v21 = vld [vmem:[#allocation2 + $0x1c9] sm:$0xff] }
 0x103   : > { %3932 = vmatmul.msk.f32.gmra.mxu3 %vm223_vm1, %v4980_v39  ;;  %3899 = vmatmul.msk.f32.gmra.mxu2 %vm223_vm1, %v4982_v29  ;;  %6286 = vst [vmem:[#allocation54_spill] sm:$0xff] %v4996_v26 }
 0x104   : > { %6289 = vst [vmem:[#allocation57_spill] sm:$0xff] %v5012_v21 }
 0x106   : > { %v1277_v1 = vpop.f32.mrf.mxu3  ;;  %v1002_v34 = vpop.f32.mrf.mxu2 }
 0x107   : > { %v4992_v32 = vadd.f32 %v1277_v1, %v1077_v55  ;;  %v550_v33 = vpop.f32.mrf.mxu0  ;;  %v1078_v16 = vadd.f32 %v1002_v34, %v757_v24  ;;  %v759_v23 = vpop.f32.mrf.mxu1  ;;  %v5010_v34 = vld [vmem:[#allocation2 + $0x1cf] sm:$0xff] }
 0x108   : > { %v760_v55 = vadd.f32 %v759_v23, %v547_v51  ;;  %6288 = vst [vmem:[#allocation56_spill] sm:$0xff] %v5010_v34 }
 0x109   : > { %6285 = vst [vmem:[#allocation53_spill] sm:$0xff] %v4992_v32 }
 0x10a   : > { %3943 = vmatmul.msk.f32.gmra.mxu0 %vm223_vm1, %v4571_v37  ;;  %3866 = vmatmul.msk.f32.gmra.mxu1 %vm223_vm1, %v4980_v39 }
 0x10b   : > { %3933 = vmatmul.msk.f32.gmra.mxu3 %vm223_vm1, %v4994_v18  ;;  %3900 = vmatmul.msk.f32.gmra.mxu2 %vm223_vm1, %v4996_v26  ;;  %v5028_v26 = vld [vmem:[#allocation2 + $0x1d1] sm:$0xff] }
 0x10c   : > { %6291 = vst [vmem:[#allocation59_spill] sm:$0xff] %v5028_v26 }
 0x10e   : > { %v1280_v59 = vpop.f32.mrf.mxu3  ;;  %v1005_v24 = vpop.f32.mrf.mxu2 }
 0x10f   : > { %v5008_v22 = vadd.f32 %v1280_v59, %v1078_v16  ;;  %v553_v1 = vpop.f32.mrf.mxu0  ;;  %v1079_v32 = vadd.f32 %v1005_v24, %v760_v55  ;;  %v762_v29 = vpop.f32.mrf.mxu1  ;;  %v5026_v59 = vld [vmem:[#allocation2 + $0x1e7] sm:$0xff] }
 0x110   : > { %v763_v23 = vadd.f32 %v762_v29, %v550_v33 }
 0x111   : > { %6287 = vst [vmem:[#allocation55_spill] sm:$0xff] %v5008_v22 }
 0x112   : > { %3944 = vmatmul.msk.f32.gmra.mxu0 %vm223_vm1, %v4584_v40  ;;  %3867 = vmatmul.msk.f32.gmra.mxu1 %vm223_vm1, %v4994_v18 }
 0x113   : > { %3934 = vmatmul.msk.f32.gmra.mxu3 %vm223_vm1, %v5010_v34  ;;  %3901 = vmatmul.msk.f32.gmra.mxu2 %vm223_vm1, %v5012_v21  ;;  %v5042_v21 = vld [vmem:[#allocation2 + $0x1e9] sm:$0xff] }
 0x114   : > { %6293 = vst [vmem:[#allocation61_spill] sm:$0xff] %v5042_v21 }
 0x116   : > { %v1283_v8 = vpop.f32.mrf.mxu3  ;;  %v1008_v51 = vpop.f32.mrf.mxu2 }
 0x117   : > { %v5024_v16 = vadd.f32 %v1283_v8, %v1079_v32  ;;  %v556_v55 = vpop.f32.mrf.mxu0  ;;  %v1080_v24 = vadd.f32 %v1008_v51, %v763_v23  ;;  %v765_v22 = vpop.f32.mrf.mxu1  ;;  %v5040_v8 = vld [vmem:[#allocation2 + $0x1ef] sm:$0xff] }
 0x118   : > { %v766_v29 = vadd.f32 %v765_v22, %v553_v1 }
 0x119   : > { %6290 = vst [vmem:[#allocation58_spill] sm:$0xff] %v5024_v16 }
 0x11a   : > { %3945 = vmatmul.msk.f32.gmra.mxu0 %vm223_vm1, %v4600_v44  ;;  %3868 = vmatmul.msk.f32.gmra.mxu1 %vm223_vm1, %v5010_v34  ;;  %v5056_v34 = vld [vmem:[#allocation2 + $0x1f1] sm:$0xff] }
 0x11b   : > { %3935 = vmatmul.msk.f32.gmra.mxu3 %vm223_vm1, %v5026_v59  ;;  %3902 = vmatmul.msk.f32.gmra.mxu2 %vm223_vm1, %v5028_v26 }
 0x11e   : > { %v1286_v43 = vpop.f32.mrf.mxu3  ;;  %v1011_v33 = vpop.f32.mrf.mxu2 }
 0x11f   : > { %v5038_v32 = vadd.f32 %v1286_v43, %v1080_v24  ;;  %v559_v23 = vpop.f32.mrf.mxu0  ;;  %v1081_v51 = vadd.f32 %v1011_v33, %v766_v29  ;;  %v768_v16 = vpop.f32.mrf.mxu1  ;;  %v5054_v33 = vld [vmem:[#allocation2 + $0x207] sm:$0xff] }
 0x120   : > { %v769_v22 = vadd.f32 %v768_v16, %v556_v55 }
 0x121   : > { %6292 = vst [vmem:[#allocation60_spill] sm:$0xff] %v5038_v32 }
 0x122   : > { %3946 = vmatmul.msk.f32.gmra.mxu0 %vm223_vm1, %v4616_v48  ;;  %3869 = vmatmul.msk.f32.gmra.mxu1 %vm223_vm1, %v5026_v59 }
 0x123   : > { %3936 = vmatmul.msk.f32.gmra.mxu3 %vm223_vm1, %v5040_v8  ;;  %3903 = vmatmul.msk.f32.gmra.mxu2 %vm223_vm1, %v5042_v21 }
 0x126   : > { %v1289_v1 = vpop.f32.mrf.mxu3  ;;  %v1014_v29 = vpop.f32.mrf.mxu2 }
 0x127   : > { %v5052_v24 = vadd.f32 %v1289_v1, %v1081_v51  ;;  %v562_v43 = vpop.f32.mrf.mxu0  ;;  %v1082_v32 = vadd.f32 %v1014_v29, %v769_v22  ;;  %v771_v26 = vpop.f32.mrf.mxu1  ;;  %v5068_v29 = vld [vmem:[#allocation2 + $0x20f] sm:$0xff] }
 0x128   : > { %v772_v16 = vadd.f32 %v771_v26, %v559_v23 }
 0x129   : > { %6294 = vst [vmem:[#allocation62_spill] sm:$0xff] %v5052_v24 }
 0x12a   : > { %3947 = vmatmul.msk.f32.gmra.mxu0 %vm223_vm1, %v4632_v52  ;;  %3870 = vmatmul.msk.f32.gmra.mxu1 %vm223_vm1, %v5040_v8 }
 0x12b   : > { %3937 = vmatmul.msk.f32.gmra.mxu3 %vm223_vm1, %v5054_v33  ;;  %3904 = vmatmul.msk.f32.gmra.mxu2 %vm223_vm1, %v5056_v34 }
 0x12e   : > { %v1292_v55 = vpop.f32.mrf.mxu3  ;;  %v1017_v22 = vpop.f32.mrf.mxu2 }
 0x12f   : > { %v5066_v51 = vadd.f32 %v1292_v55, %v1082_v32  ;;  %v565_v1 = vpop.f32.mrf.mxu0  ;;  %v1083_v24 = vadd.f32 %v1017_v22, %v772_v16  ;;  %v774_v21 = vpop.f32.mrf.mxu1 }
 0x130   : > { %v775_v26 = vadd.f32 %v774_v21, %v562_v43 }
 0x131   : > { %6295 = vst [vmem:[#allocation63_spill] sm:$0xff] %v5066_v51 }
 0x132   : > { %3948 = vmatmul.msk.f32.gmra.mxu0 %vm223_vm1, %v4648_v56  ;;  %3975 = vmatmul.msk.f32.vlgmr.msra.gmra.mxu1 %vm223_vm1, %v4553_v31 }
 0x133   : > { %3938 = vmatmul.msk.f32.gmra.mxu3 %vm223_vm1, %v5068_v29  ;;  %4009 = vmatmul.msk.f32.vlgmr.msra.gmra.mxu2 %vm223_vm1, %v4573_v38 }
 0x136   : > { %v1295_v32 = vpop.f32.mrf.mxu3  ;;  %v1020_v55 = vpop.f32.mrf.mxu2 }
 0x137   : > { %v5078_v23 = vadd.f32 %v1295_v32, %v1083_v24  ;;  %v568_v51 = vpop.f32.mrf.mxu0  ;;  %v1084_v16 = vadd.f32 %v1020_v55, %v775_v26  ;;  %v777_v22 = vpop.f32.mrf.mxu1 }
 0x138   : > { %v778_v31 = vadd.f32 %v777_v22, %v565_v1 }
 0x13a   : > { %3949 = vmatmul.msk.f32.gmra.mxu0 %vm223_vm1, %v4664_v60  ;;  %3976 = vmatmul.msk.f32.gmra.mxu1 %vm223_vm1, %v4569_v36 }
 0x13b   : > { %4043 = vmatmul.msk.f32.vlgmr.msra.gmra.mxu3 %vm223_vm1, %v4571_v37  ;;  %4010 = vmatmul.msk.f32.gmra.mxu2 %vm223_vm1, %v4586_v41 }
 0x13e   : > { %v1298_v38 = vpop.f32.mrf.mxu3  ;;  %v1023_v24 = vpop.f32.mrf.mxu2 }
 0x13f   : > { %v5088_v21 = vadd.f32 %v1298_v38, %v1084_v16  ;;  %v571_v43 = vpop.f32.mrf.mxu0  ;;  %v1085_v26 = vadd.f32 %v1023_v24, %v778_v31  ;;  %v780_v32 = vpop.f32.mrf.mxu1 }
 0x140   : > { %v781_v36 = vadd.f32 %v780_v32, %v568_v51 }
 0x142   : > { %3950 = vmatmul.msk.f32.gmra.mxu0 %vm223_vm1, %v4680_v0  ;;  %3977 = vmatmul.msk.f32.gmra.mxu1 %vm223_vm1, %v4588_v42 }
 0x143   : > { %4044 = vmatmul.msk.f32.gmra.mxu3 %vm223_vm1, %v4584_v40  ;;  %4011 = vmatmul.msk.f32.gmra.mxu2 %vm223_vm1, %v4602_v45 }
 0x146   : > { %v1301_v37 = vpop.f32.mrf.mxu3  ;;  %v1026_v1 = vpop.f32.mrf.mxu2 }
 0x147   : > { %v5098_v41 = vadd.f32 %v1301_v37, %v1085_v26  ;;  %v574_v55 = vpop.f32.mrf.mxu0  ;;  %v1086_v16 = vadd.f32 %v1026_v1, %v781_v36  ;;  %v783_v22 = vpop.f32.mrf.mxu1 }
 0x148   : > { %v784_v40 = vadd.f32 %v783_v22, %v571_v43 }
 0x14a   : > { %3951 = vmatmul.msk.f32.gmra.mxu0 %vm223_vm1, %v4696_v5  ;;  %3978 = vmatmul.msk.f32.gmra.mxu1 %vm223_vm1, %v4604_v46 }
 0x14b   : > { %4045 = vmatmul.msk.f32.gmra.mxu3 %vm223_vm1, %v4600_v44  ;;  %4012 = vmatmul.msk.f32.gmra.mxu2 %vm223_vm1, %v4618_v49 }
 0x14e   : > { %v1304_v42 = vpop.f32.mrf.mxu3  ;;  %v1029_v51 = vpop.f32.mrf.mxu2 }
 0x14f   : > { %v5108_v45 = vadd.f32 %v1304_v42, %v1086_v16  ;;  %v577_v31 = vpop.f32.mrf.mxu0  ;;  %v1087_v38 = vadd.f32 %v1029_v51, %v784_v40  ;;  %v786_v24 = vpop.f32.mrf.mxu1 }
 0x150   : > { %v787_v44 = vadd.f32 %v786_v24, %v574_v55 }
 0x152   : > { %3952 = vmatmul.msk.f32.gmra.mxu0 %vm223_vm1, %v4712_v9  ;;  %3979 = vmatmul.msk.f32.gmra.mxu1 %vm223_vm1, %v4620_v50 }
 0x153   : > { %4046 = vmatmul.msk.f32.gmra.mxu3 %vm223_vm1, %v4616_v48  ;;  %4013 = vmatmul.msk.f32.gmra.mxu2 %vm223_vm1, %v4634_v53 }
 0x156   : > { %v1307_v46 = vpop.f32.mrf.mxu3  ;;  %v1032_v43 = vpop.f32.mrf.mxu2 }
 0x157   : > { %v5118_v49 = vadd.f32 %v1307_v46, %v1087_v38  ;;  %v580_v26 = vpop.f32.mrf.mxu0  ;;  %v1088_v32 = vadd.f32 %v1032_v43, %v787_v44  ;;  %v789_v36 = vpop.f32.mrf.mxu1 }
 0x158   : > { %v790_v48 = vadd.f32 %v789_v36, %v577_v31 }
 0x159   : > { %6296 = vst [vmem:[#allocation64_spill] sm:$0xff] %v5118_v49 }
 0x15a   : > { %3953 = vmatmul.msk.f32.gmra.mxu0 %vm223_vm1, %v4728_v13  ;;  %3980 = vmatmul.msk.f32.gmra.mxu1 %vm223_vm1, %v4636_v54 }
 0x15b   : > { %4047 = vmatmul.msk.f32.gmra.mxu3 %vm223_vm1, %v4632_v52  ;;  %4014 = vmatmul.msk.f32.gmra.mxu2 %vm223_vm1, %v4650_v57 }
 0x15e   : > { %v1310_v50 = vpop.f32.mrf.mxu3  ;;  %v1035_v37 = vpop.f32.mrf.mxu2 }
 0x15f   : > { %v5128_v53 = vadd.f32 %v1310_v50, %v1088_v32  ;;  %v583_v1 = vpop.f32.mrf.mxu0  ;;  %v1089_v55 = vadd.f32 %v1035_v37, %v790_v48  ;;  %v792_v16 = vpop.f32.mrf.mxu1 }
 0x160   : > { %v793_v52 = vadd.f32 %v792_v16, %v580_v26 }
 0x161   : > { %6297 = vst [vmem:[#allocation65_spill] sm:$0xff] %v5128_v53 }
 0x162   : > { %3954 = vmatmul.msk.f32.gmra.mxu0 %vm223_vm1, %v4744_v17  ;;  %3981 = vmatmul.msk.f32.gmra.mxu1 %vm223_vm1, %v4652_v58 }
 0x163   : > { %4048 = vmatmul.msk.f32.gmra.mxu3 %vm223_vm1, %v4648_v56  ;;  %4015 = vmatmul.msk.f32.gmra.mxu2 %vm223_vm1, %v4666_v61 }
 0x166   : > { %v1313_v54 = vpop.f32.mrf.mxu3  ;;  %v1038_v22 = vpop.f32.mrf.mxu2 }
 0x167   : > { %v5138_v57 = vadd.f32 %v1313_v54, %v1089_v55  ;;  %v586_v40 = vpop.f32.mrf.mxu0  ;;  %v1090_v42 = vadd.f32 %v1038_v22, %v793_v52  ;;  %v795_v51 = vpop.f32.mrf.mxu1 }
 0x168   : > { %v796_v56 = vadd.f32 %v795_v51, %v583_v1 }
 0x169   : > { %6298 = vst [vmem:[#allocation66_spill] sm:$0xff] %v5138_v57 }
 0x16a   : > { %3955 = vmatmul.msk.f32.gmra.mxu0 %vm223_vm1, %v4766_v25  ;;  %3982 = vmatmul.msk.f32.gmra.mxu1 %vm223_vm1, %v4668_v62 }
 0x16b   : > { %4049 = vmatmul.msk.f32.gmra.mxu3 %vm223_vm1, %v4664_v60  ;;  %4016 = vmatmul.msk.f32.gmra.mxu2 %vm223_vm1, %v4682_v2 }
 0x16e   : > { %v1316_v58 = vpop.f32.mrf.mxu3  ;;  %v1041_v31 = vpop.f32.mrf.mxu2 }
 0x16f   : > { %v5148_v61 = vadd.f32 %v1316_v58, %v1090_v42  ;;  %v589_v38 = vpop.f32.mrf.mxu0  ;;  %v1091_v24 = vadd.f32 %v1041_v31, %v796_v56  ;;  %v798_v44 = vpop.f32.mrf.mxu1 }
 0x170   : > { %v799_v60 = vadd.f32 %v798_v44, %v586_v40  ;;  %v6310_v44 = vld [vmem:[#allocation16_spill] sm:$0xff] }
 0x171   : > { %6299 = vst [vmem:[#allocation67_spill] sm:$0xff] %v5148_v61 }
 0x172   : > { %3956 = vmatmul.msk.f32.gmra.mxu0 %vm223_vm1, %v4790_v35  ;;  %3983 = vmatmul.msk.f32.gmra.mxu1 %vm223_vm1, %v4684_v3 }
 0x173   : > { %4050 = vmatmul.msk.f32.gmra.mxu3 %vm223_vm1, %v4680_v0  ;;  %4017 = vmatmul.msk.f32.gmra.mxu2 %vm223_vm1, %v4698_v6 }
 0x176   : > { %v1319_v62 = vpop.f32.mrf.mxu3  ;;  %v1044_v46 = vpop.f32.mrf.mxu2 }
 0x177   : > { %v5158_v2 = vadd.f32 %v1319_v62, %v1091_v24  ;;  %v5160_v43 = vpop.f32.mrf.mxu0  ;;  %v1092_v26 = vadd.f32 %v1044_v46, %v799_v60  ;;  %v801_v32 = vpop.f32.mrf.mxu1  ;;  %v6309_v24 = vld [vmem:[#allocation13_spill] sm:$0xff] }
 0x178   : > { %v802_v0 = vadd.f32 %v801_v32, %v589_v38  ;;  %v6308_v38 = vld [vmem:[#allocation35_spill] sm:$0xff] }
 0x179   : > { %6300 = vst [vmem:[#allocation68_spill] sm:$0xff] %v5158_v2  ;;  %v6312_v32 = vld [vmem:[#allocation15_spill] sm:$0xff] }
 0x17a   : > { %3957 = vmatmul.msk.f32.gmra.mxu0 %vm223_vm1, %v4812_v4  ;;  %3984 = vmatmul.msk.f32.gmra.mxu1 %vm223_vm1, %v4700_v7 }
 0x17b   : > { %4051 = vmatmul.msk.f32.gmra.mxu3 %vm223_vm1, %v4696_v5  ;;  %4018 = vmatmul.msk.f32.gmra.mxu2 %vm223_vm1, %v4714_v10 }
 0x17e   : > { %v1322_v3 = vpop.f32.mrf.mxu3  ;;  %v1047_v36 = vpop.f32.mrf.mxu2 }
 0x17f   : > { %v5170_v6 = vadd.f32 %v1322_v3, %v1092_v26  ;;  %v5172_v48 = vpop.f32.mrf.mxu0  ;;  %v1093_v50 = vadd.f32 %v1047_v36, %v802_v0  ;;  %v804_v37 = vpop.f32.mrf.mxu1  ;;  %v6313_v36 = vld [vmem:[#allocation19_spill] sm:$0xff] }
 0x180   : > { %v805_v55 = vadd.f32 %v804_v37, %v4750_v20 }
 0x181   : > { %6301 = vst [vmem:[#allocation69_spill] sm:$0xff] %v5170_v6 }
 0x182   : > { %3958 = vmatmul.msk.f32.gmra.mxu0 %vm223_vm1, %v4834_v12  ;;  %3985 = vmatmul.msk.f32.gmra.mxu1 %vm223_vm1, %v4716_v11 }
 0x183   : > { %4052 = vmatmul.msk.f32.gmra.mxu3 %vm223_vm1, %v4712_v9  ;;  %4019 = vmatmul.msk.f32.gmra.mxu2 %vm223_vm1, %v4730_v14 }
 0x186   : > { %v1325_v5 = vpop.f32.mrf.mxu3  ;;  %v1050_v10 = vpop.f32.mrf.mxu2 }
 0x187   : > { %v5182_v7 = vadd.f32 %v1325_v5, %v1093_v50  ;;  %v5184_v1 = vpop.f32.mrf.mxu0  ;;  %v807_v16 = vpop.f32.mrf.mxu1  ;;  %v1094_v9 = vadd.f32 %v1050_v10, %v805_v55  ;;  %v6314_v50 = vld [vmem:[#allocation21_spill] sm:$0xff] }
 0x188   : > { %v808_v20 = vadd.f32 %v807_v16, %v4770_v28  ;;  %v6307_v28 = vld [vmem:[#allocation10_spill] sm:$0xff]  ;;  %v6316_v16 = vld [vmem:[#allocation12_spill] sm:$0xff] }
 0x189   : > { %6302 = vst [vmem:[#allocation70_spill] sm:$0xff] %v5182_v7  ;;  %v4131_v7 = vld [vmem:[%s6197_s3 + $0x50] sm:$0xff] }
 0x18a   : > { %3959 = vmatmul.msk.f32.gmra.mxu0 %vm223_vm1, %v4852_v47  ;;  %3986 = vmatmul.msk.f32.gmra.mxu1 %vm223_vm1, %v4732_v15  ;;  %v6304_v15 = vld [vmem:[#allocation9_spill] sm:$0xff] }
 0x18b   : > { %4053 = vmatmul.msk.f32.gmra.mxu3 %vm223_vm1, %v4728_v13  ;;  %4020 = vmatmul.msk.f32.gmra.mxu2 %vm223_vm1, %v4748_v19  ;;  %v6305_v19 = vld [vmem:[#allocation11_spill] sm:$0xff] }
 0x18e   : > { %v1328_v11 = vpop.f32.mrf.mxu3  ;;  %v1053_v52 = vpop.f32.mrf.mxu2 }
 0x18f   : > { %v5195_v14 = vadd.f32 %v1328_v11, %v1094_v9  ;;  %v5197_v54 = vpop.f32.mrf.mxu0  ;;  %v810_v22 = vpop.f32.mrf.mxu1  ;;  %v1095_v13 = vadd.f32 %v1053_v52, %v808_v20  ;;  %v6317_v52 = vld [vmem:[#allocation42_spill] sm:$0xff]  ;;  %v6318_v20 = vld [vmem:[#allocation8_spill] sm:$0xff] }
 0x190   : > { %v811_v58 = vadd.f32 %v810_v22, %v6307_v28  ;;  %v6319_v22 = vld [vmem:[#allocation18_spill] sm:$0xff] }
 0x191   : > { %6303 = vst [vmem:[#allocation71_spill] sm:$0xff] %v5195_v14 }
 0x192   : > { %3960 = vmatmul.msk.f32.gmra.mxu0 %vm223_vm1, %v4870_v30  ;;  %3987 = vmatmul.msk.f32.gmra.mxu1 %vm223_vm1, %v6304_v15  ;;  %v6320_v15 = vld [vmem:[#allocation23_spill] sm:$0xff] }
 0x193   : > { %4054 = vmatmul.msk.f32.gmra.mxu3 %vm223_vm1, %v4744_v17  ;;  %4021 = vmatmul.msk.f32.gmra.mxu2 %vm223_vm1, %v6305_v19  ;;  %v6321_v19 = vld [vmem:[#allocation26_spill] sm:$0xff] }
 0x196   : > { %v1331_v40 = vpop.f32.mrf.mxu3  ;;  %v1056_v51 = vpop.f32.mrf.mxu2 }
 0x197   : > { %v5208_v42 = vadd.f32 %v1331_v40, %v1095_v13  ;;  %v5210_v56 = vpop.f32.mrf.mxu0  ;;  %v813_v31 = vpop.f32.mrf.mxu1  ;;  %v1096_v17 = vadd.f32 %v1056_v51, %v811_v58  ;;  %v727_v13 = vadd.f32 %v6319_v22, %v6318_v20  ;;  %v6322_v40 = vld [vmem:[#allocation20_spill] sm:$0xff]  ;;  %v5272_v22 = vld [vmem:[#allocation2 + $0x1a8] sm:$0xff] }
 0x198   : > { %v814_v0 = vadd.f32 %v813_v31, %v6312_v32 }
 0x199   : > { %6306 = vst [vmem:[#allocation9_spill] sm:$0xff] %v5208_v42  ;;  %v1068_v51 = vadd.f32 %v6322_v40, %v727_v13  ;;  %v2895_v42 = vld [vmem:[%s6197_s3 + $0x10] sm:$0xff] }
 0x19a   : > { %3961 = vmatmul.msk.f32.gmra.mxu0 %vm223_vm1, %v6308_v38  ;;  %3988 = vmatmul.msk.f32.gmra.mxu1 %vm223_vm1, %v6309_v24  ;;  %v6324_v24 = vld [vmem:[#allocation17_spill] sm:$0xff] }
 0x19b   : > { %4055 = vmatmul.msk.f32.gmra.mxu3 %vm223_vm1, %v4766_v25  ;;  %4022 = vmatmul.msk.f32.gmra.mxu2 %vm223_vm1, %v6310_v44 }
 0x19e   : > { %v1334_v60 = vpop.f32.mrf.mxu3  ;;  %v1059_v46 = vpop.f32.mrf.mxu2 }
 0x19f   : > { %v5221_v62 = vadd.f32 %v1334_v60, %v1096_v17  ;;  %v5223_v26 = vpop.f32.mrf.mxu0  ;;  %v816_v3 = vpop.f32.mrf.mxu1  ;;  %v1097_v25 = vadd.f32 %v1059_v46, %v814_v0  ;;  %v6325_v60 = vld [vmem:[#allocation24_spill] sm:$0xff]  ;;  %v6326_v0 = vld [vmem:[#allocation14_spill] sm:$0xff] }
 0x1a0   : > { %v817_v9 = vadd.f32 %v816_v3, %v6316_v16  ;;  %v1346_v46 = vadd.f32 %v6325_v60, %v1068_v51  ;;  %v6327_v3 = vld [vmem:[#allocation22_spill] sm:$0xff] }
 0x1a1   : > { %6311 = vst [vmem:[#allocation11_spill] sm:$0xff] %v5221_v62  ;;  %v6333_v51 = vld [vmem:[#allocation30_spill] sm:$0xff] }
 0x1a2   : > { %3962 = vmatmul.msk.f32.gmra.mxu0 %vm223_vm1, %v4918_v63  ;;  %3989 = vmatmul.msk.f32.gmra.mxu1 %vm223_vm1, %v6313_v36  ;;  %v1624_v36 = vadd.f32 %v5160_v43, %v1346_v46  ;;  %v6332_v43 = vld [vmem:[#allocation28_spill] sm:$0xff]  ;;  %v5288_v46 = vld [vmem:[#allocation2 + $0x1b0] sm:$0xff] }
 0x1a3   : > { %4056 = vmatmul.msk.f32.gmra.mxu3 %vm223_vm1, %v4790_v35  ;;  %4023 = vmatmul.msk.f32.gmra.mxu2 %vm223_vm1, %v6314_v50  ;;  %v6328_v50 = vld [vmem:[#allocation27_spill] sm:$0xff] }
 0x1a4   : > { %v2502_v62 = vld [vmem:[#allocation2 + $0xf1] sm:$0xff] }
 0x1a6   : > { %v1337_v37 = vpop.f32.mrf.mxu3  ;;  %v1062_v10 = vpop.f32.mrf.mxu2 }
 0x1a7   : > { %v5234_v5 = vadd.f32 %v1337_v37, %v1097_v25  ;;  %v5236_v55 = vpop.f32.mrf.mxu0  ;;  %v819_v11 = vpop.f32.mrf.mxu1  ;;  %v1098_v35 = vadd.f32 %v1062_v10, %v817_v9  ;;  %v730_v25 = vadd.f32 %v6327_v3, %v6326_v0  ;;  %v6329_v37 = vld [vmem:[#allocation29_spill] sm:$0xff] }
 0x1a8   : > { %v6330_v10 = vld [vmem:[#allocation25_spill] sm:$0xff] }
 0x1a9   : > { %6315 = vst [vmem:[#allocation10_spill] sm:$0xff] %v5234_v5  ;;  %v1069_v16 = vadd.f32 %v6330_v10, %v730_v25  ;;  %v6336_v3 = vld [vmem:[#allocation33_spill] sm:$0xff]  ;;  %v6337_v25 = vld [vmem:[#allocation36_spill] sm:$0xff] }
 0x1aa   : > { %3963 = vmatmul.msk.f32.gmra.mxu0 %vm223_vm1, %v6317_v52  ;;  %3990 = vmatmul.msk.f32.gmra.mxu1 %vm223_vm1, %v6320_v15 }
 0x1ab   : > { %4057 = vmatmul.msk.f32.gmra.mxu3 %vm223_vm1, %v4812_v4  ;;  %4024 = vmatmul.msk.f32.gmra.mxu2 %vm223_vm1, %v6321_v19  ;;  %v820_v4 = vadd.f32 %v819_v11, %v6324_v24  ;;  %v1347_v19 = vadd.f32 %v6332_v43, %v1069_v16 }
 0x1ad   : > { %v1625_v40 = vadd.f32 %v5172_v48, %v1347_v19 }
 0x1ae   : > { %v1340_v28 = vpop.f32.mrf.mxu3  ;;  %v1065_v31 = vpop.f32.mrf.mxu2 }
 0x1af   : > { %v5250_v58 = vadd.f32 %v1340_v28, %v1098_v35  ;;  %v5252_v17 = vpop.f32.mrf.mxu0  ;;  %v1806_v44 = vpop.f32.mrf.mxu1  ;;  %v1099_v32 = vadd.f32 %v1065_v31, %v820_v4  ;;  %v6334_v28 = vld [vmem:[#allocation32_spill] sm:$0xff] }
 0x1b0   : > { %v1902_v11 = vadd.f32 %v1806_v44, %v1624_v36 }
 0x1b1   : > { %6323 = vst [vmem:[#allocation35_spill] sm:$0xff] %v5250_v58 }
 0x1b2   : > { %3964 = vmatmul.msk.f32.gmra.mxu0 %vm223_vm1, %v4950_v27  ;;  %3991 = vmatmul.msk.f32.gmra.mxu1 %vm223_vm1, %v6328_v50 }
 0x1b3   : > { %4058 = vmatmul.msk.f32.gmra.mxu3 %vm223_vm1, %v4834_v12  ;;  %4025 = vmatmul.msk.f32.gmra.mxu2 %vm223_vm1, %v6329_v37 }
 0x1b6   : > { %v1343_v9 = vpop.f32.mrf.mxu3  ;;  %v2085_v20 = vpop.f32.mrf.mxu2 }
 0x1b7   : > { %v5268_v35 = vadd.f32 %v1343_v9, %v1099_v32  ;;  %v5270_v12 = vpop.f32.mrf.mxu0  ;;  %v2181_v13 = vadd.f32 %v2085_v20, %v1902_v11  ;;  %v1809_v15 = vpop.f32.mrf.mxu1  ;;  %v5304_v9 = vld [vmem:[#allocation2 + $0x1c8] sm:$0xff] }
 0x1b8   : > { %v1903_v31 = vadd.f32 %v1809_v15, %v1625_v40  ;;  %v6340_v15 = vld [vmem:[#allocation39_spill] sm:$0xff] }
 0x1b9   : > { %6331 = vst [vmem:[#allocation13_spill] sm:$0xff] %v5268_v35 }
 0x1ba   : > { %3965 = vmatmul.msk.f32.gmra.mxu0 %vm223_vm1, %v5272_v22  ;;  %3992 = vmatmul.msk.f32.gmra.mxu1 %vm223_vm1, %v6333_v51 }
 0x1bb   : > { %4059 = vmatmul.msk.f32.gmra.mxu3 %vm223_vm1, %v4852_v47  ;;  %4026 = vmatmul.msk.f32.gmra.mxu2 %vm223_vm1, %v6334_v28  ;;  %v6335_v47 = vld [vmem:[#allocation31_spill] sm:$0xff] }
 0x1bc   : > { %v1626_v48 = vadd.f32 %v5184_v1, %v6335_v47  ;;  %v6338_v1 = vld [vmem:[#allocation34_spill] sm:$0xff] }
 0x1bd   : > { %v1627_v20 = vadd.f32 %v5197_v54, %v6338_v1  ;;  %v6341_v54 = vld [vmem:[#allocation38_spill] sm:$0xff] }
 0x1be   : > { %v2363_v24 = vpop.f32.mrf.mxu3  ;;  %v2088_v44 = vpop.f32.mrf.mxu2  ;;  %v6346_v1 = vld [vmem:[#allocation46_spill] sm:$0xff] }
 0x1bf   : > { %v5284_v4 = vadd.f32 %v2363_v24, %v2181_v13  ;;  %v5286_v60 = vpop.f32.mrf.mxu0  ;;  %v2182_v32 = vadd.f32 %v2088_v44, %v1903_v31  ;;  %v1812_v0 = vpop.f32.mrf.mxu1  ;;  %v6339_v13 = vld [vmem:[#allocation37_spill] sm:$0xff]  ;;  %v5320_v31 = vld [vmem:[#allocation2 + $0x1d0] sm:$0xff]  ;;  %v1628_v44 = vadd.f32 %v5210_v56, %v6341_v54  ;;  %v6348_v54 = vld [vmem:[#allocation47_spill] sm:$0xff] }
 0x1c0   : > { %v1904_v36 = vadd.f32 %v1812_v0, %v1626_v48  ;;  %v6343_v0 = vld [vmem:[#allocation43_spill] sm:$0xff] }
 0x1c2   : > { %3966 = vmatmul.msk.f32.gmra.mxu0 %vm223_vm1, %v5288_v46  ;;  %3993 = vmatmul.msk.f32.gmra.mxu1 %vm223_vm1, %v6336_v3 }
 0x1c3   : > { %4060 = vmatmul.msk.f32.gmra.mxu3 %vm223_vm1, %v4870_v30  ;;  %4027 = vmatmul.msk.f32.gmra.mxu2 %vm223_vm1, %v6337_v25 }
 0x1c6   : > { %v2366_v50 = vpop.f32.mrf.mxu3  ;;  %v2091_v10 = vpop.f32.mrf.mxu2 }
 0x1c7   : > { %v5300_v37 = vadd.f32 %v2366_v50, %v2182_v32  ;;  %v5302_v16 = vpop.f32.mrf.mxu0  ;;  %v2183_v11 = vadd.f32 %v2091_v10, %v1904_v36  ;;  %v1815_v30 = vpop.f32.mrf.mxu1  ;;  %v6342_v32 = vld [vmem:[#allocation40_spill] sm:$0xff]  ;;  %v1406_v50 = vld [vmem:[#allocation2 + $0x1e8] sm:$0xff] }
 0x1c8   : > { %v1905_v43 = vadd.f32 %v1815_v30, %v1627_v20  ;;  %v6345_v30 = vld [vmem:[#allocation44_spill] sm:$0xff] }
 0x1ca   : > { %3967 = vmatmul.msk.f32.gmra.mxu0 %vm223_vm1, %v5304_v9  ;;  %3994 = vmatmul.msk.f32.gmra.mxu1 %vm223_vm1, %v6339_v13 }
 0x1cb   : > { %4061 = vmatmul.msk.f32.gmra.mxu3 %vm223_vm1, %v6308_v38  ;;  %4028 = vmatmul.msk.f32.gmra.mxu2 %vm223_vm1, %v6340_v15 }
 0x1ce   : > { %v2369_v19 = vpop.f32.mrf.mxu3  ;;  %v2094_v51 = vpop.f32.mrf.mxu2 }
 0x1cf   : > { %v5316_v40 = vadd.f32 %v2369_v19, %v2183_v11  ;;  %v5318_v28 = vpop.f32.mrf.mxu0  ;;  %v2184_v24 = vadd.f32 %v2094_v51, %v1905_v43  ;;  %v1818_v38 = vpop.f32.mrf.mxu1  ;;  %v1407_v51 = vld [vmem:[#allocation2 + $0x1f0] sm:$0xff] }
 0x1d0   : > { %v1906_v47 = vadd.f32 %v1818_v38, %v1628_v44  ;;  %v6349_v44 = vld [vmem:[#allocation49_spill] sm:$0xff] }
 0x1d2   : > { %3968 = vmatmul.msk.f32.gmra.mxu0 %vm223_vm1, %v5320_v31  ;;  %3995 = vmatmul.msk.f32.gmra.mxu1 %vm223_vm1, %v6342_v32 }
 0x1d3   : > { %4062 = vmatmul.msk.f32.gmra.mxu3 %vm223_vm1, %v4918_v63  ;;  %4029 = vmatmul.msk.f32.gmra.mxu2 %vm223_vm1, %v6343_v0  ;;  %v6344_v63 = vld [vmem:[#allocation41_spill] sm:$0xff] }
 0x1d4   : > { %v1629_v56 = vadd.f32 %v5223_v26, %v6344_v63  ;;  %v6347_v26 = vld [vmem:[#allocation45_spill] sm:$0xff] }
 0x1d6   : > { %v2372_v48 = vpop.f32.mrf.mxu3  ;;  %v2097_v25 = vpop.f32.mrf.mxu2 }
 0x1d7   : > { %v5332_v3 = vadd.f32 %v2372_v48, %v2184_v24  ;;  %v5334_v36 = vpop.f32.mrf.mxu0  ;;  %v2185_v10 = vadd.f32 %v2097_v25, %v1906_v47  ;;  %v1821_v11 = vpop.f32.mrf.mxu1 }
 0x1d8   : > { %v1907_v20 = vadd.f32 %v1821_v11, %v1629_v56  ;;  %v6351_v56 = vld [vmem:[#allocation50_spill] sm:$0xff] }
 0x1da   : > { %3969 = vmatmul.msk.f32.gmra.mxu0 %vm223_vm1, %v1406_v50  ;;  %3996 = vmatmul.msk.f32.gmra.mxu1 %vm223_vm1, %v6345_v30 }
 0x1db   : > { %4063 = vmatmul.msk.f32.gmra.mxu3 %vm223_vm1, %v6317_v52  ;;  %4030 = vmatmul.msk.f32.gmra.mxu2 %vm223_vm1, %v6346_v1  ;;  %v1630_v52 = vadd.f32 %v5236_v55, %v6347_v26  ;;  %v6350_v55 = vld [vmem:[#allocation48_spill] sm:$0xff] }
 0x1dc   : > { %v1631_v63 = vadd.f32 %v5252_v17, %v6350_v55  ;;  %v6352_v17 = vld [vmem:[#allocation52_spill] sm:$0xff] }
 0x1de   : > { %v2375_v13 = vpop.f32.mrf.mxu3  ;;  %v2100_v43 = vpop.f32.mrf.mxu2 }
 0x1df   : > { %v5345_v15 = vadd.f32 %v2375_v13, %v2185_v10  ;;  %v5347_v19 = vpop.f32.mrf.mxu0  ;;  %v2186_v24 = vadd.f32 %v2100_v43, %v1907_v20  ;;  %v1824_v38 = vpop.f32.mrf.mxu1  ;;  %v1408_v10 = vld [vmem:[#allocation2 + $0x208] sm:$0xff] }
 0x1e0   : > { %v1908_v32 = vadd.f32 %v1824_v38, %v1630_v52  ;;  %v2491_v52 = vld [vmem:[#allocation2 + $0x49] sm:$0xff] }
 0x1e2   : > { %3970 = vmatmul.msk.f32.gmra.mxu0 %vm223_vm1, %v1407_v51  ;;  %3997 = vmatmul.msk.f32.gmra.mxu1 %vm223_vm1, %v6348_v54  ;;  %v6353_v54 = vld [vmem:[#allocation54_spill] sm:$0xff] }
 0x1e3   : > { %4064 = vmatmul.msk.f32.gmra.mxu3 %vm223_vm1, %v4950_v27  ;;  %4031 = vmatmul.msk.f32.gmra.mxu2 %vm223_vm1, %v6349_v44 }
 0x1e6   : > { %v2378_v0 = vpop.f32.mrf.mxu3  ;;  %v2103_v48 = vpop.f32.mrf.mxu2 }
 0x1e7   : > { %v5358_v47 = vadd.f32 %v2378_v0, %v2186_v24  ;;  %v5360_v25 = vpop.f32.mrf.mxu0  ;;  %v2187_v11 = vadd.f32 %v2103_v48, %v1908_v32  ;;  %v1827_v27 = vpop.f32.mrf.mxu1  ;;  %v1409_v24 = vld [vmem:[#allocation2 + $0x210] sm:$0xff]  ;;  %v6356_v32 = vld [vmem:[#allocation57_spill] sm:$0xff]  ;;  %v6357_v48 = vld [vmem:[#allocation59_spill] sm:$0xff] }
 0x1e8   : > { %v1909_v30 = vadd.f32 %v1827_v27, %v1631_v63  ;;  %v2493_v0 = vld [vmem:[#allocation2 + $0x69] sm:$0xff] }
 0x1e9   : > { %v6359_v27 = vld [vmem:[#allocation61_spill] sm:$0xff] }
 0x1ea   : > { %3971 = vmatmul.msk.f32.gmra.mxu0 %vm223_vm1, %v1408_v10  ;;  %3998 = vmatmul.msk.f32.gmra.mxu1 %vm223_vm1, %v6351_v56  ;;  %v2495_v56 = vld [vmem:[#allocation2 + $0x89] sm:$0xff] }
 0x1eb   : > { %4065 = vmatmul.msk.f32.gmra.mxu3 %vm223_vm1, %v5272_v22  ;;  %4032 = vmatmul.msk.f32.gmra.mxu2 %vm223_vm1, %v4980_v39 }
 0x1ee   : > { %v2381_v1 = vpop.f32.mrf.mxu3  ;;  %v2106_v13 = vpop.f32.mrf.mxu2 }
 0x1ef   : > { %v5371_v20 = vadd.f32 %v2381_v1, %v2187_v11  ;;  %v5373_v43 = vpop.f32.mrf.mxu0  ;;  %v2188_v38 = vadd.f32 %v2106_v13, %v1909_v30  ;;  %v2494_v11 = vld [vmem:[#allocation2 + $0x71] sm:$0xff]  ;;  %v5427_v55 = vpop.f32.mrf.mxu1 }
 0x1f0   : > { %v2496_v1 = vld [vmem:[#allocation2 + $0x91] sm:$0xff] }
 0x1f2   : > { %3972 = vmatmul.msk.f32.gmra.mxu0 %vm223_vm1, %v1409_v24  ;;  %3999 = vmatmul.msk.f32.gmra.mxu1 %vm223_vm1, %v6352_v17  ;;  %v5447_v17 = vld [vmem:[#allocation2 + $0x209] sm:$0xff] }
 0x1f3   : > { %4066 = vmatmul.msk.f32.gmra.mxu3 %vm223_vm1, %v5288_v46  ;;  %4033 = vmatmul.msk.f32.gmra.mxu2 %vm223_vm1, %v4994_v18  ;;  %v6354_v46 = vld [vmem:[#allocation56_spill] sm:$0xff]  ;;  %v2492_v18 = vld [vmem:[#allocation2 + $0x51] sm:$0xff] }
 0x1f6   : > { %v2384_v39 = vpop.f32.mrf.mxu3  ;;  %v5429_v63 = vpop.f32.mrf.mxu2 }
 0x1f7   : > { %v5382_v22 = vadd.f32 %v2384_v39, %v2188_v38  ;;  %v5384_v26 = vpop.f32.mrf.mxu0  ;;  %v5443_v13 = vpop.f32.mrf.mxu1  ;;  %v1965_v39 = vld [vmem:[#allocation2 + $0x227] sm:$0xff] }
 0x1fa   : > { %4077 = vmatmul.msk.f32.vlgmr.msra.gmra.mxu0 %vm223_vm1, %v2491_v52  ;;  %4000 = vmatmul.msk.f32.gmra.mxu1 %vm223_vm1, %v6353_v54  ;;  %v5458_v54 = vld [vmem:[#allocation2 + $0x211] sm:$0xff] }
 0x1fb   : > { %4067 = vmatmul.msk.f32.gmra.mxu3 %vm223_vm1, %v5304_v9  ;;  %4034 = vmatmul.msk.f32.gmra.mxu2 %vm223_vm1, %v6354_v46  ;;  %v1966_v46 = vld [vmem:[#allocation2 + $0x22f] sm:$0xff] }
 0x1fe   : > { %v5433_v30 = vpop.f32.mrf.mxu3  ;;  %v5445_v38 = vpop.f32.mrf.mxu2 }
 0x1ff   : > { %v5393_v44 = vpop.f32.mrf.mxu0 }
 0x200   : > { %6355 = vst [vmem:[#allocation16_spill] sm:$0xff] %v5393_v44 }
 0x202   : > { %4078 = vmatmul.msk.f32.gmra.mxu0 %vm223_vm1, %v2492_v18  ;;  %4001 = vmatmul.msk.f32.gmra.mxu1 %vm223_vm1, %v6356_v32  ;;  %v5460_v18 = vpop.f32.mrf.mxu1 }
 0x203   : > { %4068 = vmatmul.msk.f32.gmra.mxu3 %vm223_vm1, %v5320_v31  ;;  %4035 = vmatmul.msk.f32.gmra.mxu2 %vm223_vm1, %v5026_v59  ;;  %v2896_v59 = vld [vmem:[%s6197_s3 + $0x18] sm:$0xff] }
 0x204   : > { %3011 = vmatpush.msrb.mxu2 %v2896_v59 }
 0x206   : > { %v5449_v52 = vpop.f32.mrf.mxu3  ;;  %v5462_v32 = vpop.f32.mrf.mxu2  ;;  %3012 = vmatpush.msrb.mxu2 %v2895_v42  ;;  %v2503_v42 = vld [vmem:[#allocation2 + $0x109] sm:$0xff] }
 0x207   : > { %v5402_v9 = vpop.f32.mrf.mxu0 }
 0x20a   : > { %4079 = vmatmul.msk.f32.gmra.mxu0 %vm223_vm1, %v2493_v0  ;;  %4002 = vmatmul.msk.f32.gmra.mxu1 %vm223_vm1, %v6357_v48  ;;  %v2498_v48 = vld [vmem:[#allocation2 + $0xb1] sm:$0xff]  ;;  %v5475_v59 = vpop.f32.mrf.mxu1 }
 0x20b   : > { %4069 = vmatmul.msk.f32.gmra.mxu3 %vm223_vm1, %v1406_v50  ;;  %4036 = vmatmul.msk.f32.gmra.mxu2 %vm223_vm1, %v5040_v8  ;;  %v4132_v50 = vld [vmem:[%s6197_s3 + $0x58] sm:$0xff] }
 0x20c   : > { %v4112_v8 = vld [vmem:[%s6197_s3 + $0x38] sm:$0xff]  ;;  %3089 = vmatpush.msrb.mxu3 %v4132_v50 }
 0x20d   : > { %2946 = vmatpush.msrb.mxu1 %v4112_v8 }
 0x20e   : > { %v5477_v50 = vpop.f32.mrf.mxu2  ;;  %3090 = vmatpush.msrb.mxu3 %v4131_v7 }
 0x20f   : > { %v5410_v31 = vpop.f32.mrf.mxu0 }
 0x210   : > { %6358 = vst [vmem:[#allocation15_spill] sm:$0xff] %v5410_v31 }
 0x212   : > { %4080 = vmatmul.msk.f32.gmra.mxu0 %vm223_vm1, %v2494_v11  ;;  %4003 = vmatmul.msk.f32.gmra.mxu1 %vm223_vm1, %v6359_v27  ;;  %v2244_v11 = vld [vmem:[#allocation2 + $0x230] sm:$0xff] }
 0x213   : > { %4070 = vmatmul.msk.f32.gmra.mxu3 %vm223_vm1, %v1407_v51  ;;  %4037 = vmatmul.msk.f32.gmra.mxu2 %vm223_vm1, %v5054_v33 }
 0x217   : > { %v5431_v51 = vpop.f32.mrf.mxu0 }
 0x218   : > { %6360 = vst [vmem:[#allocation19_spill] sm:$0xff] %v5431_v51 }
 0x21a   : > { %4081 = vmatmul.msk.f32.gmra.mxu0 %vm223_vm1, %v2495_v56  ;;  %4004 = vmatmul.msk.f32.gmra.mxu1 %vm223_vm1, %v5056_v34  ;;  %v2499_v56 = vld [vmem:[#allocation2 + $0xc9] sm:$0xff] }
 0x21b   : > { %4071 = vmatmul.msk.f32.gmra.mxu3 %vm223_vm1, %v1408_v10  ;;  %4038 = vmatmul.msk.f32.gmra.mxu2 %vm223_vm1, %v5068_v29  ;;  %v2497_v29 = vld [vmem:[#allocation2 + $0xa9] sm:$0xff] }
 0x21c   : > { %v2243_v10 = vld [vmem:[#allocation2 + $0x228] sm:$0xff] }
 0x21f   : > { %v5441_v33 = vpop.f32.mrf.mxu0 }
 0x220   : > { %6361 = vst [vmem:[#allocation21_spill] sm:$0xff] %v5441_v33 }
 0x222   : > { %4082 = vmatmul.msk.f32.gmra.mxu0 %vm223_vm1, %v2496_v1  ;;  %4005 = vmatmul.msk.f32.gmra.mxu1 %vm223_vm1, %v5447_v17  ;;  %v5484_v1 = vpop.f32.mrf.mxu1 }
 0x223   : > { %4072 = vmatmul.msk.f32.gmra.mxu3 %vm223_vm1, %v1409_v24  ;;  %4039 = vmatmul.msk.f32.gmra.mxu2 %vm223_vm1, %v1965_v39  ;;  %v5469_v24 = vpop.f32.mrf.mxu3  ;;  %v5486_v39 = vpop.f32.mrf.mxu2 }
 0x227   : > { %v5456_v34 = vpop.f32.mrf.mxu0 }
 0x228   : > { %6362 = vst [vmem:[#allocation12_spill] sm:$0xff] %v5456_v34 }
 0x22a   : > { %4083 = vmatmul.msk.f32.gmra.mxu0 %vm223_vm1, %v2497_v29  ;;  %4006 = vmatmul.msk.f32.gmra.mxu1 %vm223_vm1, %v5458_v54  ;;  %v5495_v35 = vpop.f32.mrf.mxu1 }
 0x22b   : > { %4073 = vmatmul.msk.f32.gmra.mxu3 %vm223_vm1, %v2243_v10  ;;  %4040 = vmatmul.msk.f32.gmra.mxu2 %vm223_vm1, %v1966_v46  ;;  %v5479_v8 = vpop.f32.mrf.mxu3  ;;  %v2500_v10 = vld [vmem:[#allocation2 + $0xd1] sm:$0xff]  ;;  %v5497_v5 = vpop.f32.mrf.mxu2 }
 0x22f   : > { %v5471_v0 = vpop.f32.mrf.mxu0 }
 0x230   : > { %6363 = vst [vmem:[#allocation42_spill] sm:$0xff] %v5471_v0  ;;  %v2504_v0 = vld [vmem:[#allocation2 + $0x111] sm:$0xff] }
 0x232   : > { %4084 = vmatmul.msk.f32.gmra.mxu0 %vm223_vm1, %v2498_v48 }
 0x233   : > { %4074 = vmatmul.msk.f32.gmra.mxu3 %vm223_vm1, %v2244_v11  ;;  %v5490_v46 = vpop.f32.mrf.mxu3  ;;  %v2501_v11 = vld [vmem:[#allocation2 + $0xe9] sm:$0xff] }
 0x237   : > { %v5481_v27 = vpop.f32.mrf.mxu0 }
 0x238   : > { %6364 = vst [vmem:[#allocation8_spill] sm:$0xff] %v5481_v27 }
 0x23a   : > { %4085 = vmatmul.msk.f32.gmra.mxu0 %vm223_vm1, %v2499_v56 }
 0x23b   : > { %v5499_v58 = vpop.f32.mrf.mxu3 }
 0x23f   : > { %v5488_v29 = vpop.f32.mrf.mxu0 }
 0x240   : > { %6365 = vst [vmem:[#allocation18_spill] sm:$0xff] %v5488_v29  ;;  %v5509_v29 = vpop.f32.mrf.mxu2 }
 0x242   : > { %4086 = vmatmul.msk.f32.gmra.mxu0 %vm223_vm1, %v2500_v10  ;;  %v5507_v10 = vpop.f32.mrf.mxu1 }
 0x247   : > { %v5493_v48 = vpop.f32.mrf.mxu0 }
 0x248   : > { %6366 = vst [vmem:[#allocation23_spill] sm:$0xff] %v5493_v48 }
 0x24a   : > { %4087 = vmatmul.msk.f32.gmra.mxu0 %vm223_vm1, %v2501_v11  ;;  %v4111_v11 = vld [vmem:[%s6197_s3 + $0x30] sm:$0xff]  ;;  %v5523_v14 = vpop.f32.mrf.mxu1 }
 0x24b   : > { %2947 = vmatpush.msrb.mxu1 %v4111_v11 }
 0x24f   : > { %v5502_v56 = vpop.f32.mrf.mxu0 }
 0x250   : > { %6367 = vst [vmem:[#allocation26_spill] sm:$0xff] %v5502_v56  ;;  %v5518_v56 = vpop.f32.mrf.mxu3 }
 0x252   : > { %4088 = vmatmul.msk.f32.gmra.mxu0 %vm223_vm1, %v2502_v62  ;;  %v5525_v62 = vpop.f32.mrf.mxu2  ;;  %v5532_v7 = vpop.f32.mrf.mxu1 }
 0x257   : > { %v5520_v48 = vpop.f32.mrf.mxu0 }
 0x258   : > { %6368 = vst [vmem:[#allocation20_spill] sm:$0xff] %v5520_v48  ;;  %v5527_v27 = vpop.f32.mrf.mxu3  ;;  %v2505_v48 = vld [vmem:[#allocation2 + $0x129] sm:$0xff] }
 0x25a   : > { %4089 = vmatmul.msk.f32.gmra.mxu0 %vm223_vm1, %v2503_v42  ;;  %v5534_v11 = vpop.f32.mrf.mxu2  ;;  %v6372_v42 = vmov 0.0   ;;  %v5547_v57 = vpop.f32.mrf.mxu1 }
 0x25b   : > { %2853 = vst.msk [vmem:[#allocation4 + $0x7] sm:$0xff] %vm2785_vm4, %v6372_v42 }
 0x25c   : > { %2857 = vst.msk [vmem:[#allocation4 + $0xdf] sm:$0xff] %vm2785_vm4, %v6372_v42 }
 0x25d   : > { %6374 = vst [vmem:[#allocation27_spill] sm:$0xff] %v5547_v57  ;;  %v2508_v57 = vld [vmem:[#allocation2 + $0x151] sm:$0xff] }
 0x25e   : > { %2855 = vst.msk [vmem:[#allocation4 + $0xf] sm:$0x3] %vm2854_vm5, %v6372_v42 }
 0x25f   : > { %v5529_v6 = vpop.f32.mrf.mxu0  ;;  %2858 = vst.msk [vmem:[#allocation4 + $0xe7] sm:$0x3] %vm2854_vm5, %v6372_v42 }
 0x260   : > { %6369 = vst [vmem:[#allocation17_spill] sm:$0xff] %v5529_v6  ;;  %v5538_v33 = vpop.f32.mrf.mxu3 }
 0x261   : > { %6371 = vst [vmem:[#allocation14_spill] sm:$0xff] %v5538_v33  ;;  %v4129_v33 = vld [vmem:[%s6197_s3 + $0x40] sm:$0xff] }
 0x262   : > { %4090 = vmatmul.msk.f32.gmra.mxu0 %vm223_vm1, %v2504_v0  ;;  %v2506_v0 = vld [vmem:[#allocation2 + $0x131] sm:$0xff]  ;;  %v5549_v34 = vpop.f32.mrf.mxu2  ;;  %v5556_v51 = vpop.f32.mrf.mxu1  ;;  %v2885_v44 = vld [vmem:[#allocation4 + $0x7] sm:$0xff]  ;;  %2861 = vst.msk [vmem:[#allocation4 + $0x1f] sm:$0x1] %vm2860_vm6, %v6372_v42 }
 0x263   : > { %6375 = vst [vmem:[#allocation29_spill] sm:$0xff] %v5549_v34  ;;  %v4130_v34 = vld [vmem:[%s6197_s3 + $0x48] sm:$0xff] }
 0x264   : > { %3091 = vmatpush.msrb.mxu3 %v4130_v34  ;;  %2862 = vst.msk [vmem:[#allocation4 + $0x37] sm:$0x1] %vm2860_vm6, %v6372_v42 }
 0x265   : > { %v2897_v49 = vld [vmem:[#allocation4 + $0x8] sm:$0xff]  ;;  %2863 = vst.msk [vmem:[#allocation4 + $0x4f] sm:$0x1] %vm2860_vm6, %v6372_v42 }
 0x266   : > { %3092 = vmatpush.msrb.mxu3 %v4129_v33  ;;  %2864 = vst.msk [vmem:[#allocation4 + $0x67] sm:$0x1] %vm2860_vm6, %v6372_v42  ;;  %v2509_v33 = vld [vmem:[#allocation2 + $0x169] sm:$0xff] }
 0x267   : > { %v5536_v2 = vpop.f32.mrf.mxu0  ;;  %2865 = vst.msk [vmem:[#allocation4 + $0x7f] sm:$0x1] %vm2860_vm6, %v6372_v42 }
 0x268   : > { %6370 = vst [vmem:[#allocation24_spill] sm:$0xff] %v5536_v2  ;;  %v5551_v2 = vpop.f32.mrf.mxu3 }
 0x269   : > { %6376 = vst [vmem:[#allocation25_spill] sm:$0xff] %v5551_v2  ;;  %v4110_v2 = vld [vmem:[%s6197_s3 + $0x28] sm:$0xff] }
 0x26a   : > { %4091 = vmatmul.msk.f32.gmra.mxu0 %vm223_vm1, %v2505_v48  ;;  %v2507_v48 = vld [vmem:[#allocation2 + $0x149] sm:$0xff]  ;;  %v5558_v53 = vpop.f32.mrf.mxu2  ;;  %2948 = vmatpush.msrb.mxu1 %v4110_v2  ;;  %2866 = vst.msk [vmem:[#allocation4 + $0x97] sm:$0x1] %vm2860_vm6, %v6372_v42 }
 0x26b   : > { %v3040_v2 = vld [vmem:[#allocation4 + $0x9] sm:$0xff]  ;;  %2867 = vst.msk [vmem:[#allocation4 + $0xaf] sm:$0x1] %vm2860_vm6, %v6372_v42 }
 0x26c   : > { %4133 = vmatmul.msk.f32.vlgmr.msrb.gmra.mxu3 %vm2785_vm4, %v3040_v2  ;;  %2868 = vst.msk [vmem:[#allocation4 + $0xc7] sm:$0x1] %vm2860_vm6, %v6372_v42  ;;  %v2510_v2 = vld [vmem:[#allocation2 + $0x171] sm:$0xff] }
 0x26d   : > { %2869 = vst.msk [vmem:[#allocation4 + $0x28] sm:$0x1] %vm2860_vm6, %v6372_v42 }
 0x26e   : > { %2870 = vst.msk [vmem:[#allocation4 + $0x40] sm:$0x1] %vm2860_vm6, %v6372_v42 }
 0x26f   : > { %v5545_v6 = vpop.f32.mrf.mxu0  ;;  %2871 = vst.msk [vmem:[#allocation4 + $0x58] sm:$0x1] %vm2860_vm6, %v6372_v42 }
 0x270   : > { %6373 = vst [vmem:[#allocation22_spill] sm:$0xff] %v5545_v6  ;;  %v5561_v6 = vpop.f32.mrf.mxu3 }
 0x271   : > { %6377 = vst [vmem:[#allocation28_spill] sm:$0xff] %v5561_v6  ;;  %v2893_v6 = vld [vmem:[%s6197_s3] sm:$0xff] }
 0x272   : > { %4092 = vmatmul.msk.f32.gmra.mxu0 %vm223_vm1, %v2506_v0  ;;  %v2894_v0 = vld [vmem:[%s6197_s3 + $0x8] sm:$0xff]  ;;  %2872 = vst.msk [vmem:[#allocation4 + $0x70] sm:$0x1] %vm2860_vm6, %v6372_v42 }
 0x273   : > { %3013 = vmatpush.msrb.mxu2 %v2894_v0  ;;  %2873 = vst.msk [vmem:[#allocation4 + $0x88] sm:$0x1] %vm2860_vm6, %v6372_v42 }
 0x274   : > { %2874 = vst.msk [vmem:[#allocation4 + $0xa0] sm:$0x1] %vm2860_vm6, %v6372_v42 }
 0x275   : > { %3014 = vmatpush.msrb.mxu2 %v2893_v6  ;;  %v5593_v6 = vpop.f32.mrf.mxu1  ;;  %2875 = vst.msk [vmem:[#allocation4 + $0xb8] sm:$0x1] %vm2860_vm6, %v6372_v42 }
 0x276   : > { %4121 = vmatmul.msk.f32.vlgmr.msrb.gmra.mxu2 %vm2785_vm4, %v2885_v44  ;;  %2876 = vst.msk [vmem:[#allocation4 + $0xd0] sm:$0x1] %vm2860_vm6, %v6372_v42 }
 0x277   : > { %v2641_v61 = vpop.f32.mrf.mxu0 }
 0x278   : > { %v5601_v44 = vpop.f32.mrf.mxu3  ;;  %v2737_v34 = vadd.f32 %v2641_v61, %v5284_v4 }
 0x279   : > { %6379 = vst [vmem:[#allocation32_spill] sm:$0xff] %v5601_v44 }
 0x27a   : > { %4093 = vmatmul.msk.f32.gmra.mxu0 %vm223_vm1, %v2507_v48  ;;  %v4109_v48 = vld [vmem:[%s6197_s3 + $0x20] sm:$0xff] }
 0x27b   : > { %2949 = vmatpush.msrb.mxu1 %v4109_v48 }
 0x27c   : > { %4113 = vmatmul.msk.f32.vlgmr.msrb.gmra.mxu1 %vm2785_vm4, %v2897_v49  ;;  %v5595_v49 = vpop.f32.mrf.mxu2 }
 0x27d   : > { %6378 = vst [vmem:[#allocation30_spill] sm:$0xff] %v5595_v49  ;;  %v5621_v61 = vpop.f32.mrf.mxu1 }
 0x27e   : > { %6380 = vst [vmem:[#allocation31_spill] sm:$0xff] %v5621_v61 }
 0x27f   : > { %v2644_v31 = vpop.f32.mrf.mxu0 }
 0x282   : > { %4094 = vmatmul.msk.f32.gmra.mxu0 %vm223_vm1, %v2508_v57 }
 0x284   : > { %v5623_v4 = vpop.f32.mrf.mxu2 }
 0x285   : > { %6381 = vst [vmem:[#allocation33_spill] sm:$0xff] %v5623_v4  ;;  %v2511_v4 = vld [vmem:[#allocation2 + $0x189] sm:$0xff]  ;;  %v5637_v61 = vpop.f32.mrf.mxu1 }
 0x286   : > { %6383 = vst [vmem:[#allocation34_spill] sm:$0xff] %v5637_v61 }
 0x287   : > { %v2647_v57 = vpop.f32.mrf.mxu0 }
 0x288   : > { %v2739_v0 = vadd.f32 %v2647_v57, %v5316_v40  ;;  %v5629_v57 = vpop.f32.mrf.mxu3 }
 0x289   : > { %6382 = vst [vmem:[#allocation36_spill] sm:$0xff] %v5629_v57 }
 0x28a   : > { %v2769_v48 = vmax.f32 %v2737_v34, %v2739_v0  ;;  %4095 = vmatmul.msk.f32.gmra.mxu0 %vm223_vm1, %v2509_v33  ;;  %v2738_v33 = vadd.f32 %v2644_v31, %v5300_v37  ;;  %v5647_v37 = vld [vmem:[%s6196_s2] ss:$0 sm:$0xff] }
 0x28c   : > { %2786 = vst.msk [vmem:[#allocation3] sm:$0xff] %vm2785_vm4, %v2769_v48  ;;  %v5639_v44 = vpop.f32.mrf.mxu2 }
 0x28d   : > { %6384 = vst [vmem:[#allocation37_spill] sm:$0xff] %v5639_v44 }
 0x28f   : > { %v2650_v40 = vpop.f32.mrf.mxu0 }
 0x290   : > { %v2740_v34 = vadd.f32 %v2650_v40, %v5332_v3  ;;  %v5641_v49 = vpop.f32.mrf.mxu3 }
 0x291   : > { %6385 = vst [vmem:[#allocation39_spill] sm:$0xff] %v5641_v49  ;;  %v2513_v49 = vld [vmem:[#allocation2 + $0x1a9] sm:$0xff] }
 0x292   : > { %v2770_v0 = vmax.f32 %v2738_v33, %v2740_v34  ;;  %4096 = vmatmul.msk.f32.gmra.mxu0 %vm223_vm1, %v2510_v2  ;;  %v2512_v33 = vld [vmem:[#allocation2 + $0x191] sm:$0xff]  ;;  %v5651_v34 = vpop.f32.mrf.mxu1 }
 0x294   : > { %2787 = vst.msk [vmem:[#allocation3 + $0x8] sm:$0xff] %vm2785_vm4, %v2770_v0  ;;  %v5653_v0 = vpop.f32.mrf.mxu2 }
 0x297   : > { %v2653_v48 = vpop.f32.mrf.mxu0 }
 0x29a   : > { %4097 = vmatmul.msk.f32.gmra.mxu0 %vm223_vm1, %v2511_v4  ;;  %v5656_v4 = vpop.f32.mrf.mxu3 }
 0x29b   : > { %v2802_v3 = vld [vmem:[#allocation3] ss:$2 sm:$0xff]  ;;  %v2818_v31 = vld [vmem:[#allocation3 + $0x1] ss:$2 sm:$0xff]  ;;  %6386 = vst [vmem:[#allocation38_spill] sm:$0xff] %v5656_v4 }
 0x29c   : > { %v2833_v42 = vmax.f32 %v2802_v3, %v2818_v31  ;;  %v2741_v31 = vadd.f32 %v2653_v48, %v5345_v15  ;;  %v5675_v4 = vpop.f32.mrf.mxu2 }
 0x29d   : > { %6390 = vst [vmem:[#allocation44_spill] sm:$0xff] %v5675_v4 }
 0x29e   : > { %v2845_v40 = vadd.f32 %v5647_v37, %v2833_v42 }
 0x29f   : > { %v2656_v2 = vpop.f32.mrf.mxu0 }
 0x2a0   : > { %2877 = vst.msk [vmem:[#allocation4 + $0x20] sm:$0xff] %vm2785_vm4, %v2845_v40  ;;  %v2742_v48 = vadd.f32 %v2656_v2, %v5358_v47  ;;  %v6395_v2 = vld [vmem:[#allocation51_spill] sm:$0xff] }
 0x2a2   : > { %4098 = vmatmul.msk.f32.gmra.mxu0 %vm223_vm1, %v2512_v33  ;;  %v5673_v33 = vpop.f32.mrf.mxu1  ;;  %v5678_v15 = vpop.f32.mrf.mxu3 }
 0x2a3   : > { %6391 = vst [vmem:[#allocation46_spill] sm:$0xff] %v5678_v15 }
 0x2a7   : > { %v2659_v44 = vpop.f32.mrf.mxu0  ;;  %v5658_v61 = vld [vmem:[#allocation4 + $0x20] sm:$0xff] }
 0x2a8   : > { %6387 = vst [vmem:[#allocation40_spill] sm:$0xff] %v5658_v61  ;;  %v5660_v57 = vld [vmem:[#allocation4 + $0x1f] sm:$0xff]  ;;  %v2743_v42 = vadd.f32 %v2659_v44, %v5371_v20  ;;  %4114 = vmatmul.msk.f32.gmra.mxu1 %vm2785_vm4, %v5658_v61  ;;  %v2514_v44 = vld [vmem:[#allocation2 + $0x1b1] sm:$0xff] }
 0x2a9   : > { %6388 = vst [vmem:[#allocation43_spill] sm:$0xff] %v5660_v57  ;;  %v5662_v3 = vld [vmem:[#allocation4 + $0x21] sm:$0xff]  ;;  %4122 = vmatmul.msk.f32.gmra.mxu2 %vm2785_vm4, %v5660_v57 }
 0x2aa   : > { %6389 = vst [vmem:[#allocation41_spill] sm:$0xff] %v5662_v3  ;;  %4134 = vmatmul.msk.f32.gmra.mxu3 %vm2785_vm4, %v5662_v3  ;;  %v2771_v40 = vmax.f32 %v2741_v31, %v2743_v42  ;;  %4099 = vmatmul.msk.f32.gmra.mxu0 %vm223_vm1, %v2513_v49  ;;  %v5684_v49 = vpop.f32.mrf.mxu1  ;;  %v5686_v31 = vpop.f32.mrf.mxu2  ;;  %v2515_v3 = vld [vmem:[#allocation2 + $0x1c9] sm:$0xff] }
 0x2ab   : > { %6392 = vst [vmem:[#allocation45_spill] sm:$0xff] %v5684_v49 }
 0x2ac   : > { %2788 = vst.msk [vmem:[#allocation3 + $0x10] sm:$0xff] %vm2785_vm4, %v2771_v40  ;;  %v5688_v40 = vpop.f32.mrf.mxu3 }
 0x2ad   : > { %6393 = vst [vmem:[#allocation47_spill] sm:$0xff] %v5686_v31 }
 0x2ae   : > { %6394 = vst [vmem:[#allocation49_spill] sm:$0xff] %v5688_v40 }
 0x2af   : > { %v2662_v20 = vpop.f32.mrf.mxu0 }
 0x2b0   : > { %v2744_v61 = vadd.f32 %v2662_v20, %v5382_v22  ;;  %v1632_v22 = vadd.f32 %v5270_v12, %v6395_v2 }
 0x2b2   : > { %v2772_v57 = vmax.f32 %v2742_v48, %v2744_v61  ;;  %4100 = vmatmul.msk.f32.gmra.mxu0 %vm223_vm1, %v2514_v44  ;;  %v6396_v61 = vld [vmem:[#allocation55_spill] sm:$0xff]  ;;  %v1910_v31 = vadd.f32 %v5427_v55, %v1632_v22  ;;  %v5698_v40 = vpop.f32.mrf.mxu1  ;;  %v6398_v55 = vld [vmem:[#allocation58_spill] sm:$0xff] }
 0x2b3   : > { %v1634_v20 = vadd.f32 %v5302_v16, %v6396_v61  ;;  %v2516_v48 = vld [vmem:[#allocation2 + $0x1d1] sm:$0xff]  ;;  %v6397_v16 = vld [vmem:[#allocation53_spill] sm:$0xff] }
 0x2b4   : > { %2789 = vst.msk [vmem:[#allocation3 + $0x18] sm:$0xff] %vm2785_vm4, %v2772_v57  ;;  %v2517_v61 = vld [vmem:[#allocation2 + $0x1e9] sm:$0xff] }
 0x2b5   : > { %v1912_v49 = vadd.f32 %v5460_v18, %v1634_v20  ;;  %v1635_v18 = vadd.f32 %v5318_v28, %v6398_v55 }
 0x2b7   : > { %v2665_v42 = vpop.f32.mrf.mxu0  ;;  %v2191_v12 = vadd.f32 %v5462_v32, %v1912_v49 }
 0x2b9   : > { %v2469_v22 = vadd.f32 %v5469_v24, %v2191_v12 }
 0x2ba   : > { %4101 = vmatmul.msk.f32.gmra.mxu0 %vm223_vm1, %v2515_v3  ;;  %v5700_v3 = vpop.f32.mrf.mxu2 }
 0x2bb   : > { %v2804_v15 = vld [vmem:[#allocation3 + $0x10] ss:$2 sm:$0xff]  ;;  %v2820_v4 = vld [vmem:[#allocation3 + $0x11] ss:$2 sm:$0xff] }
 0x2bc   : > { %v2834_v47 = vmax.f32 %v2804_v15, %v2820_v4  ;;  %v2189_v4 = vadd.f32 %v5429_v63, %v1910_v31  ;;  %v5705_v15 = vpop.f32.mrf.mxu3 }
 0x2be   : > { %v2846_v57 = vadd.f32 %v5647_v37, %v2834_v47  ;;  %v1633_v47 = vadd.f32 %v5286_v60, %v6397_v16  ;;  %v2467_v2 = vadd.f32 %v5433_v30, %v2189_v4 }
 0x2bf   : > { %v2668_v44 = vpop.f32.mrf.mxu0 }
 0x2c0   : > { %2878 = vst.msk [vmem:[#allocation4 + $0x38] sm:$0xff] %vm2785_vm4, %v2846_v57  ;;  %v1911_v20 = vadd.f32 %v5443_v13, %v1633_v47  ;;  %v1913_v57 = vadd.f32 %v5475_v59, %v1635_v18  ;;  %v2745_v60 = vadd.f32 %v2665_v42, %v2467_v2  ;;  %v5730_v13 = vpop.f32.mrf.mxu1  ;;  %v2518_v47 = vld [vmem:[#allocation2 + $0x1f1] sm:$0xff] }
 0x2c2   : > { %4102 = vmatmul.msk.f32.gmra.mxu0 %vm223_vm1, %v2516_v48  ;;  %v2190_v28 = vadd.f32 %v5445_v38, %v1911_v20  ;;  %v2192_v30 = vadd.f32 %v5477_v50, %v1913_v57  ;;  %v5732_v24 = vpop.f32.mrf.mxu2  ;;  %v6400_v57 = vld [vmem:[#allocation63_spill] sm:$0xff] }
 0x2c4   : > { %v5735_v42 = vpop.f32.mrf.mxu3  ;;  %v2468_v4 = vadd.f32 %v5449_v52, %v2190_v28  ;;  %v2470_v12 = vadd.f32 %v5479_v8, %v2192_v30 }
 0x2c6   : > { %v2746_v38 = vadd.f32 %v2668_v44, %v2468_v4  ;;  %v6399_v44 = vld [vmem:[#allocation60_spill] sm:$0xff] }
 0x2c7   : > { %v2671_v63 = vpop.f32.mrf.mxu0  ;;  %v5715_v31 = vld [vmem:[#allocation4 + $0x38] sm:$0xff] }
 0x2c8   : > { %v5717_v32 = vld [vmem:[#allocation4 + $0x37] sm:$0xff]  ;;  %v2747_v48 = vadd.f32 %v2671_v63, %v2469_v22  ;;  %4115 = vmatmul.msk.f32.gmra.mxu1 %vm2785_vm4, %v5715_v31  ;;  %v5741_v18 = vpop.f32.mrf.mxu1  ;;  %v1636_v63 = vadd.f32 %v5334_v36, %v6399_v44 }
 0x2c9   : > { %v5719_v49 = vld [vmem:[#allocation4 + $0x39] sm:$0xff]  ;;  %4123 = vmatmul.msk.f32.gmra.mxu2 %vm2785_vm4, %v5717_v32 }
 0x2ca   : > { %4135 = vmatmul.msk.f32.gmra.mxu3 %vm2785_vm4, %v5719_v49  ;;  %v2773_v59 = vmax.f32 %v2745_v60, %v2747_v48  ;;  %4103 = vmatmul.msk.f32.gmra.mxu0 %vm223_vm1, %v2517_v61  ;;  %v5743_v2 = vpop.f32.mrf.mxu2  ;;  %v1638_v60 = vadd.f32 %v5360_v25, %v6400_v57  ;;  %v1914_v4 = vadd.f32 %v5484_v1, %v1636_v63  ;;  %v6401_v25 = vld [vmem:[#allocation62_spill] sm:$0xff] }
 0x2cb   : > { %v2522_v57 = vld [vmem:[#allocation2 + $0x231] sm:$0xff] }
 0x2cc   : > { %2790 = vst.msk [vmem:[#allocation3 + $0x20] sm:$0xff] %vm2785_vm4, %v2773_v59  ;;  %v5746_v22 = vpop.f32.mrf.mxu3  ;;  %v2193_v36 = vadd.f32 %v5486_v39, %v1914_v4 }
 0x2ce   : > { %v2471_v1 = vadd.f32 %v5490_v46, %v2193_v36 }
 0x2cf   : > { %v2674_v16 = vpop.f32.mrf.mxu0 }
 0x2d0   : > { %v2748_v55 = vadd.f32 %v2674_v16, %v2470_v12  ;;  %v5754_v48 = vpop.f32.mrf.mxu1 }
 0x2d2   : > { %v2774_v50 = vmax.f32 %v2746_v38, %v2748_v55  ;;  %4104 = vmatmul.msk.f32.gmra.mxu0 %vm223_vm1, %v2518_v47  ;;  %v5756_v28 = vpop.f32.mrf.mxu2  ;;  %v1637_v47 = vadd.f32 %v5347_v19, %v6401_v25  ;;  %v1639_v38 = vadd.f32 %v5373_v43, %v5078_v23  ;;  %v2521_v55 = vld [vmem:[#allocation2 + $0x229] sm:$0xff] }
 0x2d4   : > { %2791 = vst.msk [vmem:[#allocation3 + $0x28] sm:$0xff] %vm2785_vm4, %v2774_v50  ;;  %v5761_v12 = vpop.f32.mrf.mxu3  ;;  %v1915_v50 = vadd.f32 %v5495_v35, %v1637_v47  ;;  %v1640_v47 = vadd.f32 %v5384_v26, %v5088_v21  ;;  %v6402_v26 = vld [vmem:[#allocation16_spill] sm:$0xff] }
 0x2d6   : > { %v2194_v35 = vadd.f32 %v5497_v5, %v1915_v50  ;;  %v1918_v50 = vadd.f32 %v5532_v7, %v1640_v47  ;;  %v6406_v7 = vld [vmem:[#allocation28_spill] sm:$0xff]  ;;  %v6408_v47 = vld [vmem:[#allocation29_spill] sm:$0xff] }
 0x2d7   : > { %v2677_v61 = vpop.f32.mrf.mxu0 }
 0x2d8   : > { %v5782_v19 = vpop.f32.mrf.mxu1  ;;  %v2749_v23 = vadd.f32 %v2677_v61, %v2471_v1  ;;  %v2472_v61 = vadd.f32 %v5499_v58, %v2194_v35  ;;  %v6403_v35 = vld [vmem:[#allocation64_spill] sm:$0xff] }
 0x2da   : > { %4105 = vmatmul.msk.f32.gmra.mxu0 %vm223_vm1, %v5447_v17  ;;  %v1916_v17 = vadd.f32 %v5507_v10, %v1638_v60 }
 0x2db   : > { %v2806_v52 = vld [vmem:[#allocation3 + $0x20] ss:$2 sm:$0xff]  ;;  %v2822_v8 = vld [vmem:[#allocation3 + $0x21] ss:$2 sm:$0xff] }
 0x2dc   : > { %v2835_v20 = vmax.f32 %v2806_v52, %v2822_v8  ;;  %v2195_v16 = vadd.f32 %v5509_v29, %v1916_v17 }
 0x2de   : > { %v2847_v30 = vadd.f32 %v5647_v37, %v2835_v20  ;;  %v2473_v10 = vadd.f32 %v5518_v56, %v2195_v16  ;;  %v5784_v20 = vpop.f32.mrf.mxu2 }
 0x2df   : > { %v2680_v59 = vpop.f32.mrf.mxu0 }
 0x2e0   : > { %2879 = vst.msk [vmem:[#allocation4 + $0x50] sm:$0xff] %vm2785_vm4, %v2847_v30  ;;  %v2750_v60 = vadd.f32 %v2680_v59, %v2472_v61  ;;  %v5800_v4 = vpop.f32.mrf.mxu1  ;;  %v6405_v61 = vld [vmem:[#allocation14_spill] sm:$0xff] }
 0x2e2   : > { %4106 = vmatmul.msk.f32.gmra.mxu0 %vm223_vm1, %v5458_v54  ;;  %v1917_v54 = vadd.f32 %v5523_v14, %v1639_v38  ;;  %v5794_v14 = vpop.f32.mrf.mxu3  ;;  %v1642_v38 = vadd.f32 %v5402_v9, %v5108_v45  ;;  %v1641_v45 = vadd.f32 %v6402_v26, %v5098_v41 }
 0x2e4   : > { %v2196_v46 = vadd.f32 %v5525_v62, %v1917_v54  ;;  %v2197_v54 = vadd.f32 %v5534_v11, %v1918_v50 }
 0x2e6   : > { %v2474_v44 = vadd.f32 %v5527_v27, %v2196_v46  ;;  %v5802_v5 = vpop.f32.mrf.mxu2  ;;  %v6404_v46 = vld [vmem:[#allocation15_spill] sm:$0xff] }
 0x2e7   : > { %v2683_v52 = vpop.f32.mrf.mxu0  ;;  %v5775_v39 = vld [vmem:[#allocation4 + $0x50] sm:$0xff] }
 0x2e8   : > { %v5777_v29 = vld [vmem:[#allocation4 + $0x4f] sm:$0xff]  ;;  %v2751_v43 = vadd.f32 %v2683_v52, %v2473_v10  ;;  %4116 = vmatmul.msk.f32.gmra.mxu1 %vm2785_vm4, %v5775_v39  ;;  %v5808_v25 = vpop.f32.mrf.mxu1  ;;  %v1920_v52 = vadd.f32 %v5556_v51, %v1642_v38 }
 0x2e9   : > { %v5779_v8 = vld [vmem:[#allocation4 + $0x51] sm:$0xff]  ;;  %4124 = vmatmul.msk.f32.gmra.mxu2 %vm2785_vm4, %v5777_v29 }
 0x2ea   : > { %4136 = vmatmul.msk.f32.gmra.mxu3 %vm2785_vm4, %v5779_v8  ;;  %v2775_v56 = vmax.f32 %v2749_v23, %v2751_v43  ;;  %4107 = vmatmul.msk.f32.gmra.mxu0 %vm223_vm1, %v2521_v55  ;;  %v5805_v17 = vpop.f32.mrf.mxu3  ;;  %v2199_v23 = vadd.f32 %v5558_v53, %v1920_v52 }
 0x2ec   : > { %2792 = vst.msk [vmem:[#allocation3 + $0x30] sm:$0xff] %vm2785_vm4, %v2775_v56  ;;  %v1643_v56 = vadd.f32 %v6404_v46, %v6403_v35 }
 0x2ee   : > { %v5810_v27 = vpop.f32.mrf.mxu2  ;;  %v1921_v41 = vadd.f32 %v5593_v6, %v1643_v56 }
 0x2ef   : > { %v2686_v63 = vpop.f32.mrf.mxu0 }
 0x2f0   : > { %v2752_v30 = vadd.f32 %v2686_v63, %v2474_v44  ;;  %v2475_v44 = vadd.f32 %v6405_v61, %v2197_v54  ;;  %v2477_v63 = vadd.f32 %v6406_v7, %v2199_v23  ;;  %v6410_v54 = vld [vmem:[#allocation25_spill] sm:$0xff]  ;;  %v4156_v61 = vld [vmem:[%s6197_s3 + $0x98] sm:$0xff] }
 0x2f1   : > { %3261 = vmatpush.msra.mxu2 %v4156_v61  ;;  %v6412_v7 = vld [vmem:[#allocation65_spill] sm:$0xff] }
 0x2f2   : > { %v2776_v62 = vmax.f32 %v2750_v60, %v2752_v30  ;;  %4108 = vmatmul.msk.f32.gmra.mxu0 %vm223_vm1, %v2522_v57  ;;  %v5816_v1 = vpop.f32.mrf.mxu3  ;;  %v6407_v57 = vld [vmem:[#allocation27_spill] sm:$0xff] }
 0x2f3   : > { %v1919_v60 = vadd.f32 %v6407_v57, %v1641_v45  ;;  %v6414_v57 = vld [vmem:[#allocation67_spill] sm:$0xff] }
 0x2f4   : > { %2793 = vst.msk [vmem:[#allocation3 + $0x38] sm:$0xff] %vm2785_vm4, %v2776_v62 }
 0x2f5   : > { %v2198_v38 = vadd.f32 %v6408_v47, %v1919_v60  ;;  %v6415_v60 = vld [vmem:[#allocation12_spill] sm:$0xff] }
 0x2f7   : > { %v2689_v36 = vpop.f32.mrf.mxu0  ;;  %v2476_v6 = vadd.f32 %v6410_v54, %v2198_v38  ;;  %v6417_v54 = vld [vmem:[#allocation33_spill] sm:$0xff] }
 0x2f9   : > { %v2951_v43 = vpop.f32.mrf.mxu1  ;;  %v3016_v21 = vpop.f32.mrf.mxu2 }
 0x2fa   : > { %v3017_v9 = vadd.f32 %v3016_v21, %v2951_v43  ;;  %v3094_v51 = vpop.f32.mrf.mxu3 }
 0x2fb   : > { %v2808_v16 = vld [vmem:[#allocation3 + $0x30] ss:$2 sm:$0xff]  ;;  %v2824_v58 = vld [vmem:[#allocation3 + $0x31] ss:$2 sm:$0xff] }
 0x2fc   : > { %v2836_v59 = vmax.f32 %v2808_v16, %v2824_v58  ;;  %v5837_v16 = vadd.f32 %v3094_v51, %v3017_v9  ;;  %v2753_v58 = vadd.f32 %v2689_v36, %v2475_v44  ;;  %v6411_v36 = vld [vmem:[#allocation32_spill] sm:$0xff]  ;;  %v4168_v44 = vld [vmem:[%s6197_s3 + $0xb8] sm:$0xff] }
 0x2fd   : > { %3347 = vmatpush.msra.mxu3 %v4168_v44  ;;  %v6424_v44 = vld [vmem:[#allocation34_spill] sm:$0xff] }
 0x2fe   : > { %v2848_v10 = vadd.f32 %v5647_v37, %v2836_v59 }
 0x2ff   : > { %v2692_v55 = vpop.f32.mrf.mxu0 }
 0x300   : > { %2880 = vst.msk [vmem:[#allocation4 + $0x68] sm:$0xff] %vm2785_vm4, %v2848_v10  ;;  %v6409_v10 = vld [vmem:[#allocation30_spill] sm:$0xff]  ;;  %v2754_v21 = vadd.f32 %v2692_v55, %v2476_v6  ;;  %v4144_v55 = vld [vmem:[%s6197_s3 + $0x78] sm:$0xff] }
 0x301   : > { %v2200_v50 = vadd.f32 %v6409_v10, %v1921_v41  ;;  %3175 = vmatpush.msra.mxu1 %v4144_v55  ;;  %v4155_v10 = vld [vmem:[%s6197_s3 + $0x90] sm:$0xff] }
 0x302   : > { %3262 = vmatpush.msra.mxu2 %v4155_v10 }
 0x303   : > { %v2478_v23 = vadd.f32 %v6411_v36, %v2200_v50  ;;  %v4167_v50 = vld [vmem:[%s6197_s3 + $0xb0] sm:$0xff] }
 0x304   : > { %3348 = vmatpush.msra.mxu3 %v4167_v50  ;;  %v6418_v36 = vld [vmem:[#allocation66_spill] sm:$0xff] }
 0x307   : > { %v2695_v30 = vpop.f32.mrf.mxu0  ;;  %v5831_v11 = vld [vmem:[#allocation4 + $0x68] sm:$0xff] }
 0x308   : > { %v5833_v53 = vld [vmem:[#allocation4 + $0x67] sm:$0xff]  ;;  %v2755_v59 = vadd.f32 %v2695_v30, %v2477_v63  ;;  %4117 = vmatmul.msk.f32.gmra.mxu1 %vm2785_vm4, %v5831_v11  ;;  %v6413_v63 = vld [vmem:[#allocation19_spill] sm:$0xff]  ;;  %v1646_v30 = vadd.f32 %v6415_v60, %v6414_v57 }
 0x309   : > { %v5835_v62 = vld [vmem:[#allocation4 + $0x69] sm:$0xff]  ;;  %4125 = vmatmul.msk.f32.gmra.mxu2 %vm2785_vm4, %v5833_v53  ;;  %v1644_v51 = vadd.f32 %v6413_v63, %v6412_v7 }
 0x30a   : > { %4137 = vmatmul.msk.f32.gmra.mxu3 %vm2785_vm4, %v5835_v62  ;;  %v2777_v52 = vmax.f32 %v2753_v58, %v2755_v59  ;;  %v6416_v59 = vld [vmem:[#allocation31_spill] sm:$0xff]  ;;  %v1924_v38 = vadd.f32 %v5651_v34, %v1646_v30 }
 0x30b   : > { %v1922_v47 = vadd.f32 %v6416_v59, %v1644_v51 }
 0x30c   : > { %2794 = vst.msk [vmem:[#allocation3 + $0x40] sm:$0xff] %vm2785_vm4, %v2777_v52  ;;  %v4143_v52 = vld [vmem:[%s6197_s3 + $0x70] sm:$0xff]  ;;  %v2203_v34 = vadd.f32 %v5653_v0, %v1924_v38 }
 0x30d   : > { %v2201_v6 = vadd.f32 %v6417_v54, %v1922_v47  ;;  %3176 = vmatpush.msra.mxu1 %v4143_v52  ;;  %v6426_v47 = vld [vmem:[#allocation44_spill] sm:$0xff]  ;;  %v6427_v54 = vld [vmem:[#allocation39_spill] sm:$0xff] }
 0x30f   : > { %v2698_v43 = vpop.f32.mrf.mxu0 }
 0x310   : > { %v2756_v26 = vadd.f32 %v2698_v43, %v2478_v23  ;;  %v6419_v23 = vld [vmem:[#allocation21_spill] sm:$0xff] }
 0x311   : > { %v1645_v43 = vadd.f32 %v6419_v23, %v6418_v36 }
 0x312   : > { %v2778_v45 = vmax.f32 %v2754_v21, %v2756_v26  ;;  %v6420_v21 = vld [vmem:[#allocation68_spill] sm:$0xff]  ;;  %v6421_v26 = vld [vmem:[#allocation42_spill] sm:$0xff] }
 0x313   : > { %v1923_v55 = vadd.f32 %v6424_v44, %v1645_v43  ;;  %v4154_v44 = vld [vmem:[%s6197_s3 + $0x88] sm:$0xff] }
 0x314   : > { %2795 = vst.msk [vmem:[#allocation3 + $0x48] sm:$0xff] %vm2785_vm4, %v2778_v45  ;;  %v1647_v45 = vadd.f32 %v6421_v26, %v6420_v21  ;;  %3263 = vmatpush.msra.mxu2 %v4154_v44 }
 0x316   : > { %v1925_v0 = vadd.f32 %v5673_v33, %v1647_v45 }
 0x317   : > { %v2701_v9 = vpop.f32.mrf.mxu0 }
 0x318   : > { %v2204_v38 = vadd.f32 %v6426_v47, %v1925_v0  ;;  %v6430_v0 = vld [vmem:[#allocation8_spill] sm:$0xff] }
 0x31b   : > { %v2810_v35 = vld [vmem:[#allocation3 + $0x40] ss:$2 sm:$0xff]  ;;  %v2826_v46 = vld [vmem:[#allocation3 + $0x41] ss:$2 sm:$0xff] }
 0x31c   : > { %v2837_v56 = vmax.f32 %v2810_v35, %v2826_v46  ;;  %v6422_v35 = vld [vmem:[#allocation36_spill] sm:$0xff] }
 0x31d   : > { %v2479_v46 = vadd.f32 %v6422_v35, %v2201_v6 }
 0x31e   : > { %v2849_v41 = vadd.f32 %v5647_v37, %v2837_v56  ;;  %v6423_v56 = vld [vmem:[#allocation38_spill] sm:$0xff] }
 0x31f   : > { %v2704_v58 = vpop.f32.mrf.mxu0  ;;  %v2481_v61 = vadd.f32 %v6423_v56, %v2203_v34  ;;  %v2757_v60 = vadd.f32 %v2701_v9, %v2479_v46  ;;  %v6428_v34 = vld [vmem:[#allocation46_spill] sm:$0xff] }
 0x320   : > { %2881 = vst.msk [vmem:[#allocation4 + $0x80] sm:$0xff] %vm2785_vm4, %v2849_v41  ;;  %v6425_v41 = vld [vmem:[#allocation37_spill] sm:$0xff]  ;;  %v2482_v36 = vadd.f32 %v6428_v34, %v2204_v38 }
 0x321   : > { %v2202_v59 = vadd.f32 %v6425_v41, %v1923_v55  ;;  %v4166_v55 = vld [vmem:[%s6197_s3 + $0xa8] sm:$0xff]  ;;  %v6432_v41 = vld [vmem:[#allocation23_spill] sm:$0xff] }
 0x322   : > { %3349 = vmatpush.msra.mxu3 %v4166_v55 }
 0x323   : > { %v2480_v6 = vadd.f32 %v6427_v54, %v2202_v59  ;;  %v4141_v54 = vld [vmem:[%s6197_s3 + $0x60] sm:$0xff] }
 0x325   : > { %v2954_v50 = vpop.f32.mrf.mxu1  ;;  %v2758_v21 = vadd.f32 %v2704_v58, %v2480_v6  ;;  %v4142_v58 = vld [vmem:[%s6197_s3 + $0x68] sm:$0xff]  ;;  %v6434_v6 = vld [vmem:[#allocation47_spill] sm:$0xff] }
 0x326   : > { %3177 = vmatpush.msra.mxu1 %v4142_v58 }
 0x327   : > { %v2707_v7 = vpop.f32.mrf.mxu0  ;;  %v5887_v63 = vld [vmem:[#allocation4 + $0x80] sm:$0xff] }
 0x328   : > { %v5889_v51 = vld [vmem:[#allocation4 + $0x7f] sm:$0xff]  ;;  %v2759_v30 = vadd.f32 %v2707_v7, %v2481_v61  ;;  %4118 = vmatmul.msk.f32.gmra.mxu1 %vm2785_vm4, %v5887_v63  ;;  %v6429_v7 = vld [vmem:[#allocation69_spill] sm:$0xff] }
 0x329   : > { %v5891_v57 = vld [vmem:[#allocation4 + $0x81] sm:$0xff]  ;;  %4126 = vmatmul.msk.f32.gmra.mxu2 %vm2785_vm4, %v5889_v51  ;;  %3178 = vmatpush.msra.mxu1 %v4141_v54 }
 0x32a   : > { %4138 = vmatmul.msk.f32.gmra.mxu3 %vm2785_vm4, %v5891_v57  ;;  %v2779_v10 = vmax.f32 %v2757_v60, %v2759_v30  ;;  %v1648_v60 = vadd.f32 %v6430_v0, %v6429_v7  ;;  %v6431_v30 = vld [vmem:[#allocation71_spill] sm:$0xff] }
 0x32b   : > { %v1650_v59 = vadd.f32 %v6432_v41, %v6431_v30 }
 0x32c   : > { %v3019_v52 = vpop.f32.mrf.mxu2  ;;  %2796 = vst.msk [vmem:[#allocation3 + $0x50] sm:$0xff] %vm2785_vm4, %v2779_v10  ;;  %v6433_v10 = vld [vmem:[#allocation45_spill] sm:$0xff] }
 0x32d   : > { %v3020_v33 = vadd.f32 %v3019_v52, %v2954_v50  ;;  %v3097_v9 = vpop.f32.mrf.mxu3  ;;  %v1926_v50 = vadd.f32 %v6433_v10, %v1648_v60  ;;  %v1928_v52 = vadd.f32 %v5730_v13, %v1650_v59 }
 0x32f   : > { %v5905_v23 = vadd.f32 %v3097_v9, %v3020_v33  ;;  %v2710_v43 = vpop.f32.mrf.mxu0  ;;  %v4153_v33 = vld [vmem:[%s6197_s3 + $0x80] sm:$0xff]  ;;  %v2205_v34 = vadd.f32 %v6434_v6, %v1926_v50  ;;  %v2207_v13 = vadd.f32 %v5732_v24, %v1928_v52 }
 0x330   : > { %v2760_v26 = vadd.f32 %v2710_v43, %v2482_v36  ;;  %v4165_v9 = vld [vmem:[%s6197_s3 + $0xa0] sm:$0xff]  ;;  %3264 = vmatpush.msra.mxu2 %v4153_v33  ;;  %v6435_v36 = vld [vmem:[#allocation70_spill] sm:$0xff] }
 0x331   : > { %3350 = vmatpush.msra.mxu3 %v4165_v9  ;;  %v6436_v43 = vld [vmem:[#allocation18_spill] sm:$0xff]  ;;  %v2485_v44 = vadd.f32 %v5735_v42, %v2207_v13 }
 0x332   : > { %v2780_v45 = vmax.f32 %v2758_v21, %v2760_v26  ;;  %v1649_v21 = vadd.f32 %v6436_v43, %v6435_v36  ;;  %v6437_v26 = vld [vmem:[#allocation9_spill] sm:$0xff]  ;;  %v4192_v43 = vld [vmem:[%s6197_s3 + $0xf8] sm:$0xff] }
 0x333   : > { %3520 = vmatpush.msrb.mxu2 %v4192_v43 }
 0x334   : > { %2797 = vst.msk [vmem:[#allocation3 + $0x58] sm:$0xff] %vm2785_vm4, %v2780_v45  ;;  %v6438_v45 = vld [vmem:[#allocation26_spill] sm:$0xff]  ;;  %v1927_v55 = vadd.f32 %v5698_v40, %v1649_v21  ;;  %v6441_v21 = vld [vmem:[#allocation20_spill] sm:$0xff] }
 0x336   : > { %v2206_v40 = vadd.f32 %v5700_v3, %v1927_v55 }
 0x337   : > { %v2713_v35 = vpop.f32.mrf.mxu0 }
 0x338   : > { %v2484_v50 = vadd.f32 %v5705_v15, %v2206_v40  ;;  %v4204_v15 = vld [vmem:[%s6197_s3 + $0x118] sm:$0xff] }
 0x339   : > { %3606 = vmatpush.msrb.mxu3 %v4204_v15 }
 0x33b   : > { %v2812_v46 = vld [vmem:[#allocation3 + $0x50] ss:$2 sm:$0xff]  ;;  %v2828_v56 = vld [vmem:[#allocation3 + $0x51] ss:$2 sm:$0xff] }
 0x33c   : > { %v2838_v61 = vmax.f32 %v2812_v46, %v2828_v56  ;;  %v1651_v46 = vadd.f32 %v6438_v45, %v6437_v26  ;;  %v6439_v56 = vld [vmem:[#allocation49_spill] sm:$0xff]  ;;  %v6442_v45 = vld [vmem:[#allocation35_spill] sm:$0xff] }
 0x33e   : > { %v2850_v47 = vadd.f32 %v5647_v37, %v2838_v61  ;;  %v2483_v61 = vadd.f32 %v6439_v56, %v2205_v34  ;;  %v1929_v24 = vadd.f32 %v5741_v18, %v1651_v46  ;;  %v6443_v46 = vld [vmem:[#allocation24_spill] sm:$0xff] }
 0x33f   : > { %v2716_v38 = vpop.f32.mrf.mxu0  ;;  %v1654_v56 = vadd.f32 %v6443_v46, %v6442_v45  ;;  %v6448_v45 = vld [vmem:[#allocation43_spill] sm:$0xff]  ;;  %v4178_v46 = vld [vmem:[%s6197_s3 + $0xc8] sm:$0xff] }
 0x340   : > { %2882 = vst.msk [vmem:[#allocation4 + $0x98] sm:$0xff] %vm2785_vm4, %v2850_v47  ;;  %v2761_v30 = vadd.f32 %v2713_v35, %v2483_v61  ;;  %v2208_v42 = vadd.f32 %v5743_v2, %v1929_v24  ;;  %v2762_v54 = vadd.f32 %v2716_v38, %v2484_v50  ;;  %v6440_v38 = vld [vmem:[#allocation11_spill] sm:$0xff]  ;;  %v4191_v24 = vld [vmem:[%s6197_s3 + $0xf0] sm:$0xff] }
 0x341   : > { %v1652_v26 = vadd.f32 %v6441_v21, %v6440_v38  ;;  %3521 = vmatpush.msrb.mxu2 %v4191_v24  ;;  %v4189_v24 = vld [vmem:[%s6197_s3 + $0xe0] sm:$0xff] }
 0x342   : > { %v2486_v52 = vadd.f32 %v5746_v22, %v2208_v42  ;;  %v4180_v22 = vld [vmem:[%s6197_s3 + $0xd8] sm:$0xff]  ;;  %v6445_v42 = vld [vmem:[#allocation17_spill] sm:$0xff] }
 0x343   : > { %3434 = vmatpush.msrb.mxu1 %v4180_v22  ;;  %v1930_v55 = vadd.f32 %v5754_v48, %v1652_v26 }
 0x345   : > { %v2957_v47 = vpop.f32.mrf.mxu1  ;;  %v2209_v40 = vadd.f32 %v5756_v28, %v1930_v55 }
 0x347   : > { %v2719_v58 = vpop.f32.mrf.mxu0  ;;  %v5943_v7 = vld [vmem:[#allocation4 + $0x98] sm:$0xff] }
 0x348   : > { %v5945_v0 = vld [vmem:[#allocation4 + $0x97] sm:$0xff]  ;;  %v2763_v41 = vadd.f32 %v2719_v58, %v2485_v44  ;;  %4119 = vmatmul.msk.f32.gmra.mxu1 %vm2785_vm4, %v5943_v7  ;;  %v1932_v58 = vadd.f32 %v5800_v4, %v1654_v56 }
 0x349   : > { %v5947_v60 = vld [vmem:[#allocation4 + $0x99] sm:$0xff]  ;;  %4127 = vmatmul.msk.f32.gmra.mxu2 %vm2785_vm4, %v5945_v0  ;;  %v6444_v4 = vld [vmem:[#allocation10_spill] sm:$0xff] }
 0x34a   : > { %4139 = vmatmul.msk.f32.gmra.mxu3 %vm2785_vm4, %v5947_v60  ;;  %v2781_v59 = vmax.f32 %v2761_v30, %v2763_v41  ;;  %v4203_v30 = vld [vmem:[%s6197_s3 + $0x110] sm:$0xff]  ;;  %v2211_v48 = vadd.f32 %v5802_v5, %v1932_v58 }
 0x34b   : > { %v4179_v41 = vld [vmem:[%s6197_s3 + $0xd0] sm:$0xff]  ;;  %3607 = vmatpush.msrb.mxu3 %v4203_v30  ;;  %v4201_v30 = vld [vmem:[%s6197_s3 + $0x100] sm:$0xff] }
 0x34c   : > { %v3022_v10 = vpop.f32.mrf.mxu2  ;;  %2798 = vst.msk [vmem:[#allocation3 + $0x60] sm:$0xff] %vm2785_vm4, %v2781_v59  ;;  %3435 = vmatpush.msrb.mxu1 %v4179_v41  ;;  %v1653_v59 = vadd.f32 %v6445_v42, %v6444_v4  ;;  %v2489_v50 = vadd.f32 %v5805_v17, %v2211_v48 }
 0x34d   : > { %v3023_v18 = vadd.f32 %v3022_v10, %v2957_v47  ;;  %v3100_v35 = vpop.f32.mrf.mxu3  ;;  %v6446_v47 = vld [vmem:[#allocation13_spill] sm:$0xff]  ;;  %v6447_v10 = vld [vmem:[#allocation22_spill] sm:$0xff] }
 0x34e   : > { %3436 = vmatpush.msrb.mxu1 %v4178_v46 }
 0x34f   : > { %v5961_v33 = vadd.f32 %v3100_v35, %v3023_v18  ;;  %v2722_v9 = vpop.f32.mrf.mxu0  ;;  %v1655_v18 = vadd.f32 %v6447_v10, %v6446_v47  ;;  %v2487_v35 = vadd.f32 %v5761_v12, %v2209_v40 }
 0x350   : > { %v2764_v6 = vadd.f32 %v2722_v9, %v2486_v52  ;;  %v1931_v52 = vadd.f32 %v5782_v19, %v1653_v59 }
 0x352   : > { %v2782_v34 = vmax.f32 %v2762_v54, %v2764_v6  ;;  %v1933_v6 = vadd.f32 %v5808_v25, %v1655_v18  ;;  %v2210_v12 = vadd.f32 %v5784_v20, %v1931_v52  ;;  %v6449_v20 = vld [vmem:[#allocation40_spill] sm:$0xff] }
 0x354   : > { %2799 = vst.msk [vmem:[#allocation3 + $0x68] sm:$0xff] %vm2785_vm4, %v2782_v34  ;;  %v2212_v19 = vadd.f32 %v5810_v27, %v1933_v6  ;;  %v2488_v43 = vadd.f32 %v5794_v14, %v2210_v12  ;;  %v6450_v27 = vld [vmem:[#allocation41_spill] sm:$0xff] }
 0x355   : > { %v4190_v14 = vld [vmem:[%s6197_s3 + $0xe8] sm:$0xff] }
 0x356   : > { %v2490_v15 = vadd.f32 %v5816_v1, %v2212_v19  ;;  %v4202_v1 = vld [vmem:[%s6197_s3 + $0x108] sm:$0xff]  ;;  %3522 = vmatpush.msrb.mxu2 %v4190_v14 }
 0x357   : > { %v2725_v3 = vpop.f32.mrf.mxu0  ;;  %3608 = vmatpush.msrb.mxu3 %v4202_v1 }
 0x358   : > { %v2765_v34 = vadd.f32 %v2725_v3, %v2487_v35  ;;  %3523 = vmatpush.msrb.mxu2 %v4189_v24 }
 0x359   : > { %3609 = vmatpush.msrb.mxu3 %v4201_v30 }
 0x35b   : > { %v2814_v2 = vld [vmem:[#allocation3 + $0x60] ss:$2 sm:$0xff]  ;;  %v2830_v13 = vld [vmem:[#allocation3 + $0x61] ss:$2 sm:$0xff] }
 0x35c   : > { %v2839_v36 = vmax.f32 %v2814_v2, %v2830_v13 }
 0x35e   : > { %v2851_v61 = vadd.f32 %v5647_v37, %v2839_v36 }
 0x35f   : > { %v2728_v44 = vpop.f32.mrf.mxu0 }
 0x360   : > { %2883 = vst.msk [vmem:[#allocation4 + $0xb0] sm:$0xff] %vm2785_vm4, %v2851_v61  ;;  %v2766_v21 = vadd.f32 %v2728_v44, %v2488_v43 }
 0x365   : > { %v2960_v13 = vpop.f32.mrf.mxu1 }
 0x367   : > { %v2731_v9 = vpop.f32.mrf.mxu0  ;;  %v5999_v54 = vld [vmem:[#allocation4 + $0xb0] sm:$0xff] }
 0x368   : > { %v6001_v28 = vld [vmem:[#allocation4 + $0xaf] sm:$0xff]  ;;  %v2767_v2 = vadd.f32 %v2731_v9, %v2489_v50  ;;  %4120 = vmatmul.msk.f32.gmra.mxu1 %vm2785_vm4, %v5999_v54 }
 0x369   : > { %v6003_v5 = vld [vmem:[#allocation4 + $0xb1] sm:$0xff]  ;;  %4128 = vmatmul.msk.f32.gmra.mxu2 %vm2785_vm4, %v6001_v28 }
 0x36a   : > { %4140 = vmatmul.msk.f32.gmra.mxu3 %vm2785_vm4, %v6003_v5  ;;  %v2783_v17 = vmax.f32 %v2765_v34, %v2767_v2 }
 0x36c   : > { %v3025_v36 = vpop.f32.mrf.mxu2  ;;  %2800 = vst.msk [vmem:[#allocation3 + $0x70] sm:$0xff] %vm2785_vm4, %v2783_v17 }
 0x36d   : > { %v3026_v25 = vadd.f32 %v3025_v36, %v2960_v13  ;;  %v3103_v3 = vpop.f32.mrf.mxu3 }
 0x36f   : > { %v6017_v22 = vadd.f32 %v3103_v3, %v3026_v25  ;;  %v2734_v38 = vpop.f32.mrf.mxu0 }
 0x370   : > { %v2768_v26 = vadd.f32 %v2734_v38, %v2490_v15  ;;  %4145 = vmatmul.msk.f32.vlgmr.msra.gmra.mxu1 %vm2785_vm4, %v6448_v45 }
 0x371   : > { %4157 = vmatmul.msk.f32.vlgmr.msra.gmra.mxu2 %vm2785_vm4, %v6449_v20 }
 0x372   : > { %4169 = vmatmul.msk.f32.vlgmr.msra.gmra.mxu3 %vm2785_vm4, %v6450_v27  ;;  %v2784_v56 = vmax.f32 %v2766_v21, %v2768_v26 }
 0x374   : > { %2801 = vst.msk [vmem:[#allocation3 + $0x78] sm:$0xff] %vm2785_vm4, %v2784_v56 }
 0x378   : > { %4146 = vmatmul.msk.f32.gmra.mxu1 %vm2785_vm4, %v5717_v32 }
 0x379   : > { %4158 = vmatmul.msk.f32.gmra.mxu2 %vm2785_vm4, %v5715_v31 }
 0x37a   : > { %4170 = vmatmul.msk.f32.gmra.mxu3 %vm2785_vm4, %v5719_v49 }
 0x37b   : > { %v2816_v61 = vld [vmem:[#allocation3 + $0x70] ss:$2 sm:$0xff]  ;;  %v2832_v44 = vld [vmem:[#allocation3 + $0x71] ss:$2 sm:$0xff] }
 0x37c   : > { %v2840_v55 = vmax.f32 %v2816_v61, %v2832_v44 }
 0x37e   : > { %v2852_v58 = vadd.f32 %v5647_v37, %v2840_v55  ;;  %v4177_v37 = vld [vmem:[%s6197_s3 + $0xc0] sm:$0xff] }
 0x37f   : > { %3437 = vmatpush.msrb.mxu1 %v4177_v37 }
 0x380   : > { %4147 = vmatmul.msk.f32.gmra.mxu1 %vm2785_vm4, %v5777_v29  ;;  %2884 = vst.msk [vmem:[#allocation4 + $0xc8] sm:$0xff] %vm2785_vm4, %v2852_v58 }
 0x381   : > { %4159 = vmatmul.msk.f32.gmra.mxu2 %vm2785_vm4, %v5775_v39 }
 0x382   : > { %4171 = vmatmul.msk.f32.gmra.mxu3 %vm2785_vm4, %v5779_v8 }
 0x385   : > { %v2963_v41 = vpop.f32.mrf.mxu1 }
 0x387   : > { %v3133_v59 = vld [vmem:[#allocation4 + $0xc7] sm:$0xff] }
 0x388   : > { %4148 = vmatmul.msk.f32.gmra.mxu1 %vm2785_vm4, %v5833_v53  ;;  %v3219_v47 = vld [vmem:[#allocation4 + $0xc8] sm:$0xff] }
 0x389   : > { %4160 = vmatmul.msk.f32.gmra.mxu2 %vm2785_vm4, %v5831_v11  ;;  %v3305_v10 = vld [vmem:[#allocation4 + $0xc9] sm:$0xff] }
 0x38a   : > { %4172 = vmatmul.msk.f32.gmra.mxu3 %vm2785_vm4, %v5835_v62 }
 0x38c   : > { %v3028_v40 = vpop.f32.mrf.mxu2 }
 0x38d   : > { %v3029_v48 = vadd.f32 %v3028_v40, %v2963_v41  ;;  %v3106_v4 = vpop.f32.mrf.mxu3 }
 0x38f   : > { %v6064_v42 = vadd.f32 %v3106_v4, %v3029_v48 }
 0x390   : > { %4149 = vmatmul.msk.f32.gmra.mxu1 %vm2785_vm4, %v5889_v51 }
 0x391   : > { %4161 = vmatmul.msk.f32.gmra.mxu2 %vm2785_vm4, %v5887_v63 }
 0x392   : > { %4173 = vmatmul.msk.f32.gmra.mxu3 %vm2785_vm4, %v5891_v57 }
 0x398   : > { %4150 = vmatmul.msk.f32.gmra.mxu1 %vm2785_vm4, %v5945_v0 }
 0x399   : > { %4162 = vmatmul.msk.f32.gmra.mxu2 %vm2785_vm4, %v5943_v7 }
 0x39a   : > { %4174 = vmatmul.msk.f32.gmra.mxu3 %vm2785_vm4, %v5947_v60 }
 0x3a0   : > { %4151 = vmatmul.msk.f32.gmra.mxu1 %vm2785_vm4, %v6001_v28 }
 0x3a1   : > { %4163 = vmatmul.msk.f32.gmra.mxu2 %vm2785_vm4, %v5999_v54 }
 0x3a2   : > { %4175 = vmatmul.msk.f32.gmra.mxu3 %vm2785_vm4, %v6003_v5 }
 0x3a5   : > { %v2966_v18 = vpop.f32.mrf.mxu1 }
 0x3a8   : > { %4152 = vmatmul.msk.f32.gmra.mxu1 %vm2785_vm4, %v3133_v59 }
 0x3a9   : > { %4164 = vmatmul.msk.f32.gmra.mxu2 %vm2785_vm4, %v3219_v47 }
 0x3aa   : > { %4176 = vmatmul.msk.f32.gmra.mxu3 %vm2785_vm4, %v3305_v10 }
 0x3ac   : > { %v3031_v35 = vpop.f32.mrf.mxu2 }
 0x3ad   : > { %v3032_v50 = vadd.f32 %v3031_v35, %v2966_v18  ;;  %v3109_v52 = vpop.f32.mrf.mxu3 }
 0x3af   : > { %v6087_v9 = vadd.f32 %v3109_v52, %v3032_v50 }
 0x3b0   : > { %4181 = vmatmul.msk.f32.vlgmr.msrb.gmra.mxu1 %vm2785_vm4, %v5717_v32 }
 0x3b1   : > { %4193 = vmatmul.msk.f32.vlgmr.msrb.gmra.mxu2 %vm2785_vm4, %v5715_v31 }
 0x3b2   : > { %4205 = vmatmul.msk.f32.vlgmr.msrb.gmra.mxu3 %vm2785_vm4, %v5719_v49 }
 0x3b8   : > { %4182 = vmatmul.msk.f32.gmra.mxu1 %vm2785_vm4, %v5777_v29 }
 0x3b9   : > { %4194 = vmatmul.msk.f32.gmra.mxu2 %vm2785_vm4, %v5775_v39 }
 0x3ba   : > { %4206 = vmatmul.msk.f32.gmra.mxu3 %vm2785_vm4, %v5779_v8 }
 0x3c0   : > { %4183 = vmatmul.msk.f32.gmra.mxu1 %vm2785_vm4, %v5833_v53  ;;  %v3478_v53 = vld [vmem:[#allocation4 + $0xe0] sm:$0xff] }
 0x3c1   : > { %4195 = vmatmul.msk.f32.gmra.mxu2 %vm2785_vm4, %v5831_v11  ;;  %v3392_v11 = vld [vmem:[#allocation4 + $0xdf] sm:$0xff] }
 0x3c2   : > { %4207 = vmatmul.msk.f32.gmra.mxu3 %vm2785_vm4, %v5835_v62  ;;  %v3564_v62 = vld [vmem:[#allocation4 + $0xe1] sm:$0xff] }
 0x3c5   : > { %v2969_v31 = vpop.f32.mrf.mxu1 }
 0x3c8   : > { %4184 = vmatmul.msk.f32.gmra.mxu1 %vm2785_vm4, %v5889_v51 }
 0x3c9   : > { %4196 = vmatmul.msk.f32.gmra.mxu2 %vm2785_vm4, %v5887_v63 }
 0x3ca   : > { %4208 = vmatmul.msk.f32.gmra.mxu3 %vm2785_vm4, %v5891_v57 }
 0x3cc   : > { %v3034_v32 = vpop.f32.mrf.mxu2 }
 0x3cd   : > { %v3035_v49 = vadd.f32 %v3034_v32, %v2969_v31  ;;  %v3112_v39 = vpop.f32.mrf.mxu3 }
 0x3cf   : > { %v3124_v29 = vadd.f32 %v3112_v39, %v3035_v49 }
 0x3d0   : > { %4185 = vmatmul.msk.f32.gmra.mxu1 %vm2785_vm4, %v5945_v0 }
 0x3d1   : > { %4197 = vmatmul.msk.f32.gmra.mxu2 %vm2785_vm4, %v5943_v7 }
 0x3d2   : > { %4209 = vmatmul.msk.f32.gmra.mxu3 %vm2785_vm4, %v5947_v60 }
 0x3d8   : > { %4186 = vmatmul.msk.f32.gmra.mxu1 %vm2785_vm4, %v6001_v28 }
 0x3d9   : > { %4198 = vmatmul.msk.f32.gmra.mxu2 %vm2785_vm4, %v5999_v54 }
 0x3da   : > { %4210 = vmatmul.msk.f32.gmra.mxu3 %vm2785_vm4, %v6003_v5 }
 0x3e0   : > { %4187 = vmatmul.msk.f32.gmra.mxu1 %vm2785_vm4, %v3133_v59 }
 0x3e1   : > { %4199 = vmatmul.msk.f32.gmra.mxu2 %vm2785_vm4, %v3219_v47 }
 0x3e2   : > { %4211 = vmatmul.msk.f32.gmra.mxu3 %vm2785_vm4, %v3305_v10 }
 0x3e5   : > { %v2972_v8 = vpop.f32.mrf.mxu1 }
 0x3e8   : > { %4188 = vmatmul.msk.f32.gmra.mxu1 %vm2785_vm4, %v3392_v11 }
 0x3e9   : > { %4200 = vmatmul.msk.f32.gmra.mxu2 %vm2785_vm4, %v3478_v53 }
 0x3ea   : > { %4212 = vmatmul.msk.f32.gmra.mxu3 %vm2785_vm4, %v3564_v62 }
 0x3ec   : > { %v3037_v63 = vpop.f32.mrf.mxu2 }
 0x3ed   : > { %v3038_v51 = vadd.f32 %v3037_v63, %v2972_v8  ;;  %v3115_v57 = vpop.f32.mrf.mxu3  ;;  %v3180_v7 = vpop.f32.mrf.mxu1 }
 0x3ee   : > { %v3204_v60 = vadd.f32 %v3180_v7, %v5837_v16 }
 0x3ef   : > { %v6131_v0 = vadd.f32 %v3115_v57, %v3038_v51  ;;  %v6150_v57 = vld [vmem:[%s6198_s4] ss:$0 sm:$0xff] }
 0x3f4   : > { %v3266_v54 = vpop.f32.mrf.mxu2 }
 0x3f5   : > { %v3290_v28 = vadd.f32 %v3266_v54, %v3204_v60  ;;  %v3352_v5 = vpop.f32.mrf.mxu3  ;;  %v3183_v6 = vpop.f32.mrf.mxu1 }
 0x3f6   : > { %v3205_v2 = vadd.f32 %v3183_v6, %v5905_v23 }
 0x3f7   : > { %v3376_v34 = vadd.f32 %v3352_v5, %v3290_v28 }
 0x3fc   : > { %v3269_v12 = vpop.f32.mrf.mxu2 }
 0x3fd   : > { %v3291_v19 = vadd.f32 %v3269_v12, %v3205_v2  ;;  %v3355_v17 = vpop.f32.mrf.mxu3  ;;  %v3186_v13 = vpop.f32.mrf.mxu1 }
 0x3fe   : > { %v3206_v25 = vadd.f32 %v3186_v13, %v5961_v33 }
 0x3ff   : > { %v3377_v36 = vadd.f32 %v3355_v17, %v3291_v19 }
 0x404   : > { %v3272_v3 = vpop.f32.mrf.mxu2 }
 0x405   : > { %v3292_v43 = vadd.f32 %v3272_v3, %v3206_v25  ;;  %v3358_v15 = vpop.f32.mrf.mxu3  ;;  %v3189_v38 = vpop.f32.mrf.mxu1 }
 0x406   : > { %v3207_v16 = vadd.f32 %v3189_v38, %v6017_v22 }
 0x407   : > { %v3378_v21 = vadd.f32 %v3358_v15, %v3292_v43 }
 0x40c   : > { %v3275_v26 = vpop.f32.mrf.mxu2 }
 0x40d   : > { %v3293_v45 = vadd.f32 %v3275_v26, %v3207_v16  ;;  %v3361_v20 = vpop.f32.mrf.mxu3  ;;  %v3192_v27 = vpop.f32.mrf.mxu1 }
 0x40e   : > { %v3208_v23 = vadd.f32 %v3192_v27, %v6064_v42 }
 0x40f   : > { %v3379_v14 = vadd.f32 %v3361_v20, %v3293_v45 }
 0x414   : > { %v3278_v1 = vpop.f32.mrf.mxu2 }
 0x415   : > { %v3294_v46 = vadd.f32 %v3278_v1, %v3208_v23  ;;  %v3364_v56 = vpop.f32.mrf.mxu3  ;;  %v3195_v61 = vpop.f32.mrf.mxu1 }
 0x416   : > { %v3209_v33 = vadd.f32 %v3195_v61, %v6087_v9 }
 0x417   : > { %v3380_v44 = vadd.f32 %v3364_v56, %v3294_v46 }
 0x41c   : > { %v3281_v55 = vpop.f32.mrf.mxu2 }
 0x41d   : > { %v3295_v58 = vadd.f32 %v3281_v55, %v3209_v33  ;;  %v3367_v24 = vpop.f32.mrf.mxu3  ;;  %v3198_v30 = vpop.f32.mrf.mxu1 }
 0x41e   : > { %v3210_v22 = vadd.f32 %v3198_v30, %v3124_v29 }
 0x41f   : > { %v3381_v37 = vadd.f32 %v3367_v24, %v3295_v58 }
 0x424   : > { %v3284_v41 = vpop.f32.mrf.mxu2 }
 0x425   : > { %v3296_v40 = vadd.f32 %v3284_v41, %v3210_v22  ;;  %v3370_v48 = vpop.f32.mrf.mxu3  ;;  %v6139_v4 = vpop.f32.mrf.mxu1 }
 0x427   : > { %v6141_v59 = vadd.f32 %v3370_v48, %v3296_v40 }
 0x42c   : > { %v6143_v42 = vpop.f32.mrf.mxu2 }
 0x42d   : > { %v6145_v47 = vpop.f32.mrf.mxu3  ;;  %v3439_v10 = vpop.f32.mrf.mxu1 }
 0x42e   : > { %v3463_v52 = vadd.f32 %v3439_v10, %v3376_v34  ;;  %v3211_v10 = vadd.f32 %v6139_v4, %v6131_v0 }
 0x434   : > { %v3525_v18 = vpop.f32.mrf.mxu2 }
 0x435   : > { %v3611_v35 = vpop.f32.mrf.mxu3  ;;  %v3442_v50 = vpop.f32.mrf.mxu1  ;;  %v3549_v9 = vadd.f32 %v3525_v18, %v3463_v52 }
 0x436   : > { %v3464_v31 = vadd.f32 %v3442_v50, %v3377_v36 }
 0x437   : > { %v3635_v8 = vadd.f32 %v3611_v35, %v3549_v9  ;;  %v3297_v35 = vadd.f32 %v6143_v42, %v3211_v10 }
 0x43c   : > { %v3528_v32 = vpop.f32.mrf.mxu2 }
 0x43d   : > { %v3550_v49 = vadd.f32 %v3528_v32, %v3464_v31  ;;  %v3614_v39 = vpop.f32.mrf.mxu3  ;;  %v3445_v29 = vpop.f32.mrf.mxu1  ;;  %v3383_v31 = vadd.f32 %v6145_v47, %v3297_v35 }
 0x43e   : > { %v3465_v7 = vadd.f32 %v3445_v29, %v3378_v21 }
 0x43f   : > { %v3636_v11 = vadd.f32 %v3614_v39, %v3550_v49 }
 0x441   : > { %v3643_v53 = vmax.f32 %v3635_v8, %v3636_v11 }
 0x443   : > { %v3651_v28 = vadd.f32 %v6150_v57, %v3643_v53 }
 0x444   : > { %v3531_v62 = vpop.f32.mrf.mxu2 }
 0x445   : > { %v3617_v63 = vpop.f32.mrf.mxu3  ;;  %v3448_v51 = vpop.f32.mrf.mxu1  ;;  %v3551_v60 = vadd.f32 %v3531_v62, %v3465_v7  ;;  %v3659_v17 = vrot.slane %v3651_v28, 1 }
 0x446   : > { %v3466_v54 = vadd.f32 %v3448_v51, %v3379_v14 }
 0x447   : > { %v3637_v12 = vadd.f32 %v3617_v63, %v3551_v60  ;;  %v3667_v25 = vmax.f32 %v3651_v28, %v3659_v17 }
 0x449   : > { %v3702_v26 = vrot.slane %v3667_v25, 6  ;;  %v3685_v45 = vrot.slane %v3667_v25, 2  ;;  %v3694_v20 = vrot.slane %v3667_v25, 4 }
 0x44c   : > { %v3534_v5 = vpop.f32.mrf.mxu2 }
 0x44d   : > { %v3552_v6 = vadd.f32 %v3534_v5, %v3466_v54  ;;  %v3620_v34 = vpop.f32.mrf.mxu3  ;;  %v3451_v2 = vpop.f32.mrf.mxu1 }
 0x44e   : > { %v3467_v16 = vadd.f32 %v3451_v2, %v3380_v44 }
 0x44f   : > { %v3638_v19 = vadd.f32 %v3620_v34, %v3552_v6 }
 0x451   : > { %v3644_v13 = vmax.f32 %v3637_v12, %v3638_v19 }
 0x453   : > { %v3652_v36 = vadd.f32 %v6150_v57, %v3644_v13 }
 0x454   : > { %v3537_v3 = vpop.f32.mrf.mxu2 }
 0x455   : > { %v3660_v43 = vrot.slane %v3652_v36, 1  ;;  %v3623_v15 = vpop.f32.mrf.mxu3  ;;  %v3454_v38 = vpop.f32.mrf.mxu1  ;;  %v3553_v46 = vadd.f32 %v3537_v3, %v3467_v16 }
 0x456   : > { %v3468_v56 = vadd.f32 %v3454_v38, %v3381_v37 }
 0x457   : > { %v3668_v21 = vmax.f32 %v3652_v36, %v3660_v43  ;;  %v3639_v40 = vadd.f32 %v3623_v15, %v3553_v46 }
 0x459   : > { %v3703_v27 = vrot.slane %v3668_v21, 5  ;;  %v3686_v14 = vrot.slane %v3668_v21, 1  ;;  %v3695_v23 = vrot.slane %v3668_v21, 3  ;;  %v3675_v1 = vrot.slane %v3668_v21, 7 }
 0x45b   : > { %v3704_v61 = vsel %vm3676_vm7, %v3703_v27, %v3702_v26  ;;  %v3687_v33 = vsel %vm3676_vm7, %v3686_v14, %v3685_v45  ;;  %v3696_v55 = vsel %vm3676_vm7, %v3695_v23, %v3694_v20  ;;  %v3677_v58 = vsel %vm3676_vm7, %v3675_v1, %v3667_v25 }
 0x45c   : > { %v3540_v24 = vpop.f32.mrf.mxu2 }
 0x45d   : > { %v3554_v30 = vadd.f32 %v3540_v24, %v3468_v56  ;;  %v3626_v22 = vpop.f32.mrf.mxu3  ;;  %v3457_v41 = vpop.f32.mrf.mxu1 }
 0x45e   : > { %v3469_v32 = vadd.f32 %v3457_v41, %v6141_v59 }
 0x45f   : > { %v3640_v48 = vadd.f32 %v3626_v22, %v3554_v30 }
 0x461   : > { %v3645_v44 = vmax.f32 %v3639_v40, %v3640_v48 }
 0x463   : > { %v3653_v18 = vadd.f32 %v6150_v57, %v3645_v44 }
 0x464   : > { %v3543_v50 = vpop.f32.mrf.mxu2 }
 0x465   : > { %v3661_v37 = vrot.slane %v3653_v18, 1  ;;  %v3629_v52 = vpop.f32.mrf.mxu3  ;;  %v3460_v49 = vpop.f32.mrf.mxu1  ;;  %v3555_v53 = vadd.f32 %v3543_v50, %v3469_v32 }
 0x466   : > { %v3470_v0 = vadd.f32 %v3460_v49, %v3383_v31 }
 0x467   : > { %v3669_v9 = vmax.f32 %v3653_v18, %v3661_v37  ;;  %v3641_v60 = vadd.f32 %v3629_v52, %v3555_v53 }
 0x469   : > { %v3705_v39 = vrot.slane %v3669_v9, 4  ;;  %v3688_v29 = vsel %vm3679_vm8, %v3669_v9, %v3687_v33  ;;  %v3697_v8 = vrot.slane %v3669_v9, 2  ;;  %v3678_v11 = vrot.slane %v3669_v9, 6 }
 0x46b   : > { %v3706_v4 = vsel %vm3679_vm8, %v3705_v39, %v3704_v61  ;;  %v3698_v62 = vsel %vm3679_vm8, %v3697_v8, %v3696_v55  ;;  %v3680_v63 = vsel %vm3679_vm8, %v3678_v11, %v3677_v58 }
 0x46c   : > { %v3546_v42 = vpop.f32.mrf.mxu2 }
 0x46d   : > { %v3556_v51 = vadd.f32 %v3546_v42, %v3470_v0  ;;  %v3632_v7 = vpop.f32.mrf.mxu3 }
 0x46f   : > { %v3642_v54 = vadd.f32 %v3632_v7, %v3556_v51 }
 0x471   : > { %v3646_v28 = vmax.f32 %v3641_v60, %v3642_v54 }
 0x473   : > { %v3654_v47 = vadd.f32 %v6150_v57, %v3646_v28 }
 0x475   : > { %v3662_v59 = vrot.slane %v3654_v47, 1 }
 0x477   : > { %v3670_v5 = vmax.f32 %v3654_v47, %v3662_v59 }
 0x479   : > { %v3707_v6 = vrot.slane %v3670_v5, 3  ;;  %v3689_v34 = vrot.slane %v3670_v5, 7  ;;  %v3699_v2 = vrot.slane %v3670_v5, 1  ;;  %v3681_v12 = vrot.slane %v3670_v5, 5 }
 0x47b   : > { %v3708_v19 = vsel %vm3682_vm9, %v3707_v6, %v3706_v4  ;;  %v3690_v17 = vsel %vm3682_vm9, %v3689_v34, %v3688_v29  ;;  %v3700_v13 = vsel %vm3682_vm9, %v3699_v2, %v3698_v62  ;;  %v3683_v36 = vsel %vm3682_vm9, %v3681_v12, %v3680_v63 }
 0x47c   : > { %3709 = vrot.lane.b32.xlu0 %v3708_v19, %s4331_s8 }
 0x484   : > { %3691 = vrot.lane.b32.xlu0 %v3690_v17, %s4331_s8 }
 0x4ee   : > { %v3710_v25 = vpop.permute.xlu0 %3709 }
 0x4ef   : > { %v3714_v57 = vsel %vm3712_vm10, %v3700_v13, %v3710_v25 }
 0x4f0   : > { %v3717_v3 = vrot.slane %v3714_v57, 4 }
 0x4f6   : > { %v3692_v43 = vpop.permute.xlu0 %3691 }
 0x4f7   : > { %v3713_v15 = vsel %vm3712_vm10, %v3683_v36, %v3692_v43 }
 0x4f8   : > { %v3718_v38 = vsel %vm493_vm0, %v3713_v15, %v3717_v3 }
 0x4f9   : > { %3720 = vst [vmem:[%s217_s15] sm:$0xff] %v3718_v38 }
 0x4fa   : > { %4293 = shalt.err (!%p4290_p3)
}
 0x4fb   : > { %4223 = dma.vmem_to_hbm [thread:$0]  (%p4400_p5), %s3736_s16, 128, %s3738_s17, %s3722_s23  }
 0x4fc PF: > { %p4229_p4 = scmp.ge.s32.totalorder %s4328_s21, 2  ;;  %s3749_s9 = sand.u32 1, %s4316_s18  }
 0x4fd   : > { %s3750_s10 = scalar_lea.sflag [#allocation6], %s3749_s9 }
 0x4fe   : > { %p4226_p7 = pnand %p4229_p4, %p4404_p6 }
 0x500   : > { %p4227_p8 = pneg %p4226_p7 }
 0x502   : > { %4311 = dma.done.wait (%p4227_p8), %s3750_s10, 128  }
 0x503   : > { %4313 = vsyncadd (%p4227_p8), %s3750_s10, 4294967168  ;;  %p15_p9 = scmp.ge.s32.totalorder %s4387_s24, 4   ;;  %s6451_s18 = smov %s4320_s19 }
 0x504   : > { %s6452_s19 = smov %s4324_s20  ;;  %s6453_s20 = smov %s4398_s27 }
 0x505   : > { %s6454_s21 = smov %s4387_s24  ;;  %17 = sbr.rel (!%p15_p9) target bundleno = 3 (0x3), region = 112 }
 0x50a   :  { %3756 = vsyncpa [#allocation6], 1 }
 0x50b   :  { %3758 = vsyncpa [#allocation6 + $0x1], 1 }

</bundles_post_ra>
